<compile_context>
chip_gen: v7x
topology: tpu7x:2x2x1
jax: 0.10.0
libtpu: 0.0.40
codegen_flags: <defaults>
</compile_context>

<pallas_src>
import math
from functools import partial

import jax
import jax.numpy as jnp
from jax.experimental import pallas as pl
from jax.experimental.pallas import tpu as pltpu

# --------------------------------------------------------------------------------------
# Model config
# --------------------------------------------------------------------------------------
VOCAB = 64
MAX_POS = 16
TYPE_VOCAB = 2
HIDDEN = 128
N_HEADS = 4
HEAD_DIM = HIDDEN // N_HEADS
FFN = 4 * HIDDEN
N_LAYERS = 2
NUM_ENTITY = 9
NUM_INTENT = 7
NUM_SCENARIO = 5
LN_EPS = 1e-12
HEAD_PAD = 128           # lane-dense padded output width for the tiny classification heads
NEG_INF = -1e9


def _full_spec(shape):
    """Whole-array block (grid-less call)."""
    return pl.BlockSpec(shape, lambda: (0,) * len(shape))


def _layernorm(x, g, b, eps=LN_EPS):
    mu = jnp.mean(x, axis=-1, keepdims=True)
    var = jnp.mean((x - mu) ** 2, axis=-1, keepdims=True)
    return (x - mu) * jax.lax.rsqrt(var + eps) * g + b


# --------------------------------------------------------------------------------------
# The single fused kernel: embeddings -> N_LAYERS encoder layers -> pooler + 3 heads
# --------------------------------------------------------------------------------------
def _nlu_kernel(B, S,
                ids_ref, tt_ref, mask_ref,
                wemb_ref, pemb_ref, temb_ref, embg_ref, embb_ref,
                qkvw_ref, qkvb_ref, ow_ref, ob_ref, l1g_ref, l1b_ref,
                f1w_ref, f1b_ref, f2w_ref, f2b_ref, l2g_ref, l2b_ref,
                pw_ref, pb_ref, entw_ref, entb_ref, clsw_ref, clsb_ref,
                ent_ref, clso_ref):
    M = B * S
    H = HIDDEN
    NH = N_HEADS
    HD = HEAD_DIM
    scale = 1.0 / math.sqrt(HD)

    # ---- embeddings, in-kernel (no XLA gather glue) ----
    ids = ids_ref[...]                                                     # (M, 1) int32
    word_oh = jnp.where(
        ids == jax.lax.broadcasted_iota(jnp.int32, (M, VOCAB), 1), 1.0, 0.0)
    we = jnp.dot(word_oh, wemb_ref[...], preferred_element_type=jnp.float32)   # (M, H)
    temb = temb_ref[...]                                                   # (TYPE_VOCAB, H)
    te = jnp.where(tt_ref[...] == 1, temb[1:2, :], temb[0:1, :])           # (M, H)
    pe = pemb_ref[...][:S, :]                                              # (S, H) static rows
    x = (we.reshape(B, S, H) + pe[None, :, :] + te.reshape(B, S, H)).reshape(M, H)
    h = _layernorm(x, embg_ref[...], embb_ref[...])                        # (M, H), stays resident

    # ---- additive attention mask: built and broadcast ONCE, reused for every layer/head ----
    am = (1.0 - mask_ref[...].astype(jnp.float32)) * NEG_INF               # (B, S)
    amf = jnp.broadcast_to(am[None, :, None, :], (NH, B, S, S)).reshape(NH * B, S, S)

    def split_heads(x2):
        # (M, H) -> (NH*B, S, HD); batch order (head, batch). Lane-slices + leading-dim concat
        # + free leading reshapes only (no sublane transposes).
        xh = jnp.concatenate(
            [x2[:, i * HD:(i + 1) * HD][None, :, :] for i in range(NH)], axis=0)   # (NH, M, HD)
        return xh.reshape(NH * B, S, HD)

    # ---- transformer layers: static unrolled loop, weights indexed by layer (ref[l]) ----
    for l in range(N_LAYERS):
        # fused QKV projection: one (M,H) @ (H,3H) MXU matmul
        qkv = jnp.dot(h, qkvw_ref[l], preferred_element_type=jnp.float32) + qkvb_ref[l]
        qh = split_heads(qkv[:, 0 * H:1 * H])
        kh = split_heads(qkv[:, 1 * H:2 * H])
        vh = split_heads(qkv[:, 2 * H:3 * H])

        # batched attention over all heads at once
        s = jnp.einsum('bqd,bkd->bqk', qh, kh,
                       preferred_element_type=jnp.float32) * scale + amf   # (NH*B, S, S)
        s = s - jnp.max(s, axis=-1, keepdims=True)
        p = jnp.exp(s)
        p = p * pl.reciprocal(jnp.sum(p, axis=-1, keepdims=True), approx=True)
        ctx = jnp.einsum('bqk,bkd->bqd', p, vh,
                         preferred_element_type=jnp.float32)               # (NH*B, S, HD)

        # merge heads back to (M, H) via lane concat, then ONE full-K output projection
        ctx = ctx.reshape(NH, M, HD)
        merged = jnp.concatenate([ctx[i] for i in range(NH)], axis=1)      # (M, H)
        attn = jnp.dot(merged, ow_ref[l], preferred_element_type=jnp.float32) + ob_ref[l]

        h1 = _layernorm(attn + h, l1g_ref[l], l1b_ref[l])

        # FFN
        ffn = jnp.dot(h1, f1w_ref[l], preferred_element_type=jnp.float32) + f1b_ref[l]
        ffn = jax.nn.gelu(ffn, approximate=True)
        ffn = jnp.dot(ffn, f2w_ref[l], preferred_element_type=jnp.float32) + f2b_ref[l]
        h = _layernorm(ffn + h1, l2g_ref[l], l2b_ref[l])

    # ---- pooler + heads (dropout1/2/3 are identity in eval mode); CLS extracted in-kernel ----
    cls = h.reshape(B, S, H)[:, 0:1, :].reshape(B, H)                      # CLS tokens (B, H)
    pooled = jnp.tanh(jnp.dot(cls, pw_ref[...], preferred_element_type=jnp.float32) + pb_ref[...])
    ent_ref[...] = (jnp.dot(h, entw_ref[...], preferred_element_type=jnp.float32)
                    + entb_ref[...]).astype(ent_ref.dtype)
    clso_ref[...] = (jnp.dot(pooled, clsw_ref[...], preferred_element_type=jnp.float32)
                     + clsb_ref[...]).astype(clso_ref.dtype)


def _cost_estimate(B, S):
    M = B * S
    per_layer = (2 * M * HIDDEN * 3 * HIDDEN
                 + 2 * 2 * N_HEADS * B * S * S * HEAD_DIM
                 + 2 * M * HIDDEN * HIDDEN
                 + 2 * 2 * M * HIDDEN * FFN)
    flops = (N_LAYERS * per_layer + 2 * M * VOCAB * HIDDEN
             + 2 * B * HIDDEN * HIDDEN + 2 * M * HIDDEN * HEAD_PAD + 2 * B * HIDDEN * HEAD_PAD)
    transc = N_LAYERS * (M * FFN + N_HEADS * B * S * S) + B * HIDDEN
    params_elems = (VOCAB * HIDDEN + MAX_POS * HIDDEN + TYPE_VOCAB * HIDDEN + 2 * HIDDEN
                    + N_LAYERS * (HIDDEN * 3 * HIDDEN + 3 * HIDDEN + HIDDEN * HIDDEN + HIDDEN
                                  + 4 * HIDDEN + HIDDEN * FFN + FFN + FFN * HIDDEN + HIDDEN)
                    + HIDDEN * HIDDEN + HIDDEN + 2 * (HIDDEN * HEAD_PAD + HEAD_PAD))
    bytes_acc = 4 * (params_elems + M * HEAD_PAD + B * HEAD_PAD) + 4 * (2 * M + B * S)
    return pl.CostEstimate(flops=int(flops), transcendentals=int(transc),
                           bytes_accessed=int(bytes_acc))


# --------------------------------------------------------------------------------------
# Parameters (deterministic synthetic init) + one-time fused re-layout
# --------------------------------------------------------------------------------------
def init_params(key):
    def nrm(k, shape, scale=0.02):
        return (scale * jax.random.normal(k, shape)).astype(jnp.float32)

    keys = iter(jax.random.split(key, 64))
    p = {
        "word_emb": nrm(next(keys), (VOCAB, HIDDEN)),
        "pos_emb": nrm(next(keys), (MAX_POS, HIDDEN)),
        "type_emb": nrm(next(keys), (TYPE_VOCAB, HIDDEN)),
        "emb_ln_g": jnp.ones((HIDDEN,), jnp.float32),
        "emb_ln_b": jnp.zeros((HIDDEN,), jnp.float32),
        "layers": [],
        "pool_w": nrm(next(keys), (HIDDEN, HIDDEN)),
        "pool_b": jnp.zeros((HIDDEN,), jnp.float32),
        "entity_w": nrm(next(keys), (HIDDEN, NUM_ENTITY)),
        "entity_b": jnp.zeros((NUM_ENTITY,), jnp.float32),
        "intent_w": nrm(next(keys), (HIDDEN, NUM_INTENT)),
        "intent_b": jnp.zeros((NUM_INTENT,), jnp.float32),
        "scenario_w": nrm(next(keys), (HIDDEN, NUM_SCENARIO)),
        "scenario_b": jnp.zeros((NUM_SCENARIO,), jnp.float32),
    }
    for _ in range(N_LAYERS):
        p["layers"].append({
            "q_w": nrm(next(keys), (HIDDEN, HIDDEN)), "q_b": jnp.zeros((HIDDEN,), jnp.float32),
            "k_w": nrm(next(keys), (HIDDEN, HIDDEN)), "k_b": jnp.zeros((HIDDEN,), jnp.float32),
            "v_w": nrm(next(keys), (HIDDEN, HIDDEN)), "v_b": jnp.zeros((HIDDEN,), jnp.float32),
            "o_w": nrm(next(keys), (HIDDEN, HIDDEN)), "o_b": jnp.zeros((HIDDEN,), jnp.float32),
            "ln1_g": jnp.ones((HIDDEN,), jnp.float32), "ln1_b": jnp.zeros((HIDDEN,), jnp.float32),
            "f1_w": nrm(next(keys), (HIDDEN, FFN)), "f1_b": jnp.zeros((FFN,), jnp.float32),
            "f2_w": nrm(next(keys), (FFN, HIDDEN)), "f2_b": jnp.zeros((HIDDEN,), jnp.float32),
            "ln2_g": jnp.ones((HIDDEN,), jnp.float32), "ln2_b": jnp.zeros((HIDDEN,), jnp.float32),
        })
    return p


def prepare_params(p):
    """One-time re-layout (outside the hot path): fused QKV weights, per-layer stacking on a
    leading layer dim, (1,N) biases/LN params, lane-padded (to 128) head weights."""
    def row(v):
        return v.reshape(1, -1)

    def pad_lanes(w, width=HEAD_PAD):
        return jnp.pad(w, ((0, 0), (0, width - w.shape[-1])))

    L = p["layers"]

    def stack(f):
        return jnp.stack([f(l) for l in L], axis=0)

    clsheads_w = jnp.concatenate([p["intent_w"], p["scenario_w"]], axis=1)   # (H, 12)
    clsheads_b = jnp.concatenate([p["intent_b"], p["scenario_b"]])           # (12,)
    return {
        "word_emb": p["word_emb"], "pos_emb": p["pos_emb"], "type_emb": p["type_emb"],
        "emb_ln_g": row(p["emb_ln_g"]), "emb_ln_b": row(p["emb_ln_b"]),
        "qkv_w": stack(lambda l: jnp.concatenate([l["q_w"], l["k_w"], l["v_w"]], axis=1)),
        "qkv_b": stack(lambda l: row(jnp.concatenate([l["q_b"], l["k_b"], l["v_b"]]))),
        "o_w": stack(lambda l: l["o_w"]),
        "o_b": stack(lambda l: row(l["o_b"])),
        "ln1_g": stack(lambda l: row(l["ln1_g"])),
        "ln1_b": stack(lambda l: row(l["ln1_b"])),
        "f1_w": stack(lambda l: l["f1_w"]),
        "f1_b": stack(lambda l: row(l["f1_b"])),
        "f2_w": stack(lambda l: l["f2_w"]),
        "f2_b": stack(lambda l: row(l["f2_b"])),
        "ln2_g": stack(lambda l: row(l["ln2_g"])),
        "ln2_b": stack(lambda l: row(l["ln2_b"])),
        "pool_w": p["pool_w"], "pool_b": row(p["pool_b"]),
        "entity_w_pad": pad_lanes(p["entity_w"]),
        "entity_b_pad": pad_lanes(row(p["entity_b"])),
        "clsheads_w_pad": pad_lanes(clsheads_w),
        "clsheads_b_pad": pad_lanes(row(clsheads_b)),
    }


# --------------------------------------------------------------------------------------
# Forward pass: exactly ONE pallas_call
# --------------------------------------------------------------------------------------
def nlu_forward(params, ids, mask, token_type_ids):
    B, S = ids.shape
    M = B * S
    ids2 = ids.reshape(M, 1).astype(jnp.int32)
    tt2 = token_type_ids.reshape(M, 1).astype(jnp.int32)
    mask_i = mask.astype(jnp.int32)

    args = (ids2, tt2, mask_i,
            params["word_emb"], params["pos_emb"], params["type_emb"],
            params["emb_ln_g"], params["emb_ln_b"],
            params["qkv_w"], params["qkv_b"], params["o_w"], params["o_b"],
            params["ln1_g"], params["ln1_b"],
            params["f1_w"], params["f1_b"], params["f2_w"], params["f2_b"],
            params["ln2_g"], params["ln2_b"],
            params["pool_w"], params["pool_b"],
            params["entity_w_pad"], params["entity_b_pad"],
            params["clsheads_w_pad"], params["clsheads_b_pad"])

    ent_full, cls_full = pl.pallas_call(
        partial(_nlu_kernel, B, S),
        out_shape=(jax.ShapeDtypeStruct((M, HEAD_PAD), jnp.float32),
                   jax.ShapeDtypeStruct((B, HEAD_PAD), jnp.float32)),
        in_specs=[_full_spec(a.shape) for a in args],
        out_specs=(_full_spec((M, HEAD_PAD)), _full_spec((B, HEAD_PAD))),
        cost_estimate=_cost_estimate(B, S),
        compiler_params=pltpu.CompilerParams(vmem_limit_bytes=32 * 1024 * 1024),
    )(*args)

    entity_hs = ent_full[:, :NUM_ENTITY].reshape(B, S, NUM_ENTITY)
    intent_hs = cls_full[:, :NUM_INTENT]
    scenario_hs = cls_full[:, NUM_INTENT:NUM_INTENT + NUM_SCENARIO]
    return entity_hs, intent_hs, scenario_hs


# --------------------------------------------------------------------------------------
if __name__ == "__main__":
    key = jax.random.PRNGKey(0)
    pkey, ikey = jax.random.split(key)
    params = prepare_params(init_params(pkey))

    B, S = 2, 8
    ids = jax.random.randint(ikey, (B, S), 0, VOCAB, dtype=jnp.int32)
    mask = jnp.ones((B, S), dtype=jnp.int32).at[1, 6:].set(0)   # pad last 2 tokens of sample 1
    token_type_ids = jnp.zeros((B, S), dtype=jnp.int32)

    fwd = jax.jit(nlu_forward)
    entity_hs, intent_hs, scenario_hs = fwd(params, ids, mask, token_type_ids)
    jax.block_until_ready((entity_hs, intent_hs, scenario_hs))

    assert entity_hs.shape == (B, S, NUM_ENTITY)
    assert intent_hs.shape == (B, NUM_INTENT)
    assert scenario_hs.shape == (B, NUM_SCENARIO)
    assert all(bool(jnp.all(jnp.isfinite(t))) for t in (entity_hs, intent_hs, scenario_hs))
    print("KERNEL_OK")
</pallas_src>

<mosaic_0001>
module attributes {stable_mosaic.version = 11 : i64} {
  func.func @_nlu_kernel(%arg0: memref<16x1xi32, #tpu.memory_space<vmem>>, %arg1: memref<16x1xi32, #tpu.memory_space<vmem>>, %arg2: memref<2x8xi32, #tpu.memory_space<vmem>>, %arg3: memref<64x128xf32, #tpu.memory_space<vmem>>, %arg4: memref<16x128xf32, #tpu.memory_space<vmem>>, %arg5: memref<2x128xf32, #tpu.memory_space<vmem>>, %arg6: memref<1x128xf32, #tpu.memory_space<vmem>>, %arg7: memref<1x128xf32, #tpu.memory_space<vmem>>, %arg8: memref<2x128x384xf32, #tpu.memory_space<vmem>>, %arg9: memref<2x1x384xf32, #tpu.memory_space<vmem>>, %arg10: memref<2x128x128xf32, #tpu.memory_space<vmem>>, %arg11: memref<2x1x128xf32, #tpu.memory_space<vmem>>, %arg12: memref<2x1x128xf32, #tpu.memory_space<vmem>>, %arg13: memref<2x1x128xf32, #tpu.memory_space<vmem>>, %arg14: memref<2x128x512xf32, #tpu.memory_space<vmem>>, %arg15: memref<2x1x512xf32, #tpu.memory_space<vmem>>, %arg16: memref<2x512x128xf32, #tpu.memory_space<vmem>>, %arg17: memref<2x1x128xf32, #tpu.memory_space<vmem>>, %arg18: memref<2x1x128xf32, #tpu.memory_space<vmem>>, %arg19: memref<2x1x128xf32, #tpu.memory_space<vmem>>, %arg20: memref<128x128xf32, #tpu.memory_space<vmem>>, %arg21: memref<1x128xf32, #tpu.memory_space<vmem>>, %arg22: memref<128x128xf32, #tpu.memory_space<vmem>>, %arg23: memref<1x128xf32, #tpu.memory_space<vmem>>, %arg24: memref<128x128xf32, #tpu.memory_space<vmem>>, %arg25: memref<1x128xf32, #tpu.memory_space<vmem>>, %arg26: memref<16x128xf32, #tpu.memory_space<vmem>>, %arg27: memref<2x128xf32, #tpu.memory_space<vmem>>) attributes {dimension_semantics = [], scalar_prefetch = 0 : i64, scratch_operands = 0 : i64, tpu.core_type = #tpu.core_type<tc>} {
    %c0 = arith.constant 0 : index
    %c0_0 = arith.constant 0 : index
    %0 = vector.load %arg0[%c0, %c0_0] : memref<16x1xi32, #tpu.memory_space<vmem>>, vector<16x1xi32>
    %1 = tpu.iota {dimensions = array<i32: 1>} : vector<16x64xi32>
    %2 = vector.broadcast %0 : vector<16x1xi32> to vector<16x64xi32>
    %3 = arith.cmpi eq, %2, %1 : vector<16x64xi32>
    %cst = arith.constant 1.000000e+00 : f32
    %cst_1 = arith.constant 0.000000e+00 : f32
    %4 = vector.broadcast %cst : f32 to vector<16x64xf32>
    %5 = vector.broadcast %cst_1 : f32 to vector<16x64xf32>
    %6 = arith.select %3, %4, %5 : vector<16x64xi1>, vector<16x64xf32>
    %c0_2 = arith.constant 0 : index
    %c0_3 = arith.constant 0 : index
    %7 = vector.load %arg3[%c0_2, %c0_3] : memref<64x128xf32, #tpu.memory_space<vmem>>, vector<64x128xf32>
    %cst_4 = arith.constant dense<0.000000e+00> : vector<16x128xf32>
    %8 = tpu.matmul %6, %7, %cst_4 {dimension_numbers = #tpu.dot_dimension_numbers<[1], [0], [0], [1], [0, 0, 1, 1], [], []>} : vector<16x64xf32>, vector<64x128xf32>, vector<16x128xf32> -> vector<16x128xf32>
    %c0_5 = arith.constant 0 : index
    %c0_6 = arith.constant 0 : index
    %9 = vector.load %arg5[%c0_5, %c0_6] : memref<2x128xf32, #tpu.memory_space<vmem>>, vector<2x128xf32>
    %c0_7 = arith.constant 0 : index
    %c0_8 = arith.constant 0 : index
    %10 = vector.load %arg1[%c0_7, %c0_8] : memref<16x1xi32, #tpu.memory_space<vmem>>, vector<16x1xi32>
    %c1_i32 = arith.constant 1 : i32
    %11 = vector.broadcast %c1_i32 : i32 to vector<16x1xi32>
    %12 = arith.cmpi eq, %10, %11 : vector<16x1xi32>
    %13 = vector.extract_strided_slice %9 {offsets = [1, 0], sizes = [1, 128], strides = [1, 1]} : vector<2x128xf32> to vector<1x128xf32>
    %14 = vector.extract_strided_slice %9 {offsets = [0, 0], sizes = [1, 128], strides = [1, 1]} : vector<2x128xf32> to vector<1x128xf32>
    %15 = vector.shape_cast %12 : vector<16x1xi1> to vector<16x1xi1>
    %16 = vector.broadcast %15 : vector<16x1xi1> to vector<16x128xi1>
    %17 = vector.shape_cast %13 : vector<1x128xf32> to vector<1x128xf32>
    %18 = vector.broadcast %17 : vector<1x128xf32> to vector<16x128xf32>
    %19 = vector.shape_cast %14 : vector<1x128xf32> to vector<1x128xf32>
    %20 = vector.broadcast %19 : vector<1x128xf32> to vector<16x128xf32>
    %21 = arith.select %16, %18, %20 : vector<16x128xi1>, vector<16x128xf32>
    %c0_9 = arith.constant 0 : index
    %c0_10 = arith.constant 0 : index
    %22 = vector.load %arg4[%c0_9, %c0_10] : memref<16x128xf32, #tpu.memory_space<vmem>>, vector<16x128xf32>
    %23 = vector.extract_strided_slice %22 {offsets = [0, 0], sizes = [8, 128], strides = [1, 1]} : vector<16x128xf32> to vector<8x128xf32>
    %24 = vector.shape_cast %8 : vector<16x128xf32> to vector<2x8x128xf32>
    %25 = vector.shape_cast %23 : vector<8x128xf32> to vector<1x8x128xf32>
    %26 = vector.broadcast %25 : vector<1x8x128xf32> to vector<2x8x128xf32>
    %27 = arith.addf %24, %26 : vector<2x8x128xf32>
    %28 = vector.shape_cast %21 : vector<16x128xf32> to vector<2x8x128xf32>
    %29 = arith.addf %27, %28 : vector<2x8x128xf32>
    %30 = vector.shape_cast %29 : vector<2x8x128xf32> to vector<16x128xf32>
    %c0_11 = arith.constant 0 : index
    %c0_12 = arith.constant 0 : index
    %31 = vector.load %arg6[%c0_11, %c0_12] : memref<1x128xf32, #tpu.memory_space<vmem>>, vector<1x128xf32>
    %c0_13 = arith.constant 0 : index
    %c0_14 = arith.constant 0 : index
    %32 = vector.load %arg7[%c0_13, %c0_14] : memref<1x128xf32, #tpu.memory_space<vmem>>, vector<1x128xf32>
    %cst_15 = arith.constant dense<0.000000e+00> : vector<16xf32>
    %33 = vector.multi_reduction <add>, %30, %cst_15 [1] : vector<16x128xf32> to vector<16xf32>
    %34 = vector.shape_cast %33 : vector<16xf32> to vector<16x1xf32>
    %cst_16 = arith.constant 1.280000e+02 : f32
    %35 = vector.broadcast %cst_16 : f32 to vector<16x1xf32>
    %36 = arith.divf %34, %35 : vector<16x1xf32>
    %37 = vector.broadcast %36 : vector<16x1xf32> to vector<16x128xf32>
    %38 = arith.subf %30, %37 : vector<16x128xf32>
    %39 = arith.mulf %38, %38 : vector<16x128xf32>
    %cst_17 = arith.constant dense<0.000000e+00> : vector<16xf32>
    %40 = vector.multi_reduction <add>, %39, %cst_17 [1] : vector<16x128xf32> to vector<16xf32>
    %41 = vector.shape_cast %40 : vector<16xf32> to vector<16x1xf32>
    %cst_18 = arith.constant 1.280000e+02 : f32
    %42 = vector.broadcast %cst_18 : f32 to vector<16x1xf32>
    %43 = arith.divf %41, %42 : vector<16x1xf32>
    %44 = vector.broadcast %36 : vector<16x1xf32> to vector<16x128xf32>
    %45 = arith.subf %30, %44 : vector<16x128xf32>
    %cst_19 = arith.constant 9.99999996E-13 : f32
    %46 = vector.broadcast %cst_19 : f32 to vector<16x1xf32>
    %47 = arith.addf %43, %46 : vector<16x1xf32>
    %48 = math.rsqrt %47 : vector<16x1xf32>
    %49 = vector.broadcast %48 : vector<16x1xf32> to vector<16x128xf32>
    %50 = arith.mulf %45, %49 : vector<16x128xf32>
    %51 = vector.broadcast %31 : vector<1x128xf32> to vector<16x128xf32>
    %52 = arith.mulf %50, %51 : vector<16x128xf32>
    %53 = vector.broadcast %32 : vector<1x128xf32> to vector<16x128xf32>
    %54 = arith.addf %52, %53 : vector<16x128xf32>
    %c0_20 = arith.constant 0 : index
    %c0_21 = arith.constant 0 : index
    %55 = vector.load %arg2[%c0_20, %c0_21] : memref<2x8xi32, #tpu.memory_space<vmem>>, vector<2x8xi32>
    %56 = arith.sitofp %55 : vector<2x8xi32> to vector<2x8xf32>
    %cst_22 = arith.constant 1.000000e+00 : f32
    %57 = vector.broadcast %cst_22 : f32 to vector<2x8xf32>
    %58 = arith.subf %57, %56 : vector<2x8xf32>
    %cst_23 = arith.constant -1.000000e+09 : f32
    %59 = vector.broadcast %cst_23 : f32 to vector<2x8xf32>
    %60 = arith.mulf %58, %59 : vector<2x8xf32>
    %61 = vector.shape_cast %60 : vector<2x8xf32> to vector<1x2x1x8xf32>
    %62 = vector.shape_cast %61 : vector<1x2x1x8xf32> to vector<1x2x1x8xf32>
    %63 = vector.broadcast %62 : vector<1x2x1x8xf32> to vector<4x2x8x8xf32>
    %64 = vector.shape_cast %63 : vector<4x2x8x8xf32> to vector<8x8x8xf32>
    %c0_24 = arith.constant 0 : index
    %c0_25 = arith.constant 0 : index
    %c0_26 = arith.constant 0 : index
    %65 = vector.load %arg8[%c0_24, %c0_25, %c0_26] : memref<2x128x384xf32, #tpu.memory_space<vmem>>, vector<1x128x384xf32>
    %66 = vector.shape_cast %65 : vector<1x128x384xf32> to vector<128x384xf32>
    %cst_27 = arith.constant dense<0.000000e+00> : vector<16x384xf32>
    %67 = tpu.matmul %54, %66, %cst_27 {dimension_numbers = #tpu.dot_dimension_numbers<[1], [0], [0], [1], [0, 0, 1, 1], [], []>} : vector<16x128xf32>, vector<128x384xf32>, vector<16x384xf32> -> vector<16x384xf32>
    %c0_28 = arith.constant 0 : index
    %c0_29 = arith.constant 0 : index
    %c0_30 = arith.constant 0 : index
    %68 = vector.load %arg9[%c0_28, %c0_29, %c0_30] : memref<2x1x384xf32, #tpu.memory_space<vmem>>, vector<1x1x384xf32>
    %69 = vector.shape_cast %68 : vector<1x1x384xf32> to vector<1x384xf32>
    %70 = vector.broadcast %69 : vector<1x384xf32> to vector<16x384xf32>
    %71 = arith.addf %67, %70 : vector<16x384xf32>
    %72 = vector.extract_strided_slice %71 {offsets = [0, 0], sizes = [16, 128], strides = [1, 1]} : vector<16x384xf32> to vector<16x128xf32>
    %73 = vector.extract_strided_slice %72 {offsets = [0, 0], sizes = [16, 32], strides = [1, 1]} : vector<16x128xf32> to vector<16x32xf32>
    %74 = vector.shape_cast %73 : vector<16x32xf32> to vector<1x16x32xf32>
    %75 = vector.extract_strided_slice %72 {offsets = [0, 32], sizes = [16, 32], strides = [1, 1]} : vector<16x128xf32> to vector<16x32xf32>
    %76 = vector.shape_cast %75 : vector<16x32xf32> to vector<1x16x32xf32>
    %77 = vector.extract_strided_slice %72 {offsets = [0, 64], sizes = [16, 32], strides = [1, 1]} : vector<16x128xf32> to vector<16x32xf32>
    %78 = vector.shape_cast %77 : vector<16x32xf32> to vector<1x16x32xf32>
    %79 = vector.extract_strided_slice %72 {offsets = [0, 96], sizes = [16, 32], strides = [1, 1]} : vector<16x128xf32> to vector<16x32xf32>
    %80 = vector.shape_cast %79 : vector<16x32xf32> to vector<1x16x32xf32>
    %81 = tpu.concatenate %74, %76, %78, %80 in 0 : vector<1x16x32xf32>, vector<1x16x32xf32>, vector<1x16x32xf32>, vector<1x16x32xf32> -> vector<4x16x32xf32>
    %82 = vector.shape_cast %81 : vector<4x16x32xf32> to vector<8x8x32xf32>
    %83 = vector.extract_strided_slice %71 {offsets = [0, 128], sizes = [16, 128], strides = [1, 1]} : vector<16x384xf32> to vector<16x128xf32>
    %84 = vector.extract_strided_slice %83 {offsets = [0, 0], sizes = [16, 32], strides = [1, 1]} : vector<16x128xf32> to vector<16x32xf32>
    %85 = vector.shape_cast %84 : vector<16x32xf32> to vector<1x16x32xf32>
    %86 = vector.extract_strided_slice %83 {offsets = [0, 32], sizes = [16, 32], strides = [1, 1]} : vector<16x128xf32> to vector<16x32xf32>
    %87 = vector.shape_cast %86 : vector<16x32xf32> to vector<1x16x32xf32>
    %88 = vector.extract_strided_slice %83 {offsets = [0, 64], sizes = [16, 32], strides = [1, 1]} : vector<16x128xf32> to vector<16x32xf32>
    %89 = vector.shape_cast %88 : vector<16x32xf32> to vector<1x16x32xf32>
    %90 = vector.extract_strided_slice %83 {offsets = [0, 96], sizes = [16, 32], strides = [1, 1]} : vector<16x128xf32> to vector<16x32xf32>
    %91 = vector.shape_cast %90 : vector<16x32xf32> to vector<1x16x32xf32>
    %92 = tpu.concatenate %85, %87, %89, %91 in 0 : vector<1x16x32xf32>, vector<1x16x32xf32>, vector<1x16x32xf32>, vector<1x16x32xf32> -> vector<4x16x32xf32>
    %93 = vector.shape_cast %92 : vector<4x16x32xf32> to vector<8x8x32xf32>
    %94 = vector.extract_strided_slice %71 {offsets = [0, 256], sizes = [16, 128], strides = [1, 1]} : vector<16x384xf32> to vector<16x128xf32>
    %95 = vector.extract_strided_slice %94 {offsets = [0, 0], sizes = [16, 32], strides = [1, 1]} : vector<16x128xf32> to vector<16x32xf32>
    %96 = vector.shape_cast %95 : vector<16x32xf32> to vector<1x16x32xf32>
    %97 = vector.extract_strided_slice %94 {offsets = [0, 32], sizes = [16, 32], strides = [1, 1]} : vector<16x128xf32> to vector<16x32xf32>
    %98 = vector.shape_cast %97 : vector<16x32xf32> to vector<1x16x32xf32>
    %99 = vector.extract_strided_slice %94 {offsets = [0, 64], sizes = [16, 32], strides = [1, 1]} : vector<16x128xf32> to vector<16x32xf32>
    %100 = vector.shape_cast %99 : vector<16x32xf32> to vector<1x16x32xf32>
    %101 = vector.extract_strided_slice %94 {offsets = [0, 96], sizes = [16, 32], strides = [1, 1]} : vector<16x128xf32> to vector<16x32xf32>
    %102 = vector.shape_cast %101 : vector<16x32xf32> to vector<1x16x32xf32>
    %103 = tpu.concatenate %96, %98, %100, %102 in 0 : vector<1x16x32xf32>, vector<1x16x32xf32>, vector<1x16x32xf32>, vector<1x16x32xf32> -> vector<4x16x32xf32>
    %104 = vector.shape_cast %103 : vector<4x16x32xf32> to vector<8x8x32xf32>
    "tpu.trace_start"() <{level = 10 : i32, message = "bqd,bkd->bqk"}> : () -> ()
    %cst_31 = arith.constant dense<0.000000e+00> : vector<8x8x8xf32>
    %105 = tpu.matmul %82, %93, %cst_31 {dimension_numbers = #tpu.dot_dimension_numbers<[2], [2], [1], [1], [0, 0, 0, 1, 1, 1], [0], [0]>} : vector<8x8x32xf32>, vector<8x8x32xf32>, vector<8x8x8xf32> -> vector<8x8x8xf32>
    "tpu.trace_stop"() : () -> ()
    %cst_32 = arith.constant 0.176776692 : f32
    %106 = vector.broadcast %cst_32 : f32 to vector<8x8x8xf32>
    %107 = arith.mulf %105, %106 : vector<8x8x8xf32>
    %108 = arith.addf %107, %64 : vector<8x8x8xf32>
    %cst_33 = arith.constant dense<0xFF800000> : vector<8x8xf32>
    %109 = vector.multi_reduction <maximumf>, %108, %cst_33 [2] : vector<8x8x8xf32> to vector<8x8xf32>
    %110 = vector.shape_cast %109 : vector<8x8xf32> to vector<8x8x1xf32>
    %111 = vector.broadcast %110 : vector<8x8x1xf32> to vector<8x8x8xf32>
    %112 = arith.subf %108, %111 : vector<8x8x8xf32>
    %113 = math.exp %112 : vector<8x8x8xf32>
    %cst_34 = arith.constant dense<0.000000e+00> : vector<8x8xf32>
    %114 = vector.multi_reduction <add>, %113, %cst_34 [2] : vector<8x8x8xf32> to vector<8x8xf32>
    %115 = vector.shape_cast %114 : vector<8x8xf32> to vector<8x8x1xf32>
    %116 = tpu.reciprocal %115 {approx = true} : vector<8x8x1xf32> -> vector<8x8x1xf32>
    %117 = vector.broadcast %116 : vector<8x8x1xf32> to vector<8x8x8xf32>
    %118 = arith.mulf %113, %117 : vector<8x8x8xf32>
    "tpu.trace_start"() <{level = 10 : i32, message = "bqk,bkd->bqd"}> : () -> ()
    %cst_35 = arith.constant dense<0.000000e+00> : vector<8x8x32xf32>
    %119 = tpu.matmul %118, %104, %cst_35 {dimension_numbers = #tpu.dot_dimension_numbers<[2], [1], [1], [2], [0, 0, 0, 1, 1, 2], [0], [0]>} : vector<8x8x8xf32>, vector<8x8x32xf32>, vector<8x8x32xf32> -> vector<8x8x32xf32>
    "tpu.trace_stop"() : () -> ()
    %120 = vector.shape_cast %119 : vector<8x8x32xf32> to vector<4x16x32xf32>
    %121 = vector.extract_strided_slice %120 {offsets = [0, 0, 0], sizes = [1, 16, 32], strides = [1, 1, 1]} : vector<4x16x32xf32> to vector<1x16x32xf32>
    %122 = vector.shape_cast %121 : vector<1x16x32xf32> to vector<16x32xf32>
    %123 = vector.extract_strided_slice %120 {offsets = [1, 0, 0], sizes = [1, 16, 32], strides = [1, 1, 1]} : vector<4x16x32xf32> to vector<1x16x32xf32>
    %124 = vector.shape_cast %123 : vector<1x16x32xf32> to vector<16x32xf32>
    %125 = vector.extract_strided_slice %120 {offsets = [2, 0, 0], sizes = [1, 16, 32], strides = [1, 1, 1]} : vector<4x16x32xf32> to vector<1x16x32xf32>
    %126 = vector.shape_cast %125 : vector<1x16x32xf32> to vector<16x32xf32>
    %127 = vector.extract_strided_slice %120 {offsets = [3, 0, 0], sizes = [1, 16, 32], strides = [1, 1, 1]} : vector<4x16x32xf32> to vector<1x16x32xf32>
    %128 = vector.shape_cast %127 : vector<1x16x32xf32> to vector<16x32xf32>
    %129 = tpu.concatenate %122, %124, %126, %128 in 1 : vector<16x32xf32>, vector<16x32xf32>, vector<16x32xf32>, vector<16x32xf32> -> vector<16x128xf32>
    %c0_36 = arith.constant 0 : index
    %c0_37 = arith.constant 0 : index
    %c0_38 = arith.constant 0 : index
    %130 = vector.load %arg10[%c0_36, %c0_37, %c0_38] : memref<2x128x128xf32, #tpu.memory_space<vmem>>, vector<1x128x128xf32>
    %131 = vector.shape_cast %130 : vector<1x128x128xf32> to vector<128x128xf32>
    %cst_39 = arith.constant dense<0.000000e+00> : vector<16x128xf32>
    %132 = tpu.matmul %129, %131, %cst_39 {dimension_numbers = #tpu.dot_dimension_numbers<[1], [0], [0], [1], [0, 0, 1, 1], [], []>} : vector<16x128xf32>, vector<128x128xf32>, vector<16x128xf32> -> vector<16x128xf32>
    %c0_40 = arith.constant 0 : index
    %c0_41 = arith.constant 0 : index
    %c0_42 = arith.constant 0 : index
    %133 = vector.load %arg11[%c0_40, %c0_41, %c0_42] : memref<2x1x128xf32, #tpu.memory_space<vmem>>, vector<1x1x128xf32>
    %134 = vector.shape_cast %133 : vector<1x1x128xf32> to vector<1x128xf32>
    %135 = vector.broadcast %134 : vector<1x128xf32> to vector<16x128xf32>
    %136 = arith.addf %132, %135 : vector<16x128xf32>
    %137 = arith.addf %136, %54 : vector<16x128xf32>
    %c0_43 = arith.constant 0 : index
    %c0_44 = arith.constant 0 : index
    %c0_45 = arith.constant 0 : index
    %138 = vector.load %arg12[%c0_43, %c0_44, %c0_45] : memref<2x1x128xf32, #tpu.memory_space<vmem>>, vector<1x1x128xf32>
    %139 = vector.shape_cast %138 : vector<1x1x128xf32> to vector<1x128xf32>
    %c0_46 = arith.constant 0 : index
    %c0_47 = arith.constant 0 : index
    %c0_48 = arith.constant 0 : index
    %140 = vector.load %arg13[%c0_46, %c0_47, %c0_48] : memref<2x1x128xf32, #tpu.memory_space<vmem>>, vector<1x1x128xf32>
    %141 = vector.shape_cast %140 : vector<1x1x128xf32> to vector<1x128xf32>
    %cst_49 = arith.constant dense<0.000000e+00> : vector<16xf32>
    %142 = vector.multi_reduction <add>, %137, %cst_49 [1] : vector<16x128xf32> to vector<16xf32>
    %143 = vector.shape_cast %142 : vector<16xf32> to vector<16x1xf32>
    %cst_50 = arith.constant 1.280000e+02 : f32
    %144 = vector.broadcast %cst_50 : f32 to vector<16x1xf32>
    %145 = arith.divf %143, %144 : vector<16x1xf32>
    %146 = vector.broadcast %145 : vector<16x1xf32> to vector<16x128xf32>
    %147 = arith.subf %137, %146 : vector<16x128xf32>
    %148 = arith.mulf %147, %147 : vector<16x128xf32>
    %cst_51 = arith.constant dense<0.000000e+00> : vector<16xf32>
    %149 = vector.multi_reduction <add>, %148, %cst_51 [1] : vector<16x128xf32> to vector<16xf32>
    %150 = vector.shape_cast %149 : vector<16xf32> to vector<16x1xf32>
    %cst_52 = arith.constant 1.280000e+02 : f32
    %151 = vector.broadcast %cst_52 : f32 to vector<16x1xf32>
    %152 = arith.divf %150, %151 : vector<16x1xf32>
    %153 = vector.broadcast %145 : vector<16x1xf32> to vector<16x128xf32>
    %154 = arith.subf %137, %153 : vector<16x128xf32>
    %cst_53 = arith.constant 9.99999996E-13 : f32
    %155 = vector.broadcast %cst_53 : f32 to vector<16x1xf32>
    %156 = arith.addf %152, %155 : vector<16x1xf32>
    %157 = math.rsqrt %156 : vector<16x1xf32>
    %158 = vector.broadcast %157 : vector<16x1xf32> to vector<16x128xf32>
    %159 = arith.mulf %154, %158 : vector<16x128xf32>
    %160 = vector.broadcast %139 : vector<1x128xf32> to vector<16x128xf32>
    %161 = arith.mulf %159, %160 : vector<16x128xf32>
    %162 = vector.broadcast %141 : vector<1x128xf32> to vector<16x128xf32>
    %163 = arith.addf %161, %162 : vector<16x128xf32>
    %c0_54 = arith.constant 0 : index
    %c0_55 = arith.constant 0 : index
    %c0_56 = arith.constant 0 : index
    %164 = vector.load %arg14[%c0_54, %c0_55, %c0_56] : memref<2x128x512xf32, #tpu.memory_space<vmem>>, vector<1x128x512xf32>
    %165 = vector.shape_cast %164 : vector<1x128x512xf32> to vector<128x512xf32>
    %cst_57 = arith.constant dense<0.000000e+00> : vector<16x512xf32>
    %166 = tpu.matmul %163, %165, %cst_57 {dimension_numbers = #tpu.dot_dimension_numbers<[1], [0], [0], [1], [0, 0, 1, 1], [], []>} : vector<16x128xf32>, vector<128x512xf32>, vector<16x512xf32> -> vector<16x512xf32>
    %c0_58 = arith.constant 0 : index
    %c0_59 = arith.constant 0 : index
    %c0_60 = arith.constant 0 : index
    %167 = vector.load %arg15[%c0_58, %c0_59, %c0_60] : memref<2x1x512xf32, #tpu.memory_space<vmem>>, vector<1x1x512xf32>
    %168 = vector.shape_cast %167 : vector<1x1x512xf32> to vector<1x512xf32>
    %169 = vector.broadcast %168 : vector<1x512xf32> to vector<16x512xf32>
    %170 = arith.addf %166, %169 : vector<16x512xf32>
    %171 = arith.mulf %170, %170 : vector<16x512xf32>
    %172 = arith.mulf %170, %171 : vector<16x512xf32>
    %cst_61 = arith.constant 4.471500e-02 : f32
    %173 = vector.broadcast %cst_61 : f32 to vector<16x512xf32>
    %174 = arith.mulf %173, %172 : vector<16x512xf32>
    %175 = arith.addf %170, %174 : vector<16x512xf32>
    %cst_62 = arith.constant 0.797884583 : f32
    %176 = vector.broadcast %cst_62 : f32 to vector<16x512xf32>
    %177 = arith.mulf %176, %175 : vector<16x512xf32>
    %178 = math.tanh %177 : vector<16x512xf32>
    %cst_63 = arith.constant 1.000000e+00 : f32
    %179 = vector.broadcast %cst_63 : f32 to vector<16x512xf32>
    %180 = arith.addf %179, %178 : vector<16x512xf32>
    %cst_64 = arith.constant 5.000000e-01 : f32
    %181 = vector.broadcast %cst_64 : f32 to vector<16x512xf32>
    %182 = arith.mulf %181, %180 : vector<16x512xf32>
    %183 = arith.mulf %170, %182 : vector<16x512xf32>
    %c0_65 = arith.constant 0 : index
    %c0_66 = arith.constant 0 : index
    %c0_67 = arith.constant 0 : index
    %184 = vector.load %arg16[%c0_65, %c0_66, %c0_67] : memref<2x512x128xf32, #tpu.memory_space<vmem>>, vector<1x512x128xf32>
    %185 = vector.shape_cast %184 : vector<1x512x128xf32> to vector<512x128xf32>
    %cst_68 = arith.constant dense<0.000000e+00> : vector<16x128xf32>
    %186 = tpu.matmul %183, %185, %cst_68 {dimension_numbers = #tpu.dot_dimension_numbers<[1], [0], [0], [1], [0, 0, 1, 1], [], []>} : vector<16x512xf32>, vector<512x128xf32>, vector<16x128xf32> -> vector<16x128xf32>
    %c0_69 = arith.constant 0 : index
    %c0_70 = arith.constant 0 : index
    %c0_71 = arith.constant 0 : index
    %187 = vector.load %arg17[%c0_69, %c0_70, %c0_71] : memref<2x1x128xf32, #tpu.memory_space<vmem>>, vector<1x1x128xf32>
    %188 = vector.shape_cast %187 : vector<1x1x128xf32> to vector<1x128xf32>
    %189 = vector.broadcast %188 : vector<1x128xf32> to vector<16x128xf32>
    %190 = arith.addf %186, %189 : vector<16x128xf32>
    %191 = arith.addf %190, %163 : vector<16x128xf32>
    %c0_72 = arith.constant 0 : index
    %c0_73 = arith.constant 0 : index
    %c0_74 = arith.constant 0 : index
    %192 = vector.load %arg18[%c0_72, %c0_73, %c0_74] : memref<2x1x128xf32, #tpu.memory_space<vmem>>, vector<1x1x128xf32>
    %193 = vector.shape_cast %192 : vector<1x1x128xf32> to vector<1x128xf32>
    %c0_75 = arith.constant 0 : index
    %c0_76 = arith.constant 0 : index
    %c0_77 = arith.constant 0 : index
    %194 = vector.load %arg19[%c0_75, %c0_76, %c0_77] : memref<2x1x128xf32, #tpu.memory_space<vmem>>, vector<1x1x128xf32>
    %195 = vector.shape_cast %194 : vector<1x1x128xf32> to vector<1x128xf32>
    %cst_78 = arith.constant dense<0.000000e+00> : vector<16xf32>
    %196 = vector.multi_reduction <add>, %191, %cst_78 [1] : vector<16x128xf32> to vector<16xf32>
    %197 = vector.shape_cast %196 : vector<16xf32> to vector<16x1xf32>
    %cst_79 = arith.constant 1.280000e+02 : f32
    %198 = vector.broadcast %cst_79 : f32 to vector<16x1xf32>
    %199 = arith.divf %197, %198 : vector<16x1xf32>
    %200 = vector.broadcast %199 : vector<16x1xf32> to vector<16x128xf32>
    %201 = arith.subf %191, %200 : vector<16x128xf32>
    %202 = arith.mulf %201, %201 : vector<16x128xf32>
    %cst_80 = arith.constant dense<0.000000e+00> : vector<16xf32>
    %203 = vector.multi_reduction <add>, %202, %cst_80 [1] : vector<16x128xf32> to vector<16xf32>
    %204 = vector.shape_cast %203 : vector<16xf32> to vector<16x1xf32>
    %cst_81 = arith.constant 1.280000e+02 : f32
    %205 = vector.broadcast %cst_81 : f32 to vector<16x1xf32>
    %206 = arith.divf %204, %205 : vector<16x1xf32>
    %207 = vector.broadcast %199 : vector<16x1xf32> to vector<16x128xf32>
    %208 = arith.subf %191, %207 : vector<16x128xf32>
    %cst_82 = arith.constant 9.99999996E-13 : f32
    %209 = vector.broadcast %cst_82 : f32 to vector<16x1xf32>
    %210 = arith.addf %206, %209 : vector<16x1xf32>
    %211 = math.rsqrt %210 : vector<16x1xf32>
    %212 = vector.broadcast %211 : vector<16x1xf32> to vector<16x128xf32>
    %213 = arith.mulf %208, %212 : vector<16x128xf32>
    %214 = vector.broadcast %193 : vector<1x128xf32> to vector<16x128xf32>
    %215 = arith.mulf %213, %214 : vector<16x128xf32>
    %216 = vector.broadcast %195 : vector<1x128xf32> to vector<16x128xf32>
    %217 = arith.addf %215, %216 : vector<16x128xf32>
    %c1 = arith.constant 1 : index
    %c0_83 = arith.constant 0 : index
    %c0_84 = arith.constant 0 : index
    %218 = vector.load %arg8[%c1, %c0_83, %c0_84] : memref<2x128x384xf32, #tpu.memory_space<vmem>>, vector<1x128x384xf32>
    %219 = vector.shape_cast %218 : vector<1x128x384xf32> to vector<128x384xf32>
    %cst_85 = arith.constant dense<0.000000e+00> : vector<16x384xf32>
    %220 = tpu.matmul %217, %219, %cst_85 {dimension_numbers = #tpu.dot_dimension_numbers<[1], [0], [0], [1], [0, 0, 1, 1], [], []>} : vector<16x128xf32>, vector<128x384xf32>, vector<16x384xf32> -> vector<16x384xf32>
    %c1_86 = arith.constant 1 : index
    %c0_87 = arith.constant 0 : index
    %c0_88 = arith.constant 0 : index
    %221 = vector.load %arg9[%c1_86, %c0_87, %c0_88] : memref<2x1x384xf32, #tpu.memory_space<vmem>>, vector<1x1x384xf32>
    %222 = vector.shape_cast %221 : vector<1x1x384xf32> to vector<1x384xf32>
    %223 = vector.broadcast %222 : vector<1x384xf32> to vector<16x384xf32>
    %224 = arith.addf %220, %223 : vector<16x384xf32>
    %225 = vector.extract_strided_slice %224 {offsets = [0, 0], sizes = [16, 128], strides = [1, 1]} : vector<16x384xf32> to vector<16x128xf32>
    %226 = vector.extract_strided_slice %225 {offsets = [0, 0], sizes = [16, 32], strides = [1, 1]} : vector<16x128xf32> to vector<16x32xf32>
    %227 = vector.shape_cast %226 : vector<16x32xf32> to vector<1x16x32xf32>
    %228 = vector.extract_strided_slice %225 {offsets = [0, 32], sizes = [16, 32], strides = [1, 1]} : vector<16x128xf32> to vector<16x32xf32>
    %229 = vector.shape_cast %228 : vector<16x32xf32> to vector<1x16x32xf32>
    %230 = vector.extract_strided_slice %225 {offsets = [0, 64], sizes = [16, 32], strides = [1, 1]} : vector<16x128xf32> to vector<16x32xf32>
    %231 = vector.shape_cast %230 : vector<16x32xf32> to vector<1x16x32xf32>
    %232 = vector.extract_strided_slice %225 {offsets = [0, 96], sizes = [16, 32], strides = [1, 1]} : vector<16x128xf32> to vector<16x32xf32>
    %233 = vector.shape_cast %232 : vector<16x32xf32> to vector<1x16x32xf32>
    %234 = tpu.concatenate %227, %229, %231, %233 in 0 : vector<1x16x32xf32>, vector<1x16x32xf32>, vector<1x16x32xf32>, vector<1x16x32xf32> -> vector<4x16x32xf32>
    %235 = vector.shape_cast %234 : vector<4x16x32xf32> to vector<8x8x32xf32>
    %236 = vector.extract_strided_slice %224 {offsets = [0, 128], sizes = [16, 128], strides = [1, 1]} : vector<16x384xf32> to vector<16x128xf32>
    %237 = vector.extract_strided_slice %236 {offsets = [0, 0], sizes = [16, 32], strides = [1, 1]} : vector<16x128xf32> to vector<16x32xf32>
    %238 = vector.shape_cast %237 : vector<16x32xf32> to vector<1x16x32xf32>
    %239 = vector.extract_strided_slice %236 {offsets = [0, 32], sizes = [16, 32], strides = [1, 1]} : vector<16x128xf32> to vector<16x32xf32>
    %240 = vector.shape_cast %239 : vector<16x32xf32> to vector<1x16x32xf32>
    %241 = vector.extract_strided_slice %236 {offsets = [0, 64], sizes = [16, 32], strides = [1, 1]} : vector<16x128xf32> to vector<16x32xf32>
    %242 = vector.shape_cast %241 : vector<16x32xf32> to vector<1x16x32xf32>
    %243 = vector.extract_strided_slice %236 {offsets = [0, 96], sizes = [16, 32], strides = [1, 1]} : vector<16x128xf32> to vector<16x32xf32>
    %244 = vector.shape_cast %243 : vector<16x32xf32> to vector<1x16x32xf32>
    %245 = tpu.concatenate %238, %240, %242, %244 in 0 : vector<1x16x32xf32>, vector<1x16x32xf32>, vector<1x16x32xf32>, vector<1x16x32xf32> -> vector<4x16x32xf32>
    %246 = vector.shape_cast %245 : vector<4x16x32xf32> to vector<8x8x32xf32>
    %247 = vector.extract_strided_slice %224 {offsets = [0, 256], sizes = [16, 128], strides = [1, 1]} : vector<16x384xf32> to vector<16x128xf32>
    %248 = vector.extract_strided_slice %247 {offsets = [0, 0], sizes = [16, 32], strides = [1, 1]} : vector<16x128xf32> to vector<16x32xf32>
    %249 = vector.shape_cast %248 : vector<16x32xf32> to vector<1x16x32xf32>
    %250 = vector.extract_strided_slice %247 {offsets = [0, 32], sizes = [16, 32], strides = [1, 1]} : vector<16x128xf32> to vector<16x32xf32>
    %251 = vector.shape_cast %250 : vector<16x32xf32> to vector<1x16x32xf32>
    %252 = vector.extract_strided_slice %247 {offsets = [0, 64], sizes = [16, 32], strides = [1, 1]} : vector<16x128xf32> to vector<16x32xf32>
    %253 = vector.shape_cast %252 : vector<16x32xf32> to vector<1x16x32xf32>
    %254 = vector.extract_strided_slice %247 {offsets = [0, 96], sizes = [16, 32], strides = [1, 1]} : vector<16x128xf32> to vector<16x32xf32>
    %255 = vector.shape_cast %254 : vector<16x32xf32> to vector<1x16x32xf32>
    %256 = tpu.concatenate %249, %251, %253, %255 in 0 : vector<1x16x32xf32>, vector<1x16x32xf32>, vector<1x16x32xf32>, vector<1x16x32xf32> -> vector<4x16x32xf32>
    %257 = vector.shape_cast %256 : vector<4x16x32xf32> to vector<8x8x32xf32>
    "tpu.trace_start"() <{level = 10 : i32, message = "bqd,bkd->bqk"}> : () -> ()
    %cst_89 = arith.constant dense<0.000000e+00> : vector<8x8x8xf32>
    %258 = tpu.matmul %235, %246, %cst_89 {dimension_numbers = #tpu.dot_dimension_numbers<[2], [2], [1], [1], [0, 0, 0, 1, 1, 1], [0], [0]>} : vector<8x8x32xf32>, vector<8x8x32xf32>, vector<8x8x8xf32> -> vector<8x8x8xf32>
    "tpu.trace_stop"() : () -> ()
    %cst_90 = arith.constant 0.176776692 : f32
    %259 = vector.broadcast %cst_90 : f32 to vector<8x8x8xf32>
    %260 = arith.mulf %258, %259 : vector<8x8x8xf32>
    %261 = arith.addf %260, %64 : vector<8x8x8xf32>
    %cst_91 = arith.constant dense<0xFF800000> : vector<8x8xf32>
    %262 = vector.multi_reduction <maximumf>, %261, %cst_91 [2] : vector<8x8x8xf32> to vector<8x8xf32>
    %263 = vector.shape_cast %262 : vector<8x8xf32> to vector<8x8x1xf32>
    %264 = vector.broadcast %263 : vector<8x8x1xf32> to vector<8x8x8xf32>
    %265 = arith.subf %261, %264 : vector<8x8x8xf32>
    %266 = math.exp %265 : vector<8x8x8xf32>
    %cst_92 = arith.constant dense<0.000000e+00> : vector<8x8xf32>
    %267 = vector.multi_reduction <add>, %266, %cst_92 [2] : vector<8x8x8xf32> to vector<8x8xf32>
    %268 = vector.shape_cast %267 : vector<8x8xf32> to vector<8x8x1xf32>
    %269 = tpu.reciprocal %268 {approx = true} : vector<8x8x1xf32> -> vector<8x8x1xf32>
    %270 = vector.broadcast %269 : vector<8x8x1xf32> to vector<8x8x8xf32>
    %271 = arith.mulf %266, %270 : vector<8x8x8xf32>
    "tpu.trace_start"() <{level = 10 : i32, message = "bqk,bkd->bqd"}> : () -> ()
    %cst_93 = arith.constant dense<0.000000e+00> : vector<8x8x32xf32>
    %272 = tpu.matmul %271, %257, %cst_93 {dimension_numbers = #tpu.dot_dimension_numbers<[2], [1], [1], [2], [0, 0, 0, 1, 1, 2], [0], [0]>} : vector<8x8x8xf32>, vector<8x8x32xf32>, vector<8x8x32xf32> -> vector<8x8x32xf32>
    "tpu.trace_stop"() : () -> ()
    %273 = vector.shape_cast %272 : vector<8x8x32xf32> to vector<4x16x32xf32>
    %274 = vector.extract_strided_slice %273 {offsets = [0, 0, 0], sizes = [1, 16, 32], strides = [1, 1, 1]} : vector<4x16x32xf32> to vector<1x16x32xf32>
    %275 = vector.shape_cast %274 : vector<1x16x32xf32> to vector<16x32xf32>
    %276 = vector.extract_strided_slice %273 {offsets = [1, 0, 0], sizes = [1, 16, 32], strides = [1, 1, 1]} : vector<4x16x32xf32> to vector<1x16x32xf32>
    %277 = vector.shape_cast %276 : vector<1x16x32xf32> to vector<16x32xf32>
    %278 = vector.extract_strided_slice %273 {offsets = [2, 0, 0], sizes = [1, 16, 32], strides = [1, 1, 1]} : vector<4x16x32xf32> to vector<1x16x32xf32>
    %279 = vector.shape_cast %278 : vector<1x16x32xf32> to vector<16x32xf32>
    %280 = vector.extract_strided_slice %273 {offsets = [3, 0, 0], sizes = [1, 16, 32], strides = [1, 1, 1]} : vector<4x16x32xf32> to vector<1x16x32xf32>
    %281 = vector.shape_cast %280 : vector<1x16x32xf32> to vector<16x32xf32>
    %282 = tpu.concatenate %275, %277, %279, %281 in 1 : vector<16x32xf32>, vector<16x32xf32>, vector<16x32xf32>, vector<16x32xf32> -> vector<16x128xf32>
    %c1_94 = arith.constant 1 : index
    %c0_95 = arith.constant 0 : index
    %c0_96 = arith.constant 0 : index
    %283 = vector.load %arg10[%c1_94, %c0_95, %c0_96] : memref<2x128x128xf32, #tpu.memory_space<vmem>>, vector<1x128x128xf32>
    %284 = vector.shape_cast %283 : vector<1x128x128xf32> to vector<128x128xf32>
    %cst_97 = arith.constant dense<0.000000e+00> : vector<16x128xf32>
    %285 = tpu.matmul %282, %284, %cst_97 {dimension_numbers = #tpu.dot_dimension_numbers<[1], [0], [0], [1], [0, 0, 1, 1], [], []>} : vector<16x128xf32>, vector<128x128xf32>, vector<16x128xf32> -> vector<16x128xf32>
    %c1_98 = arith.constant 1 : index
    %c0_99 = arith.constant 0 : index
    %c0_100 = arith.constant 0 : index
    %286 = vector.load %arg11[%c1_98, %c0_99, %c0_100] : memref<2x1x128xf32, #tpu.memory_space<vmem>>, vector<1x1x128xf32>
    %287 = vector.shape_cast %286 : vector<1x1x128xf32> to vector<1x128xf32>
    %288 = vector.broadcast %287 : vector<1x128xf32> to vector<16x128xf32>
    %289 = arith.addf %285, %288 : vector<16x128xf32>
    %290 = arith.addf %289, %217 : vector<16x128xf32>
    %c1_101 = arith.constant 1 : index
    %c0_102 = arith.constant 0 : index
    %c0_103 = arith.constant 0 : index
    %291 = vector.load %arg12[%c1_101, %c0_102, %c0_103] : memref<2x1x128xf32, #tpu.memory_space<vmem>>, vector<1x1x128xf32>
    %292 = vector.shape_cast %291 : vector<1x1x128xf32> to vector<1x128xf32>
    %c1_104 = arith.constant 1 : index
    %c0_105 = arith.constant 0 : index
    %c0_106 = arith.constant 0 : index
    %293 = vector.load %arg13[%c1_104, %c0_105, %c0_106] : memref<2x1x128xf32, #tpu.memory_space<vmem>>, vector<1x1x128xf32>
    %294 = vector.shape_cast %293 : vector<1x1x128xf32> to vector<1x128xf32>
    %cst_107 = arith.constant dense<0.000000e+00> : vector<16xf32>
    %295 = vector.multi_reduction <add>, %290, %cst_107 [1] : vector<16x128xf32> to vector<16xf32>
    %296 = vector.shape_cast %295 : vector<16xf32> to vector<16x1xf32>
    %cst_108 = arith.constant 1.280000e+02 : f32
    %297 = vector.broadcast %cst_108 : f32 to vector<16x1xf32>
    %298 = arith.divf %296, %297 : vector<16x1xf32>
    %299 = vector.broadcast %298 : vector<16x1xf32> to vector<16x128xf32>
    %300 = arith.subf %290, %299 : vector<16x128xf32>
    %301 = arith.mulf %300, %300 : vector<16x128xf32>
    %cst_109 = arith.constant dense<0.000000e+00> : vector<16xf32>
    %302 = vector.multi_reduction <add>, %301, %cst_109 [1] : vector<16x128xf32> to vector<16xf32>
    %303 = vector.shape_cast %302 : vector<16xf32> to vector<16x1xf32>
    %cst_110 = arith.constant 1.280000e+02 : f32
    %304 = vector.broadcast %cst_110 : f32 to vector<16x1xf32>
    %305 = arith.divf %303, %304 : vector<16x1xf32>
    %306 = vector.broadcast %298 : vector<16x1xf32> to vector<16x128xf32>
    %307 = arith.subf %290, %306 : vector<16x128xf32>
    %cst_111 = arith.constant 9.99999996E-13 : f32
    %308 = vector.broadcast %cst_111 : f32 to vector<16x1xf32>
    %309 = arith.addf %305, %308 : vector<16x1xf32>
    %310 = math.rsqrt %309 : vector<16x1xf32>
    %311 = vector.broadcast %310 : vector<16x1xf32> to vector<16x128xf32>
    %312 = arith.mulf %307, %311 : vector<16x128xf32>
    %313 = vector.broadcast %292 : vector<1x128xf32> to vector<16x128xf32>
    %314 = arith.mulf %312, %313 : vector<16x128xf32>
    %315 = vector.broadcast %294 : vector<1x128xf32> to vector<16x128xf32>
    %316 = arith.addf %314, %315 : vector<16x128xf32>
    %c1_112 = arith.constant 1 : index
    %c0_113 = arith.constant 0 : index
    %c0_114 = arith.constant 0 : index
    %317 = vector.load %arg14[%c1_112, %c0_113, %c0_114] : memref<2x128x512xf32, #tpu.memory_space<vmem>>, vector<1x128x512xf32>
    %318 = vector.shape_cast %317 : vector<1x128x512xf32> to vector<128x512xf32>
    %cst_115 = arith.constant dense<0.000000e+00> : vector<16x512xf32>
    %319 = tpu.matmul %316, %318, %cst_115 {dimension_numbers = #tpu.dot_dimension_numbers<[1], [0], [0], [1], [0, 0, 1, 1], [], []>} : vector<16x128xf32>, vector<128x512xf32>, vector<16x512xf32> -> vector<16x512xf32>
    %c1_116 = arith.constant 1 : index
    %c0_117 = arith.constant 0 : index
    %c0_118 = arith.constant 0 : index
    %320 = vector.load %arg15[%c1_116, %c0_117, %c0_118] : memref<2x1x512xf32, #tpu.memory_space<vmem>>, vector<1x1x512xf32>
    %321 = vector.shape_cast %320 : vector<1x1x512xf32> to vector<1x512xf32>
    %322 = vector.broadcast %321 : vector<1x512xf32> to vector<16x512xf32>
    %323 = arith.addf %319, %322 : vector<16x512xf32>
    %324 = arith.mulf %323, %323 : vector<16x512xf32>
    %325 = arith.mulf %323, %324 : vector<16x512xf32>
    %cst_119 = arith.constant 4.471500e-02 : f32
    %326 = vector.broadcast %cst_119 : f32 to vector<16x512xf32>
    %327 = arith.mulf %326, %325 : vector<16x512xf32>
    %328 = arith.addf %323, %327 : vector<16x512xf32>
    %cst_120 = arith.constant 0.797884583 : f32
    %329 = vector.broadcast %cst_120 : f32 to vector<16x512xf32>
    %330 = arith.mulf %329, %328 : vector<16x512xf32>
    %331 = math.tanh %330 : vector<16x512xf32>
    %cst_121 = arith.constant 1.000000e+00 : f32
    %332 = vector.broadcast %cst_121 : f32 to vector<16x512xf32>
    %333 = arith.addf %332, %331 : vector<16x512xf32>
    %cst_122 = arith.constant 5.000000e-01 : f32
    %334 = vector.broadcast %cst_122 : f32 to vector<16x512xf32>
    %335 = arith.mulf %334, %333 : vector<16x512xf32>
    %336 = arith.mulf %323, %335 : vector<16x512xf32>
    %c1_123 = arith.constant 1 : index
    %c0_124 = arith.constant 0 : index
    %c0_125 = arith.constant 0 : index
    %337 = vector.load %arg16[%c1_123, %c0_124, %c0_125] : memref<2x512x128xf32, #tpu.memory_space<vmem>>, vector<1x512x128xf32>
    %338 = vector.shape_cast %337 : vector<1x512x128xf32> to vector<512x128xf32>
    %cst_126 = arith.constant dense<0.000000e+00> : vector<16x128xf32>
    %339 = tpu.matmul %336, %338, %cst_126 {dimension_numbers = #tpu.dot_dimension_numbers<[1], [0], [0], [1], [0, 0, 1, 1], [], []>} : vector<16x512xf32>, vector<512x128xf32>, vector<16x128xf32> -> vector<16x128xf32>
    %c1_127 = arith.constant 1 : index
    %c0_128 = arith.constant 0 : index
    %c0_129 = arith.constant 0 : index
    %340 = vector.load %arg17[%c1_127, %c0_128, %c0_129] : memref<2x1x128xf32, #tpu.memory_space<vmem>>, vector<1x1x128xf32>
    %341 = vector.shape_cast %340 : vector<1x1x128xf32> to vector<1x128xf32>
    %342 = vector.broadcast %341 : vector<1x128xf32> to vector<16x128xf32>
    %343 = arith.addf %339, %342 : vector<16x128xf32>
    %344 = arith.addf %343, %316 : vector<16x128xf32>
    %c1_130 = arith.constant 1 : index
    %c0_131 = arith.constant 0 : index
    %c0_132 = arith.constant 0 : index
    %345 = vector.load %arg18[%c1_130, %c0_131, %c0_132] : memref<2x1x128xf32, #tpu.memory_space<vmem>>, vector<1x1x128xf32>
    %346 = vector.shape_cast %345 : vector<1x1x128xf32> to vector<1x128xf32>
    %c1_133 = arith.constant 1 : index
    %c0_134 = arith.constant 0 : index
    %c0_135 = arith.constant 0 : index
    %347 = vector.load %arg19[%c1_133, %c0_134, %c0_135] : memref<2x1x128xf32, #tpu.memory_space<vmem>>, vector<1x1x128xf32>
    %348 = vector.shape_cast %347 : vector<1x1x128xf32> to vector<1x128xf32>
    %cst_136 = arith.constant dense<0.000000e+00> : vector<16xf32>
    %349 = vector.multi_reduction <add>, %344, %cst_136 [1] : vector<16x128xf32> to vector<16xf32>
    %350 = vector.shape_cast %349 : vector<16xf32> to vector<16x1xf32>
    %cst_137 = arith.constant 1.280000e+02 : f32
    %351 = vector.broadcast %cst_137 : f32 to vector<16x1xf32>
    %352 = arith.divf %350, %351 : vector<16x1xf32>
    %353 = vector.broadcast %352 : vector<16x1xf32> to vector<16x128xf32>
    %354 = arith.subf %344, %353 : vector<16x128xf32>
    %355 = arith.mulf %354, %354 : vector<16x128xf32>
    %cst_138 = arith.constant dense<0.000000e+00> : vector<16xf32>
    %356 = vector.multi_reduction <add>, %355, %cst_138 [1] : vector<16x128xf32> to vector<16xf32>
    %357 = vector.shape_cast %356 : vector<16xf32> to vector<16x1xf32>
    %cst_139 = arith.constant 1.280000e+02 : f32
    %358 = vector.broadcast %cst_139 : f32 to vector<16x1xf32>
    %359 = arith.divf %357, %358 : vector<16x1xf32>
    %360 = vector.broadcast %352 : vector<16x1xf32> to vector<16x128xf32>
    %361 = arith.subf %344, %360 : vector<16x128xf32>
    %cst_140 = arith.constant 9.99999996E-13 : f32
    %362 = vector.broadcast %cst_140 : f32 to vector<16x1xf32>
    %363 = arith.addf %359, %362 : vector<16x1xf32>
    %364 = math.rsqrt %363 : vector<16x1xf32>
    %365 = vector.broadcast %364 : vector<16x1xf32> to vector<16x128xf32>
    %366 = arith.mulf %361, %365 : vector<16x128xf32>
    %367 = vector.broadcast %346 : vector<1x128xf32> to vector<16x128xf32>
    %368 = arith.mulf %366, %367 : vector<16x128xf32>
    %369 = vector.broadcast %348 : vector<1x128xf32> to vector<16x128xf32>
    %370 = arith.addf %368, %369 : vector<16x128xf32>
    %371 = vector.shape_cast %370 : vector<16x128xf32> to vector<2x8x128xf32>
    %372 = vector.extract_strided_slice %371 {offsets = [0, 0, 0], sizes = [2, 1, 128], strides = [1, 1, 1]} : vector<2x8x128xf32> to vector<2x1x128xf32>
    %373 = vector.shape_cast %372 : vector<2x1x128xf32> to vector<2x128xf32>
    %c0_141 = arith.constant 0 : index
    %c0_142 = arith.constant 0 : index
    %374 = vector.load %arg20[%c0_141, %c0_142] : memref<128x128xf32, #tpu.memory_space<vmem>>, vector<128x128xf32>
    %cst_143 = arith.constant dense<0.000000e+00> : vector<2x128xf32>
    %375 = tpu.matmul %373, %374, %cst_143 {dimension_numbers = #tpu.dot_dimension_numbers<[1], [0], [0], [1], [0, 0, 1, 1], [], []>} : vector<2x128xf32>, vector<128x128xf32>, vector<2x128xf32> -> vector<2x128xf32>
    %c0_144 = arith.constant 0 : index
    %c0_145 = arith.constant 0 : index
    %376 = vector.load %arg21[%c0_144, %c0_145] : memref<1x128xf32, #tpu.memory_space<vmem>>, vector<1x128xf32>
    %377 = vector.broadcast %376 : vector<1x128xf32> to vector<2x128xf32>
    %378 = arith.addf %375, %377 : vector<2x128xf32>
    %379 = math.tanh %378 : vector<2x128xf32>
    %c0_146 = arith.constant 0 : index
    %c0_147 = arith.constant 0 : index
    %380 = vector.load %arg22[%c0_146, %c0_147] : memref<128x128xf32, #tpu.memory_space<vmem>>, vector<128x128xf32>
    %cst_148 = arith.constant dense<0.000000e+00> : vector<16x128xf32>
    %381 = tpu.matmul %370, %380, %cst_148 {dimension_numbers = #tpu.dot_dimension_numbers<[1], [0], [0], [1], [0, 0, 1, 1], [], []>} : vector<16x128xf32>, vector<128x128xf32>, vector<16x128xf32> -> vector<16x128xf32>
    %c0_149 = arith.constant 0 : index
    %c0_150 = arith.constant 0 : index
    %382 = vector.load %arg23[%c0_149, %c0_150] : memref<1x128xf32, #tpu.memory_space<vmem>>, vector<1x128xf32>
    %383 = vector.broadcast %382 : vector<1x128xf32> to vector<16x128xf32>
    %384 = arith.addf %381, %383 : vector<16x128xf32>
    %c0_151 = arith.constant 0 : index
    %c0_152 = arith.constant 0 : index
    %385 = vector.load %arg26[%c0_151, %c0_152] : memref<16x128xf32, #tpu.memory_space<vmem>>, vector<16x128xf32>
    tpu.vector_store %arg26[%c0_151, %c0_152], %384 {strides = array<i32>} : memref<16x128xf32, #tpu.memory_space<vmem>>, vector<16x128xf32>,
    %c0_153 = arith.constant 0 : index
    %c0_154 = arith.constant 0 : index
    %386 = vector.load %arg24[%c0_153, %c0_154] : memref<128x128xf32, #tpu.memory_space<vmem>>, vector<128x128xf32>
    %cst_155 = arith.constant dense<0.000000e+00> : vector<2x128xf32>
    %387 = tpu.matmul %379, %386, %cst_155 {dimension_numbers = #tpu.dot_dimension_numbers<[1], [0], [0], [1], [0, 0, 1, 1], [], []>} : vector<2x128xf32>, vector<128x128xf32>, vector<2x128xf32> -> vector<2x128xf32>
    %c0_156 = arith.constant 0 : index
    %c0_157 = arith.constant 0 : index
    %388 = vector.load %arg25[%c0_156, %c0_157] : memref<1x128xf32, #tpu.memory_space<vmem>>, vector<1x128xf32>
    %389 = vector.broadcast %388 : vector<1x128xf32> to vector<2x128xf32>
    %390 = arith.addf %387, %389 : vector<2x128xf32>
    %c0_158 = arith.constant 0 : index
    %c0_159 = arith.constant 0 : index
    %391 = vector.load %arg27[%c0_158, %c0_159] : memref<2x128xf32, #tpu.memory_space<vmem>>, vector<2x128xf32>
    tpu.vector_store %arg27[%c0_158, %c0_159], %390 {strides = array<i32>} : memref<2x128xf32, #tpu.memory_space<vmem>>, vector<2x128xf32>,
    return
  }
}

</mosaic_0001>

<bundles_post_ra>
// kernel: nlu_forward.1
= control target key start
LH: loop header
LB: loop body
LE: loop exit
PB: predicated region body
PF: predicated region fallthrough
CT: control target
= control target key end

     0   :  { %s8113_s0 = inlined_call_operand.vmem [shape: s32[16,1], index: 0, kind: input, shape index: {}]   ;;  %s8114_s1 = inlined_call_operand.vmem [shape: s32[16,1], index: 1, kind: input, shape index: {}]   ;;  %s8115_s2 = inlined_call_operand.vmem [shape: s32[2,8], index: 2, kind: input, shape index: {}]   ;;  %s8116_s3 = inlined_call_operand.vmem [shape: f32[64,128], index: 3, kind: input, shape index: {}]   ;;  %s8117_s4 = inlined_call_operand.vmem [shape: f32[16,128], index: 4, kind: input, shape index: {}]   ;;  %s8118_s5 = inlined_call_operand.vmem [shape: f32[2,128], index: 5, kind: input, shape index: {}]   ;;  %s8119_s6 = inlined_call_operand.vmem [shape: f32[1,128], index: 6, kind: input, shape index: {}]   ;;  %s8120_s7 = inlined_call_operand.hbm [shape: f32[1,128], index: 7, kind: input, shape index: {}]   ;;  %s8121_s8 = inlined_call_operand.hbm [shape: f32[2,128,384], index: 8, kind: input, shape index: {}]   ;;  %s8122_s9 = inlined_call_operand.vmem [shape: f32[2,1,384], index: 9, kind: input, shape index: {}]   ;;  %s8123_s10 = inlined_call_operand.hbm [shape: f32[2,128,128], index: 10, kind: input, shape index: {}]   ;;  %s8124_s11 = inlined_call_operand.vmem [shape: f32[2,1,128], index: 11, kind: input, shape index: {}]   ;;  %s8125_s12 = inlined_call_operand.vmem [shape: f32[2,1,128], index: 12, kind: input, shape index: {}]   ;;  %s8126_s13 = inlined_call_operand.vmem [shape: f32[2,1,128], index: 13, kind: input, shape index: {}]   ;;  %s8127_s14 = inlined_call_operand.hbm [shape: f32[2,128,512], index: 14, kind: input, shape index: {}]   ;;  %s8128_s15 = inlined_call_operand.vmem [shape: f32[2,1,512], index: 15, kind: input, shape index: {}]   ;;  %s8129_s16 = inlined_call_operand.hbm [shape: f32[2,512,128], index: 16, kind: input, shape index: {}]   ;;  %s8130_s17 = inlined_call_operand.vmem [shape: f32[2,1,128], index: 17, kind: input, shape index: {}]   ;;  %s8131_s18 = inlined_call_operand.vmem [shape: f32[2,1,128], index: 18, kind: input, shape index: {}]   ;;  %s8132_s19 = inlined_call_operand.vmem [shape: f32[2,1,128], index: 19, kind: input, shape index: {}]   ;;  %s8133_s20 = inlined_call_operand.hbm [shape: f32[128,128], index: 20, kind: input, shape index: {}]   ;;  %s8134_s21 = inlined_call_operand.vmem [shape: f32[1,128], index: 21, kind: input, shape index: {}]   ;;  %s8135_s22 = inlined_call_operand.hbm [shape: f32[128,128], index: 22, kind: input, shape index: {}]   ;;  %s8136_s23 = inlined_call_operand.hbm [shape: f32[1,128], index: 23, kind: input, shape index: {}]   ;;  %s8137_s24 = inlined_call_operand.hbm [shape: f32[128,128], index: 24, kind: input, shape index: {}]   ;;  %s8138_s25 = inlined_call_operand.hbm [shape: f32[1,128], index: 25, kind: input, shape index: {}]   ;;  %s8139_s26 = inlined_call_operand.vmem [shape: f32[16,128], index: 26, kind: output, shape index: {0}]   ;;  %s8140_s27 = inlined_call_operand.vmem [shape: f32[2,128], index: 27, kind: output, shape index: {1}]  }
   0x1   :  { %8149 = sst [smem:[#allocation24_spill]] %s8113_s0 }
   0x2   :  { %8150 = sst [smem:[#allocation25_spill]] %s8114_s1 }
   0x3   :  { %8151 = sst [smem:[#allocation26_spill]] %s8115_s2 }
   0x4   :  { %8152 = sst [smem:[#allocation27_spill]] %s8116_s3 }
   0x5   :  { %8153 = sst [smem:[#allocation28_spill]] %s8117_s4 }
   0x6   :  { %8154 = sst [smem:[#allocation29_spill]] %s8118_s5 }
   0x7   :  { %8155 = sst [smem:[#allocation30_spill]] %s8119_s6 }
   0x8   :  { %8156 = sst [smem:[#allocation31_spill]] %s8120_s7 }
   0x9   :  { %8157 = sst [smem:[#allocation32_spill]] %s8121_s8 }
   0xa   :  { %8158 = sst [smem:[#allocation33_spill]] %s8122_s9 }
   0xb   :  { %8159 = sst [smem:[#allocation34_spill]] %s8123_s10 }
   0xc   :  { %8160 = sst [smem:[#allocation35_spill]] %s8124_s11 }
   0xd   :  { %8161 = sst [smem:[#allocation36_spill]] %s8140_s27 }
   0xe   :  { %33 = vsyncpa [#allocation3], 0 }
   0xf   :  { %34 = vsyncpa [#allocation5], 0 }
  0x10   :  { %35 = vsyncpa [#allocation8], 0 }
  0x11   :  { %36 = vsyncpa [#allocation11], 0 }
  0x12   :  { %37 = vsyncpa [#allocation14], 0 }
  0x13   :  { %38 = vsyncpa [#allocation17], 0  ;;  %s7128_s7 = smov [#allocation4]   ;;  %s8162_s9 = sld [smem:[#allocation32_spill]] }
  0x14   :  { %s68_s4 = sshll.u32 %s7128_s7, 4  ;;  %s69_s4 = int_to_ptr.vmem [resolvable:$true] %s68_s4 }
  0x19   :  { %s6896_s5 = scalar_lea.hbm %s8162_s9, 12288 }
  0x1a   :  { %p6897_p0 = scmp.ne.s32.totalorder %s8162_s9, %s6896_s5  ;;  %p6900_p1 = scmp.lt.u32.totalorder %s6896_s5, %s8162_s9 }
  0x1c   :  { %p6902_p2 = pnand %p6900_p1, %p6897_p0 }
  0x1e   :  { %6905 = shalt.err (!%p6902_p2)
}
  0x1f   :  { %s6906_s1 = scalar_lea.vmem %s69_s4, 12288  ;;  %p6911_p4 = scmp.lt.s32.totalorder %s69_s4, %s69_s4 }
  0x20   :  { %p6907_p3 = scmp.ne.s32.totalorder %s69_s4, %s6906_s1  ;;  %p6912_p5 = scmp.lt.s32.totalorder %s6906_s1, %s6906_s1 }
  0x22   :  { %p6913_p6 = por %p6912_p5, %p6911_p4 }
  0x24   :  { %p6914_p7 = pnand %p6913_p6, %p6907_p3 }
  0x26   :  { %6917 = shalt.err (!%p6914_p7)
}
  0x27   :  { %s7129_s6 = smov 384   ;;  %s7130_s11 = smov 24  }
  0x28   :  { %74 = dma.hbm_to_vmem [thread:$0]  %s8162_s9, 12288, %s69_s4, [#allocation5], %s7129_s6, %s7129_s6, %s7130_s11  }
  0x29   :  { %s7131_s7 = smov [#allocation7]   ;;  %s6918_s28 = scalar_lea.hbm %s8127_s14, 16384 }
  0x2a   :  { %s100_s8 = sshll.u32 %s7131_s7, 4  ;;  %p6919_p8 = scmp.ne.s32.totalorder %s8127_s14, %s6918_s28  ;;  %s101_s8 = int_to_ptr.vmem [resolvable:$true] %s100_s8 }
  0x2b   :  { %p6922_p9 = scmp.lt.u32.totalorder %s6918_s28, %s8127_s14 }
  0x2d   :  { %p6924_p10 = pnand %p6922_p9, %p6919_p8 }
  0x2f   :  { %6927 = shalt.err (!%p6924_p10)
}
  0x30   :  { %s6928_s27 = scalar_lea.vmem %s101_s8, 16384  ;;  %p6933_p12 = scmp.lt.s32.totalorder %s101_s8, %s101_s8 }
  0x31   :  { %p6929_p11 = scmp.ne.s32.totalorder %s101_s8, %s6928_s27  ;;  %p6934_p13 = scmp.lt.s32.totalorder %s6928_s27, %s6928_s27 }
  0x33   :  { %p6935_p0 = por %p6934_p13, %p6933_p12 }
  0x35   :  { %p6936_p1 = pnand %p6935_p0, %p6929_p11 }
  0x37   :  { %6939 = shalt.err (!%p6936_p1)
}
  0x38   :  { %s7132_s4 = smov 512   ;;  %s7133_s9 = smov 32  }
  0x39   :  { %106 = dma.hbm_to_vmem [thread:$0]  %s8127_s14, 16384, %s101_s8, [#allocation8], %s7132_s4, %s7132_s4, %s7133_s9  }
  0x3a   :  { %s7134_s2 = smov [#allocation10]   ;;  %s7135_s7 = smov [#allocation13]  }
  0x3b   :  { %s132_s3 = sshll.u32 %s7134_s2, 4  ;;  %s159_s30 = sshll.u32 %s7135_s7, 4  ;;  %s133_s3 = int_to_ptr.vmem [resolvable:$true] %s132_s3  ;;  %s7316_s30 = int_to_ptr.vmem [resolvable:$true] %s159_s30 }
  0x3c   :  { %s6940_s27 = scalar_lea.hbm %s8133_s20, 2048 }
  0x3d   :  { %p6941_p2 = scmp.ne.s32.totalorder %s8133_s20, %s6940_s27  ;;  %p6944_p3 = scmp.lt.u32.totalorder %s6940_s27, %s8133_s20 }
  0x3f   :  { %p6946_p4 = pnand %p6944_p3, %p6941_p2 }
  0x41   :  { %6949 = shalt.err (!%p6946_p4)
}
  0x42   :  { %s6950_s14 = scalar_lea.vmem %s133_s3, 2048  ;;  %p6955_p6 = scmp.lt.s32.totalorder %s133_s3, %s133_s3 }
  0x43   :  { %p6951_p5 = scmp.ne.s32.totalorder %s133_s3, %s6950_s14  ;;  %p6956_p7 = scmp.lt.s32.totalorder %s6950_s14, %s6950_s14 }
  0x45   :  { %p6957_p8 = por %p6956_p7, %p6955_p6 }
  0x47   :  { %p6958_p9 = pnand %p6957_p8, %p6951_p5 }
  0x49   :  { %6961 = shalt.err (!%p6958_p9)
}
  0x4a   :  { %s7136_s8 = smov 128   ;;  %s7137_s4 = smov 8  }
  0x4b   :  { %138 = dma.hbm_to_vmem [thread:$0]  %s8133_s20, 2048, %s133_s3, [#allocation11], %s7136_s8, %s7136_s8, %s7137_s4  }
  0x4c   :  { %s6962_s5 = scalar_lea.hbm %s8136_s23, 16 }
  0x4d   :  { %p6963_p10 = scmp.ne.s32.totalorder %s8136_s23, %s6962_s5  ;;  %p6966_p11 = scmp.lt.u32.totalorder %s6962_s5, %s8136_s23 }
  0x4f   :  { %p6968_p12 = pnand %p6966_p11, %p6963_p10 }
  0x51   :  { %6971 = shalt.err (!%p6968_p12)
}
  0x52   :  { %s6972_s29 = scalar_lea.vmem %s7316_s30, 16  ;;  %s6976_s20 = scalar_lea.vmem %s7316_s30, 32 }
  0x53   :  { %p6973_p13 = scmp.ne.s32.totalorder %s7316_s30, %s6972_s29  ;;  %p6977_p0 = scmp.lt.s32.totalorder %s7316_s30, %s7316_s30 }
  0x54   :  { %p6978_p1 = scmp.lt.s32.totalorder %s6976_s20, %s6972_s29 }
  0x56   :  { %p6979_p2 = por %p6978_p1, %p6977_p0 }
  0x58   :  { %p6980_p3 = pnand %p6979_p2, %p6973_p13 }
  0x5a   :  { %6983 = shalt.err (!%p6980_p3)
}
  0x5b   :  { %162 = dma.hbm_to_vmem [thread:$0]  %s8136_s23, 16, %s7316_s30, [#allocation14]  }
  0x5c   :  { %s7138_s14 = smov [#allocation2]   ;;  %s7139_s11 = smov [#allocation6]  }
  0x5d   :  { %s59_s6 = sshll.u32 %s7138_s14, 4  ;;  %s82_s2 = sshll.u32 %s7139_s11, 4  ;;  %s60_s6 = int_to_ptr.vmem [resolvable:$true] %s59_s6  ;;  %s7351_s2 = int_to_ptr.vmem [resolvable:$true] %s82_s2 }
  0x5e   :  { %s8163_s28 = sld [smem:[#allocation31_spill]] }
  0x64   :  { %s6984_s27 = scalar_lea.hbm %s8163_s28, 16 }
  0x65   :  { %p6985_p4 = scmp.ne.s32.totalorder %s8163_s28, %s6984_s27  ;;  %p6988_p5 = scmp.lt.u32.totalorder %s6984_s27, %s8163_s28 }
  0x67   :  { %p6990_p6 = pnand %p6988_p5, %p6985_p4 }
  0x69   :  { %6993 = shalt.err (!%p6990_p6)
}
  0x6a   :  { %s6994_s23 = scalar_lea.vmem %s60_s6, 16  ;;  %s6998_s30 = scalar_lea.vmem %s60_s6, 32 }
  0x6b   :  { %p6995_p7 = scmp.ne.s32.totalorder %s60_s6, %s6994_s23  ;;  %p6999_p8 = scmp.lt.s32.totalorder %s60_s6, %s60_s6 }
  0x6c   :  { %p7000_p9 = scmp.lt.s32.totalorder %s6998_s30, %s6994_s23 }
  0x6e   :  { %p7001_p10 = por %p7000_p9, %p6999_p8 }
  0x70   :  { %p7002_p11 = pnand %p7001_p10, %p6995_p7 }
  0x72   :  { %7005 = shalt.err (!%p7002_p11)
}
  0x73   :  { %62 = dma.hbm_to_vmem [thread:$0]  %s8163_s28, 16, %s60_s6, [#allocation3]  }
  0x74   :  { %s8164_s7 = sld [smem:[#allocation34_spill]] }
  0x7a   :  { %s7006_s5 = scalar_lea.hbm %s8164_s7, 4096 }
  0x7b   :  { %p7007_p12 = scmp.ne.s32.totalorder %s8164_s7, %s7006_s5  ;;  %p7010_p13 = scmp.lt.u32.totalorder %s7006_s5, %s8164_s7 }
  0x7d   :  { %p7012_p0 = pnand %p7010_p13, %p7007_p12 }
  0x7f   :  { %7015 = shalt.err (!%p7012_p0)
}
  0x80   :  { %s7016_s20 = scalar_lea.vmem %s7351_s2, 4096  ;;  %p7021_p2 = scmp.lt.s32.totalorder %s7351_s2, %s7351_s2 }
  0x81   :  { %p7017_p1 = scmp.ne.s32.totalorder %s7351_s2, %s7016_s20  ;;  %p7022_p3 = scmp.lt.s32.totalorder %s7016_s20, %s7016_s20 }
  0x83   :  { %p7023_p4 = por %p7022_p3, %p7021_p2 }
  0x85   :  { %p7024_p5 = pnand %p7023_p4, %p7017_p1 }
  0x87   :  { %7027 = shalt.err (!%p7024_p5)
}
  0x88   :  { %88 = dma.hbm_to_vmem [thread:$0]  %s8164_s7, 4096, %s7351_s2, [#allocation5], %s7136_s8, %s7136_s8, %s7137_s4  }
  0x89   :  { %s7140_s23 = smov [#allocation9]   ;;  %s7141_s3 = smov [#allocation12]  }
  0x8a   :  { %s114_s30 = sshll.u32 %s7140_s23, 4  ;;  %s146_s1 = sshll.u32 %s7141_s3, 4  ;;  %s115_s30 = int_to_ptr.vmem [resolvable:$true] %s114_s30  ;;  %s7385_s1 = int_to_ptr.vmem [resolvable:$true] %s146_s1 }
  0x8b   :  { %s7028_s5 = scalar_lea.hbm %s8129_s16, 16384 }
  0x8c   :  { %p7029_p6 = scmp.ne.s32.totalorder %s8129_s16, %s7028_s5  ;;  %p7032_p7 = scmp.lt.u32.totalorder %s7028_s5, %s8129_s16 }
  0x8e   :  { %p7034_p8 = pnand %p7032_p7, %p7029_p6 }
  0x90   :  { %7037 = shalt.err (!%p7034_p8)
}
  0x91   :  { %s7038_s2 = scalar_lea.vmem %s115_s30, 16384  ;;  %p7043_p10 = scmp.lt.s32.totalorder %s115_s30, %s115_s30 }
  0x92   :  { %p7039_p9 = scmp.ne.s32.totalorder %s115_s30, %s7038_s2  ;;  %p7044_p11 = scmp.lt.s32.totalorder %s7038_s2, %s7038_s2 }
  0x94   :  { %p7045_p12 = por %p7044_p11, %p7043_p10 }
  0x96   :  { %p7046_p13 = pnand %p7045_p12, %p7039_p9 }
  0x98   :  { %7049 = shalt.err (!%p7046_p13)
}
  0x99   :  { %120 = dma.hbm_to_vmem [thread:$0]  %s8129_s16, 16384, %s115_s30, [#allocation8], %s7136_s8, %s7136_s8, %s7137_s4  }
  0x9a   :  { %s7050_s23 = scalar_lea.hbm %s8135_s22, 2048 }
  0x9b   :  { %p7051_p0 = scmp.ne.s32.totalorder %s8135_s22, %s7050_s23  ;;  %p7054_p1 = scmp.lt.u32.totalorder %s7050_s23, %s8135_s22 }
  0x9d   :  { %p7056_p2 = pnand %p7054_p1, %p7051_p0 }
  0x9f   :  { %7059 = shalt.err (!%p7056_p2)
}
  0xa0   :  { %s7060_s0 = scalar_lea.vmem %s7385_s1, 2048  ;;  %p7065_p4 = scmp.lt.s32.totalorder %s7385_s1, %s7385_s1 }
  0xa1   :  { %p7061_p3 = scmp.ne.s32.totalorder %s7385_s1, %s7060_s0  ;;  %p7066_p5 = scmp.lt.s32.totalorder %s7060_s0, %s7060_s0 }
  0xa3   :  { %p7067_p6 = por %p7066_p5, %p7065_p4 }
  0xa5   :  { %p7068_p7 = pnand %p7067_p6, %p7061_p3 }
  0xa7   :  { %7071 = shalt.err (!%p7068_p7)
}
  0xa8   :  { %152 = dma.hbm_to_vmem [thread:$0]  %s8135_s22, 2048, %s7385_s1, [#allocation11], %s7136_s8, %s7136_s8, %s7137_s4  }
  0xa9   :  { %s7142_s27 = smov [#allocation15]   ;;  %s7143_s29 = smov [#allocation16]  }
  0xaa   :  { %s168_s10 = sshll.u32 %s7142_s27, 4  ;;  %s181_s2 = sshll.u32 %s7143_s29, 4  ;;  %s169_s10 = int_to_ptr.vmem [resolvable:$true] %s168_s10  ;;  %s182_s2 = int_to_ptr.vmem [resolvable:$true] %s181_s2 }
  0xab   :  { %s7072_s6 = scalar_lea.hbm %s8137_s24, 2048 }
  0xac   :  { %p7073_p8 = scmp.ne.s32.totalorder %s8137_s24, %s7072_s6  ;;  %p7076_p9 = scmp.lt.u32.totalorder %s7072_s6, %s8137_s24 }
  0xae   :  { %p7078_p10 = pnand %p7076_p9, %p7073_p8 }
  0xb0   :  { %7081 = shalt.err (!%p7078_p10)
}
  0xb1   :  { %s7082_s22 = scalar_lea.vmem %s169_s10, 2048  ;;  %p7087_p12 = scmp.lt.s32.totalorder %s169_s10, %s169_s10 }
  0xb2   :  { %p7083_p11 = scmp.ne.s32.totalorder %s169_s10, %s7082_s22  ;;  %p7088_p13 = scmp.lt.s32.totalorder %s7082_s22, %s7082_s22 }
  0xb4   :  { %p7089_p0 = por %p7088_p13, %p7087_p12 }
  0xb6   :  { %p7090_p1 = pnand %p7089_p0, %p7083_p11 }
  0xb8   :  { %7093 = shalt.err (!%p7090_p1)
}
  0xb9   :  { %174 = dma.hbm_to_vmem [thread:$0]  %s8137_s24, 2048, %s169_s10, [#allocation14], %s7136_s8, %s7136_s8, %s7137_s4  }
  0xba   :  { %s7094_s16 = scalar_lea.hbm %s8138_s25, 16 }
  0xbb   :  { %p7095_p2 = scmp.ne.s32.totalorder %s8138_s25, %s7094_s16  ;;  %p7098_p3 = scmp.lt.u32.totalorder %s7094_s16, %s8138_s25 }
  0xbd   :  { %p7100_p4 = pnand %p7098_p3, %p7095_p2 }
  0xbf   :  { %7103 = shalt.err (!%p7100_p4)
}
  0xc0   :  { %s7104_s20 = scalar_lea.vmem %s182_s2, 16  ;;  %s7108_s6 = scalar_lea.vmem %s182_s2, 32 }
  0xc1   :  { %p7105_p5 = scmp.ne.s32.totalorder %s182_s2, %s7104_s20  ;;  %p7109_p6 = scmp.lt.s32.totalorder %s182_s2, %s182_s2 }
  0xc2   :  { %p7110_p7 = scmp.lt.s32.totalorder %s7108_s6, %s7104_s20 }
  0xc4   :  { %p7111_p8 = por %p7110_p7, %p7109_p6 }
  0xc6   :  { %p7112_p9 = pnand %p7111_p8, %p7105_p5 }
  0xc8   :  { %7115 = shalt.err (!%p7112_p9)
}
  0xc9   :  { %184 = dma.hbm_to_vmem [thread:$0]  %s8138_s25, 16, %s182_s2, [#allocation17]  }
  0xca   :  { %7116 = dma.done.wait [#allocation3], 16  }
  0xcb   :  { %7117 = vsyncadd [#allocation3], 4294967280 }
  0xcc   :  { %7118 = dma.done.wait [#allocation5], 16384  }
  0xcd   :  { %7119 = vsyncadd [#allocation5], 4294950912 }
  0xce   :  { %7120 = dma.done.wait [#allocation8], 32768  }
  0xcf   :  { %7121 = vsyncadd [#allocation8], 4294934528 }
  0xd0   :  { %7122 = dma.done.wait [#allocation11], 4096  }
  0xd1   :  { %7123 = vsyncadd [#allocation11], 4294963200 }
  0xd2   :  { %7124 = dma.done.wait [#allocation14], 2064  }
  0xd3   :  { %7125 = vsyncadd [#allocation14], 4294965232 }
  0xd4   :  { %7126 = dma.done.wait [#allocation17], 16  }
  0xd5   :  { %7127 = vsyncadd [#allocation17], 4294967280  ;;  %v7144_v0 = vmov 0   ;;  %s8165_s28 = sld [smem:[#allocation24_spill]]  ;;  %s8166_s23 = sld [smem:[#allocation27_spill]]  ;;  %v7145_v9 = vmov 0.0   ;;  %v217_v20 = vlaneseq }
  0xd6   :  { %6746 = vset.pattern.permute.xlu0 %v7144_v0  ;;  %6747 = vset.pattern.permute.xlu1 %v7144_v0  ;;  %vm237_vm2 = vcmask 523264   ;;  %s8168_s14 = sld [smem:[#allocation29_spill]]  ;;  %s8169_s11 = sld [smem:[#allocation28_spill]]  ;;  %v428_v43 = vld [vmem:[#allocation4 + $0x8] sm:$0xff]  ;;  %v431_v44 = vld [vmem:[#allocation4 + $0x20] sm:$0xff]  ;;  %v430_v47 = vld [vmem:[#allocation4 + $0x18] sm:$0xff] }
  0xd7   :  { %556 = vmatprep.mubr.f32.mxu1 %v7145_v9  ;;  %v218_v21 = vand.u32 127, %v217_v20  ;;  %v7490_v26 = vshrl.u32 %v217_v20, 7  ;;  %v427_v45 = vld [vmem:[#allocation4] sm:$0xff]  ;;  %v6195_v46 = vpack.c.bf16 %v431_v44, %v428_v43  ;;  %v434_v48 = vld [vmem:[#allocation4 + $0x38] sm:$0xff]  ;;  %v437_v49 = vld [vmem:[#allocation4 + $0x50] sm:$0xff]  ;;  %s8170_s16 = sld [smem:[#allocation30_spill]] }
  0xd8   :  { %v6197_v50 = vpack.c.bf16 %v430_v47, %v427_v45  ;;  %v6199_v51 = vpack.c.bf16 %v437_v49, %v434_v48  ;;  %v429_v52 = vld [vmem:[#allocation4 + $0x10] sm:$0xff]  ;;  %v432_v53 = vld [vmem:[#allocation4 + $0x28] sm:$0xff]  ;;  %v443_v58 = vld [vmem:[#allocation4 + $0x80] sm:$0xff]  ;;  %vm7146_vm7 = vmmov 0   ;;  %s8171_s29 = sld [smem:[#allocation33_spill]]  ;;  %vm692_vm8 = vcmask 261120  }
  0xd9   :  { %v7493_v28 = vsub.s32 0, %v7490_v26  ;;  %v7496_v29 = vsub.s32 1, %v7490_v26  ;;  %v433_v54 = vld [vmem:[#allocation4 + $0x30] sm:$0xff]  ;;  %6196 = vmatprep.subr.bf16.mxu1 %v6195_v46  ;;  %v6227_v55 = vpack.c.bf16 %v432_v53, %v429_v52  ;;  %v436_v56 = vld [vmem:[#allocation4 + $0x48] sm:$0xff]  ;;  %v435_v60 = vld [vmem:[#allocation4 + $0x40] sm:$0xff]  ;;  %s7147_s7 = smov 96  }
  0xda   :  { %v440_v57 = vld [vmem:[#allocation4 + $0x68] sm:$0xff]  ;;  %6198 = vmatpush1.bf16.msra.mxu1 %v6197_v50  ;;  %v6201_v59 = vpack.c.bf16 %v436_v56, %v433_v54  ;;  %v438_v61 = vld [vmem:[#allocation4 + $0x58] sm:$0xff]  ;;  %v467_v43 = vld [vmem:[#allocation4 + $0x140] sm:$0xff]  ;;  %s7148_s20 = smov 64   ;;  %s8172_s8 = sld [smem:[#allocation26_spill]]  ;;  %vm1301_vm9 = vcmask 64512  }
  0xdb   :  { %v215_v1 = vld [vmem:[%s8165_s28] sm:$0xff]  ;;  %v230_v3 = vld [vmem:[%s8166_s23 + $0x8] sm:$0xff]  ;;  %v231_v4 = vld [vmem:[%s8166_s23 + $0x10] sm:$0xff]  ;;  %6200 = vmatprep.subr.bf16.mxu1 %v6199_v51  ;;  %v6203_v62 = vpack.c.bf16 %v443_v58, %v440_v57  ;;  %v6231_v63 = vpack.c.bf16 %v438_v61, %v435_v60  ;;  %vm2002_vm10 = vcmask 785408   ;;  %vm5048_vm11 = vcmask 1041409   ;;  %s8174_s1 = sld [smem:[#allocation36_spill]] }
  0xdc   :  { %v229_v2 = vld [vmem:[%s8166_s23] sm:$0xff]  ;;  %220 = vperm.xlu0 %6746, %v215_v1   ;;  %v232_v5 = vld [vmem:[%s8166_s23 + $0x18] sm:$0xff]  ;;  %v216_v6 = vld [vmem:[%s8165_s28 + $0x8] sm:$0xff]  ;;  %s8167_s28 = sld [smem:[#allocation25_spill]] }
  0xdd   :  { %v6179_v7 = vpack.c.bf16 %v230_v3, %v229_v2  ;;  %v6183_v8 = vpack.c.bf16 %v232_v5, %v231_v4  ;;  %v233_v10 = vld [vmem:[%s8166_s23 + $0x20] sm:$0xff]  ;;  %v234_v11 = vld [vmem:[%s8166_s23 + $0x28] sm:$0xff]  ;;  %v235_v13 = vld [vmem:[%s8166_s23 + $0x30] sm:$0xff] }
  0xde   :  { %v6187_v12 = vpack.c.bf16 %v234_v11, %v233_v10  ;;  %v236_v14 = vld [vmem:[%s8166_s23 + $0x38] sm:$0xff]  ;;  %v319_v30 = vld [vmem:[%s8168_s14] sm:$0x3]  ;;  %6202 = vmatpush1.bf16.msra.mxu1 %v6201_v59  ;;  %v459_v44 = vld [vmem:[#allocation4 + $0x100] sm:$0xff] }
  0xdf   :  { %6180 = vmatprep.subr.bf16.mxu0 %v6179_v7  ;;  %v6191_v18 = vpack.c.bf16 %v236_v14, %v235_v13  ;;  %v337_v32 = vrot.slane %v319_v30, %v7496_v29  ;;  %v341_v33 = vrot.slane %v319_v30, %v7493_v28  ;;  %v344_v34 = vld [vmem:[%s8169_s11] sm:$0xff]  ;;  %6204 = vmatprep.subr.bf16.mxu1 %v6203_v62  ;;  %v449_v13 = vld [vmem:[#allocation4 + $0xb0] sm:$0xff]  ;;  %v472_v57 = vld [vmem:[#allocation4 + $0x168] sm:$0xff] }
  0xe0   :  { %223 = vperm.xlu0 %6746, %v216_v6   ;;  %6182 = vmatpush3.bf16.msra.mxu0 %v6179_v7  ;;  %v442_v1 = vld [vmem:[#allocation4 + $0x78] sm:$0xff]  ;;  %v441_v14 = vld [vmem:[#allocation4 + $0x70] sm:$0xff]  ;;  %v463_v47 = vld [vmem:[#allocation4 + $0x120] sm:$0xff] }
  0xe1   :  { %6184 = vmatprep.subr.bf16.mxu0 %v6183_v8  ;;  %v454_v30 = vld [vmem:[#allocation4 + $0xd8] sm:$0xff]  ;;  %v473_v52 = vld [vmem:[#allocation4 + $0x170] sm:$0xff]  ;;  %v471_v60 = vld [vmem:[#allocation4 + $0x160] sm:$0xff] }
  0xe2   :  { %v320_v15 = vld [vmem:[%s8167_s28] sm:$0xff]  ;;  %v321_v16 = vld [vmem:[%s8167_s28 + $0x8] sm:$0xff]  ;;  %v465_v53 = vld [vmem:[#allocation4 + $0x130] sm:$0xff]  ;;  %s8173_s28 = sld [smem:[#allocation35_spill]] }
  0xe3   :  { %vm322_vm0 = vcmp.eq.s32.totalorder %v320_v15, 1  ;;  %vm323_vm1 = vcmp.eq.s32.totalorder %v321_v16, 1  ;;  %v444_v16 = vld [vmem:[#allocation4 + $0x88] sm:$0xff]  ;;  %v462_v46 = vld [vmem:[#allocation4 + $0x118] sm:$0xff]  ;;  %v469_v56 = vld [vmem:[#allocation4 + $0x150] sm:$0xff] }
  0xe4   :  { %6186 = vmatpush3.bf16.msra.mxu0 %v6183_v8  ;;  %v324_v17 = vsel %vm322_vm0, 1, %v7144_v0  ;;  %v325_v19 = vsel %vm323_vm1, 1, %v7144_v0  ;;  %v439_v0 = vld [vmem:[#allocation4 + $0x60] sm:$0xff]  ;;  %v466_v48 = vld [vmem:[#allocation4 + $0x138] sm:$0xff]  ;;  %v6247_v49 = vpack.c.bf16 %v462_v46, %v459_v44  ;;  %v6225_v59 = vpack.c.bf16 %v472_v57, %v469_v56 }
  0xe5   :  { %6188 = vmatprep.subr.bf16.mxu0 %v6187_v12  ;;  %327 = vperm.xlu1 %6747, %v324_v17   ;;  %v6205_v2 = vpack.c.bf16 %v442_v1, %v439_v0  ;;  %v445_v17 = vld [vmem:[#allocation4 + $0x90] sm:$0xff]  ;;  %v6221_v50 = vpack.c.bf16 %v466_v48, %v463_v47  ;;  %v470_v51 = vld [vmem:[#allocation4 + $0x158] sm:$0xff] }
  0xe6   :  { %v6223_v54 = vpack.c.bf16 %v473_v52, %v470_v51  ;;  %v474_v61 = vld [vmem:[#allocation4 + $0x178] sm:$0xff] }
  0xe7   :  { %6206 = vmatpush1.bf16.msra.mxu1 %v6205_v2  ;;  %v6255_v62 = vpack.c.bf16 %v474_v61, %v471_v60  ;;  %v390_v48 = vld [vmem:[%s8172_s8] sm:$0x3] }
  0xe8   :  { %6190 = vmatpush3.bf16.msra.mxu0 %v6187_v12  ;;  %v446_v12 = vld [vmem:[#allocation4 + $0x98] sm:$0xff] }
  0xe9   :  { %6192 = vmatprep.subr.bf16.mxu0 %v6191_v18  ;;  %330 = vperm.xlu1 %6747, %v325_v19   ;;  %v6207_v15 = vpack.c.bf16 %v449_v13, %v446_v12  ;;  %v6235_v19 = vpack.c.bf16 %v444_v16, %v441_v14 }
  0xeb   :  { %6208 = vmatprep.subr.bf16.mxu1 %v6207_v15 }
  0xec   :  { %6194 = vmatpush3.bf16.msra.mxu0 %v6191_v18  ;;  %v448_v18 = vld [vmem:[#allocation4 + $0xa8] sm:$0xff] }
  0xed   :  { %6228 = vmatprep.subr.bf16.mxu0 %v6227_v55  ;;  %v6209_v20 = vpack.c.bf16 %v448_v18, %v445_v17 }
  0xef   :  { %6210 = vmatpush1.bf16.msra.mxu1 %v6209_v20 }
 0x15b   :  { %v221_v22 = vpop.permute.xlu0 %220 }
 0x15c   :  { %vm225_vm3 = vcmp.eq.s32.totalorder %v221_v22, %v218_v21  ;;  %v455_v22 = vld [vmem:[#allocation4 + $0xe0] sm:$0xff] }
 0x15d   :  { %v227_v23 = vsel %vm225_vm3, 1.0, %v7145_v9 }
 0x15e   :  { %5771 = vmatprep.mubr.msk.f32.mxu0 %vm237_vm2, %v227_v23  ;;  %v447_v23 = vld [vmem:[#allocation4 + $0xa0] sm:$0xff] }
 0x15f   :  { %v224_v24 = vpop.permute.xlu0 %223 }
 0x160   :  { %vm226_vm4 = vcmp.eq.s32.totalorder %v224_v24, %v218_v21  ;;  %v452_v21 = vld [vmem:[#allocation4 + $0xc8] sm:$0xff] }
 0x161   :  { %v228_v25 = vsel %vm226_vm4, 1.0, %v7145_v9  ;;  %v6211_v24 = vpack.c.bf16 %v455_v22, %v452_v21 }
 0x162   :  { %5772 = vmatmul.mubr.msk.f32.vlgmr.msra.gmra.mrb[0].mxu0 %vm237_vm2, %v228_v25  ;;  %v450_v25 = vld [vmem:[#allocation4 + $0xb8] sm:$0xff] }
 0x163   :  { %6230 = vmatpush3.bf16.msra.mxu0 %v6227_v55  ;;  %6212 = vmatprep.subr.bf16.mxu1 %v6211_v24  ;;  %v468_v55 = vld [vmem:[#allocation4 + $0x148] sm:$0xff] }
 0x164   :  { %v328_v27 = vpop.permute.xlu1 %327  ;;  %6232 = vmatprep.subr.bf16.mxu0 %v6231_v63  ;;  %v6251_v58 = vpack.c.bf16 %v468_v55, %v465_v53 }
 0x165   :  { %vm332_vm6 = vcmp.eq.s32.totalorder %v328_v27, 1  ;;  %v451_v27 = vld [vmem:[#allocation4 + $0xc0] sm:$0xff] }
 0x166   :  { %v342_v39 = vsel %vm332_vm6, %v337_v32, %v341_v33 }
 0x167   :  { %6234 = vmatpush3.bf16.msra.mxu0 %v6231_v63 }
 0x168   :  { %v331_v31 = vpop.permute.xlu1 %330  ;;  %6236 = vmatprep.subr.bf16.mxu0 %v6235_v19 }
 0x169   :  { %vm333_vm5 = vcmp.eq.s32.totalorder %v331_v31, 1  ;;  %v6239_v31 = vpack.c.bf16 %v450_v25, %v447_v23 }
 0x16a   :  { %v343_v36 = vsel %vm333_vm5, %v337_v32, %v341_v33  ;;  %v6213_v32 = vpack.c.bf16 %v454_v30, %v451_v27  ;;  %v458_v33 = vld [vmem:[#allocation4 + $0xf8] sm:$0xff] }
 0x16b   :  { %6238 = vmatpush3.bf16.msra.mxu0 %v6235_v19 }
 0x16c   :  { %6240 = vmatprep.subr.bf16.mxu0 %v6239_v31  ;;  %6214 = vmatpush1.bf16.msra.mxu1 %v6213_v32 }
 0x16f   :  { %6242 = vmatpush3.bf16.msra.mxu0 %v6239_v31 }
 0x235   :  { %v5773_v35 = vpop.f32.mrb[0].mxu0 }
 0x236   :  { %v346_v37 = vadd.f32 %v5773_v35, %v344_v34  ;;  %v310_v38 = vpop.f32.mrb[1].mxu0  ;;  %v453_v35 = vld [vmem:[#allocation4 + $0xd0] sm:$0xff] }
 0x237   :  { %v345_v40 = vadd.f32 %v344_v34, %v310_v38  ;;  %v461_v34 = vld [vmem:[#allocation4 + $0x110] sm:$0xff] }
 0x238   :  { %v348_v41 = vadd.f32 %v346_v37, %v343_v36  ;;  %v6215_v36 = vpack.c.bf16 %v461_v34, %v458_v33  ;;  %v456_v37 = vld [vmem:[#allocation4 + $0xe8] sm:$0xff]  ;;  %v457_v38 = vld [vmem:[#allocation4 + $0xf0] sm:$0xff] }
 0x239   :  { %v347_v42 = vadd.f32 %v345_v40, %v342_v39  ;;  %v460_v39 = vld [vmem:[#allocation4 + $0x108] sm:$0xff]  ;;  %v6243_v40 = vpack.c.bf16 %v456_v37, %v453_v35  ;;  %v7567_v37 = vsub.s32 2, %v7490_v26 }
 0x23a   :  { %353 = vadd.xlane.f32.xlu1 %v348_v41  ;;  %6216 = vmatprep.subr.bf16.mxu1 %v6215_v36 }
 0x23b   :  { %351 = vadd.xlane.f32.xlu0 %v347_v42  ;;  %6244 = vmatprep.subr.bf16.mxu0 %v6243_v40 }
 0x23c   :  { %6246 = vmatpush3.bf16.msra.mxu0 %v6243_v40 }
 0x23d   :  { %6248 = vmatprep.subr.bf16.mxu0 %v6247_v49 }
 0x240   :  { %6250 = vmatpush3.bf16.msra.mxu0 %v6247_v49  ;;  %v391_v49 = vcvt.s32.f32 %v390_v48 }
 0x241   :  { %6252 = vmatprep.subr.bf16.mxu0 %v6251_v58 }
 0x242   :  { %v392_v52 = vsub.f32 1.0, %v391_v49 }
 0x244   :  { %6254 = vmatpush3.bf16.msra.mxu0 %v6251_v58 }
 0x245   :  { %6256 = vmatprep.subr.bf16.mxu0 %v6255_v62 }
 0x248   :  { %6258 = vmatpush3.bf16.msra.mxu0 %v6255_v62 }
 0x249   :  { %5824 = vmatprep.subr.mxu0 %v7145_v9 }
 0x2c7   :  { %v354_v3 = vpop.xlane.xlu1 %353 }
 0x2c8   :  { %v352_v4 = vpop.xlane.xlu0 %351  ;;  %v357_v5 = vmul.f32 0.0078125, %v354_v3 }
 0x2c9   :  { %v356_v6 = vmul.f32 0.0078125, %v352_v4 }
 0x2ca   :  { %v7508_v8 = vsub.f32 %v348_v41, %v357_v5  ;;  %v6217_v41 = vpack.c.bf16 %v460_v39, %v457_v38 }
 0x2cb   :  { %v7506_v7 = vsub.f32 %v347_v42, %v356_v6  ;;  %v464_v42 = vld [vmem:[#allocation4 + $0x128] sm:$0xff]  ;;  %v5332_v6 = vld [vmem:[%s8170_s16] ss:$0 sm:$0xff] }
 0x2cc   :  { %v361_v11 = vmul.f32 %v7508_v8, %v7508_v8  ;;  %v6219_v45 = vpack.c.bf16 %v467_v43, %v464_v42  ;;  %6218 = vmatpush1.bf16.msra.mxu1 %v6217_v41 }
 0x2cd   :  { %v360_v10 = vmul.f32 %v7506_v7, %v7506_v7 }
 0x2ce   :  { %6220 = vmatprep.subr.bf16.mxu1 %v6219_v45 }
 0x2cf   :  { %362 = vadd.xlane.f32.xlu0 %v360_v10 }
 0x2d0   :  { %6222 = vmatpush1.bf16.msra.mxu1 %v6221_v50  ;;  %v7149_v50 = vmov 1966171168  }
 0x2d1   :  { %6224 = vmatprep.subr.bf16.mxu1 %v6223_v54  ;;  %v396_v51 = vunpack.c.l.s4 %v7149_v50  ;;  %v393_v54 = vmul.f32 -1e+09, %v392_v52 }
 0x2d3   :  { %364 = vadd.xlane.f32.xlu0 %v361_v11  ;;  %v5333_v11 = vld [vmem:[#allocation2] ss:$0 sm:$0xff]  ;;  %v397_v53 = vunpack.c.0.s8 %v396_v51 }
 0x2d4   :  { %6226 = vmatpush1.bf16.msra.mxu1 %v6225_v59 }
 0x2d5   :  { %5809 = vmatprep.subr.mxu1 %v7145_v9  ;;  %v400_v55 = vsub.s32 %v397_v53, %v7490_v26 }
 0x2d7   :  { %v401_v56 = vrot.slane %v393_v54, %v400_v55 }
 0x2d9   :  { %v402_v57 = vcombine.high %v401_v56, %v401_v56  ;;  %v409_v58 = vrot.slane %v401_v56, %v400_v55 }
 0x2db   :  { %v416_v59 = vrot.slane %v402_v57, %v400_v55  ;;  %v7608_v60 = vrot.slane %v409_v58, %v7493_v28 }
 0x35c   :  { %v363_v63 = vpop.xlane.xlu0 %362 }
 0x35d   :  { %v366_v0 = vmul.f32 0.0078125, %v363_v63 }
 0x35f   :  { %v368_v1 = vadd.f32 1e-12, %v366_v0  ;;  %v7611_v0 = vrot.slane %v416_v59, %v7493_v28 }
 0x360   :  { %v365_v2 = vpop.xlane.xlu0 %364 }
 0x361   :  { %6778 = vrsqrt.f32 %v368_v1  ;;  %v367_v3 = vmul.f32 0.0078125, %v365_v2 }
 0x363   :  { %v369_v4 = vadd.f32 1e-12, %v367_v3 }
 0x365   :  { %6780 = vrsqrt.f32 %v369_v4 }
 0x36b   :  { %v6779_v5 = vpop.eup %6778 }
 0x36c   :  { %v372_v10 = vmul.f32 %v6779_v5, %v7506_v7  ;;  %v475_v7 = vld [vmem:[%s8171_s29] sm:$0x7] }
 0x36d   :  { %v484_v18 = vrot.slane %v475_v7, %v7496_v29  ;;  %v488_v40 = vrot.slane %v475_v7, %v7567_v37 }
 0x36e   :  { %v380_v12 = vmul.f32 %v5332_v6, %v372_v10 }
 0x36f   :  { %v6781_v13 = vpop.eup %6780 }
 0x370   :  { %v7520_v14 = vadd.f32 %v5333_v11, %v380_v12  ;;  %v373_v15 = vmul.f32 %v6781_v13, %v7508_v8  ;;  %v480_v8 = vrot.slane %v475_v7, %v7493_v28 }
 0x372   :  { %557 = vmatmul.mubr.f32.vlgmr.msra.gmra.mrb[0].mxu1 %v7520_v14  ;;  %5806 = vmatprep.mubr.f32.mxu0 %v7520_v14  ;;  %v381_v16 = vmul.f32 %v5332_v6, %v373_v15 }
 0x373   :  { %562 = vmatprep.mubr.f32.mxu1 %v7145_v9 }
 0x374   :  { %v7526_v17 = vadd.f32 %v5333_v11, %v381_v16 }
 0x376   :  { %563 = vmatmul.mubr.f32.gmra.mrb[2].mxu1 %v7526_v17  ;;  %5807 = vmatmul.mubr.f32.vlgmr.msra.gmra.mrb[2].mxu0 %v7526_v17 }
 0x377   :  { %5811 = vmatprep.mubr.msk.f32.mxu1 %vm7146_vm7, %v7145_v9  ;;  %5826 = vmatprep.mubr.msk.f32.mxu0 %vm7146_vm7, %v7145_v9 }
 0x445   :  { %v558_v19 = vpop.f32.mrb[0].mxu1 }
 0x446   :  { %v559_v20 = vadd.f32 %v558_v19, %v480_v8  ;;  %v560_v21 = vpop.f32.mrb[1].mxu1 }
 0x447   :  { %v561_v22 = vadd.f32 %v560_v21, %v484_v18 }
 0x448   :  { %646 = vrot.lane.b32.xlu1 %v559_v20, %s7147_s7 }
 0x449   :  { %664 = vrot.lane.b32.xlu0 %v561_v22, %s7148_s20  ;;  %v564_v23 = vpop.f32.mrb[2].mxu1  ;;  %v5808_v24 = vpop.f32.mrb[2].mxu0  ;;  %5810 = vmatpush3.xpose.msk.msra.mxu1 %vm692_vm8, %v561_v22 }
 0x44a   :  { %v566_v25 = vpop.f32.mrb[3].mxu1  ;;  %v635_v27 = vpop.f32.mrb[3].mxu0  ;;  %5814 = vmatprep.subr.mxu1 %v7145_v9  ;;  %v565_v31 = vadd.f32 %v564_v23, %v480_v8  ;;  %v7596_v46 = vadd.f32 %v5808_v24, %v488_v40 }
 0x44b   :  { %v567_v30 = vadd.f32 %v566_v25, %v484_v18  ;;  %v7582_v43 = vadd.f32 %v635_v27, %v488_v40 }
 0x44c   :  { %660 = vrot.lane.b32.xlu1 %v561_v22, %s7147_s7  ;;  %5812 = vmatmul.mubr.msk.f32.vlgmr.msra.gmra.mrb[4].mxu1 %vm692_vm8, %v559_v20 }
 0x44d   :  { %662 = vrot.lane.b32.xlu0 %v567_v30, %s7147_s7  ;;  %5815 = vmatpush3.xpose.msk.msra.mxu1 %vm692_vm8, %v567_v30 }
 0x44e   :  { %5816 = vmatprep.mubr.msk.f32.mxu1 %vm7146_vm7, %v7145_v9  ;;  %5819 = vmatprep.subr.mxu1 %v7145_v9 }
 0x450   :  { %648 = vrot.lane.b32.xlu1 %v565_v31, %s7147_s7  ;;  %5817 = vmatmul.mubr.msk.f32.vlgmr.msra.gmra.mrb[6].mxu1 %vm692_vm8, %v565_v31 }
 0x451   :  { %650 = vrot.lane.b32.xlu0 %v559_v20, %s7148_s20  ;;  %5821 = vmatprep.mubr.msk.f32.mxu1 %vm7146_vm7, %v7145_v9 }
 0x454   :  { %652 = vrot.lane.b32.xlu1 %v565_v31, %s7148_s20 }
 0x455   :  { %668 = vrot.lane.b32.xlu0 %v561_v22, %s7133_s9 }
 0x458   :  { %666 = vrot.lane.b32.xlu1 %v567_v30, %s7148_s20 }
 0x459   :  { %654 = vrot.lane.b32.xlu0 %v559_v20, %s7133_s9 }
 0x45c   :  { %670 = vrot.lane.b32.xlu1 %v567_v30, %s7133_s9 }
 0x460   :  { %656 = vrot.lane.b32.xlu1 %v565_v31, %s7133_s9 }
 0x4ba   :  { %v647_v32 = vpop.permute.xlu1 %646 }
 0x4bb   :  { %v665_v33 = vpop.permute.xlu0 %664 }
 0x4be   :  { %v661_v34 = vpop.permute.xlu1 %660 }
 0x4bf   :  { %5820 = vmatpush3.xpose.msk.msra.mxu1 %vm692_vm8, %v661_v34  ;;  %v663_v35 = vpop.permute.xlu0 %662 }
 0x4c0   :  { %5825 = vmatpush3.xpose.msk.msra.mxu0 %vm692_vm8, %v663_v35  ;;  %5829 = vmatprep.subr.mxu1 %v7145_v9 }
 0x4c1   :  { %5834 = vmatprep.subr.mxu0 %v7145_v9 }
 0x4c2   :  { %v649_v36 = vpop.permute.xlu1 %648  ;;  %5822 = vmatmul.mubr.msk.f32.vlgmr.msra.gmra.mrb[8].mxu1 %vm692_vm8, %v647_v32 }
 0x4c3   :  { %5827 = vmatmul.mubr.msk.f32.vlgmr.msra.gmra.mrb[4].mxu0 %vm692_vm8, %v649_v36  ;;  %5830 = vmatpush3.xpose.msk.msra.mxu1 %vm692_vm8, %v665_v33  ;;  %v651_v38 = vpop.permute.xlu0 %650 }
 0x4c4   :  { %5831 = vmatprep.mubr.msk.f32.mxu1 %vm7146_vm7, %v7145_v9  ;;  %5839 = vmatprep.subr.mxu1 %v7145_v9 }
 0x4c5   :  { %5836 = vmatprep.mubr.msk.f32.mxu0 %vm7146_vm7, %v7145_v9 }
 0x4c6   :  { %v653_v39 = vpop.permute.xlu1 %652  ;;  %5832 = vmatmul.mubr.msk.f32.vlgmr.msra.gmra.mrb[10].mxu1 %vm692_vm8, %v651_v38 }
 0x4c7   :  { %v669_v41 = vpop.permute.xlu0 %668  ;;  %5841 = vmatprep.mubr.msk.f32.mxu1 %vm7146_vm7, %v7145_v9 }
 0x4c8   :  { %5840 = vmatpush3.xpose.msk.msra.mxu1 %vm692_vm8, %v669_v41 }
 0x4c9   :  { %5849 = vmatprep.subr.mxu1 %v7145_v9 }
 0x4ca   :  { %v667_v42 = vpop.permute.xlu1 %666 }
 0x4cb   :  { %5835 = vmatpush3.xpose.msk.msra.mxu0 %vm692_vm8, %v667_v42  ;;  %v655_v44 = vpop.permute.xlu0 %654 }
 0x4cc   :  { %5842 = vmatmul.mubr.msk.f32.vlgmr.msra.gmra.mrb[12].mxu1 %vm692_vm8, %v655_v44  ;;  %5844 = vmatprep.subr.mxu0 %v7145_v9 }
 0x4cd   :  { %5850 = vmatpush3.msra.mxu1 %v7582_v43  ;;  %5851 = vmatprep.mubr.msk.f32.mxu1 %vm7146_vm7, %v7145_v9 }
 0x4ce   :  { %v671_v45 = vpop.permute.xlu1 %670  ;;  %5837 = vmatmul.mubr.msk.f32.vlgmr.msra.gmra.mrb[6].mxu0 %vm692_vm8, %v653_v39  ;;  %5859 = vmatprep.subr.mxu1 %v7145_v9 }
 0x4cf   :  { %5845 = vmatpush3.xpose.msk.msra.mxu0 %vm692_vm8, %v671_v45  ;;  %5846 = vmatprep.mubr.msk.f32.mxu0 %vm7146_vm7, %v7145_v9 }
 0x4d0   :  { %5854 = vmatprep.subr.mxu0 %v7145_v9 }
 0x4d2   :  { %v657_v47 = vpop.permute.xlu1 %656 }
 0x4d3   :  { %5847 = vmatmul.mubr.msk.f32.vlgmr.msra.gmra.mrb[8].mxu0 %vm692_vm8, %v657_v47 }
 0x4d4   :  { %5855 = vmatpush3.msra.mxu0 %v7596_v46  ;;  %5856 = vmatprep.mubr.msk.f32.mxu0 %vm7146_vm7, %v7145_v9 }
 0x4d5   :  { %5864 = vmatprep.subr.mxu0 %v7145_v9 }
 0x51f   :  { %v763_v61 = vpop.f32.mrb[4].mxu1 }
 0x520   :  { %v1285_v62 = vmul.f32 0.17677669, %v763_v61  ;;  %v5813_v63 = vpop.f32.mrb[5].mxu1 }
 0x522   :  { %v1293_v1 = vadd.f32 %v1285_v62, %v7608_v60 }
 0x523   :  { %v837_v2 = vpop.f32.mrb[6].mxu1 }
 0x524   :  { %v1286_v3 = vmul.f32 0.17677669, %v837_v2  ;;  %v5818_v4 = vpop.f32.mrb[7].mxu1  ;;  %v1302_v5 = vsel %vm1301_vm9, %v1293_v1, -inf }
 0x525   :  { %1303 = vmax.xlane.f32.xlu0 %v1302_v5 }
 0x526   :  { %v1294_v6 = vadd.f32 %v1286_v3, %v7611_v0 }
 0x528   :  { %v1305_v10 = vsel %vm1301_vm9, %v1294_v6, -inf }
 0x529   :  { %1306 = vmax.xlane.f32.xlu1 %v1305_v10 }
 0x595   :  { %v911_v11 = vpop.f32.mrb[8].mxu1 }
 0x596   :  { %v1287_v12 = vmul.f32 0.17677669, %v911_v11  ;;  %v5823_v13 = vpop.f32.mrb[9].mxu1  ;;  %v985_v15 = vpop.f32.mrb[4].mxu0 }
 0x597   :  { %v1288_v16 = vmul.f32 0.17677669, %v985_v15  ;;  %v5828_v7 = vpop.f32.mrb[5].mxu0 }
 0x598   :  { %v1295_v8 = vadd.f32 %v1287_v12, %v7608_v60 }
 0x599   :  { %v1059_v18 = vpop.f32.mrb[10].mxu1  ;;  %v1296_v22 = vadd.f32 %v1288_v16, %v7611_v0 }
 0x59a   :  { %v1289_v19 = vmul.f32 0.17677669, %v1059_v18  ;;  %v5833_v20 = vpop.f32.mrb[11].mxu1  ;;  %v1308_v21 = vsel %vm1301_vm9, %v1295_v8, -inf }
 0x59b   :  { %1309 = vmax.xlane.f32.xlu0 %v1308_v21  ;;  %v1311_v24 = vsel %vm1301_vm9, %v1296_v22, -inf }
 0x59c   :  { %v1297_v23 = vadd.f32 %v1289_v19, %v7608_v60 }
 0x59e   :  { %v1314_v25 = vsel %vm1301_vm9, %v1297_v23, -inf }
 0x59f   :  { %1312 = vmax.xlane.f32.xlu0 %v1311_v24  ;;  %1315 = vmax.xlane.f32.xlu1 %v1314_v25  ;;  %v1207_v27 = vpop.f32.mrb[12].mxu1 }
 0x5a0   :  { %v1291_v30 = vmul.f32 0.17677669, %v1207_v27  ;;  %v5843_v31 = vpop.f32.mrb[13].mxu1 }
 0x5a1   :  { %v1133_v32 = vpop.f32.mrb[6].mxu0 }
 0x5a2   :  { %v1290_v33 = vmul.f32 0.17677669, %v1133_v32  ;;  %v5838_v34 = vpop.f32.mrb[7].mxu0  ;;  %v1299_v35 = vadd.f32 %v1291_v30, %v7608_v60 }
 0x5a4   :  { %v1320_v36 = vsel %vm1301_vm9, %v1299_v35, -inf  ;;  %v1298_v38 = vadd.f32 %v1290_v33, %v7611_v0 }
 0x5a5   :  { %1321 = vmax.xlane.f32.xlu1 %v1320_v36 }
 0x5a6   :  { %v1281_v39 = vpop.f32.mrb[8].mxu0  ;;  %v1317_v40 = vsel %vm1301_vm9, %v1298_v38, -inf }
 0x5a7   :  { %v1292_v41 = vmul.f32 0.17677669, %v1281_v39  ;;  %1318 = vmax.xlane.f32.xlu0 %v1317_v40  ;;  %v5848_v42 = vpop.f32.mrb[9].mxu0 }
 0x5a9   :  { %v1300_v44 = vadd.f32 %v1292_v41, %v7611_v0 }
 0x5ab   :  { %v1323_v45 = vsel %vm1301_vm9, %v1300_v44, -inf }
 0x5ac   :  { %1324 = vmax.xlane.f32.xlu0 %v1323_v45 }
 0x5b2   :  { %v1304_v48 = vpop.xlane.xlu0 %1303 }
 0x5b3   :  { %v1326_v50 = vsub.f32 %v1293_v1, %v1304_v48 }
 0x5b5   :  { %v1334_v52 = vmul.f32 1.442695, %v1326_v50 }
 0x5b6   :  { %674 = vrot.lane.b32.xlu1 %v7582_v43, %s7147_s7  ;;  %v1307_v47 = vpop.xlane.xlu1 %1306 }
 0x5b7   :  { %v1327_v49 = vsub.f32 %v1294_v6, %v1307_v47 }
 0x5b9   :  { %v1336_v51 = vmul.f32 1.442695, %v1327_v49 }
 0x5ba   :  { %680 = vrot.lane.b32.xlu1 %v7582_v43, %s7148_s20 }
 0x5bb   :  { %6782 = vpow2.f32 %v1336_v51 }
 0x5bc   :  { %6784 = vpow2.f32 %v1334_v52 }
 0x5be   :  { %682 = vrot.lane.b32.xlu1 %v7596_v46, %s7148_s20 }
 0x5c2   :  { %676 = vrot.lane.b32.xlu0 %v7596_v46, %s7147_s7 }
 0x5c5   :  { %v6783_v53 = vpop.eup %6782 }
 0x5c6   :  { %v6785_v54 = vpop.eup %6784  ;;  %v1353_v55 = vsel %vm1301_vm9, %v6783_v53, 0.0 }
 0x5c7   :  { %v1350_v56 = vsel %vm1301_vm9, %v6785_v54, 0.0 }
 0x5e1   :  { %1354 = vadd.xlane.f32.xlu0 %v1353_v55 }
 0x5e2   :  { %1351 = vadd.xlane.f32.xlu1 %v1350_v56 }
 0x628   :  { %v1310_v57 = vpop.xlane.xlu0 %1309 }
 0x629   :  { %v1328_v58 = vsub.f32 %v1295_v8, %v1310_v57 }
 0x62b   :  { %v1338_v59 = vmul.f32 1.442695, %v1328_v58 }
 0x62c   :  { %v1316_v61 = vpop.xlane.xlu1 %1315  ;;  %v1313_v62 = vpop.xlane.xlu0 %1312 }
 0x62d   :  { %6786 = vpow2.f32 %v1338_v59  ;;  %v1330_v63 = vsub.f32 %v1297_v23, %v1316_v61  ;;  %v1329_v1 = vsub.f32 %v1296_v22, %v1313_v62 }
 0x62f   :  { %v1342_v2 = vmul.f32 1.442695, %v1330_v63  ;;  %v1340_v3 = vmul.f32 1.442695, %v1329_v1  ;;  %v2005_v63 = vld [vmem:[#allocation6] sm:$0xff]  ;;  %v2006_v1 = vld [vmem:[#allocation6 + $0x8] sm:$0xff] }
 0x631   :  { %6788 = vpow2.f32 %v1342_v2  ;;  %v2007_v2 = vld [vmem:[#allocation6 + $0x10] sm:$0xff] }
 0x632   :  { %6790 = vpow2.f32 %v1340_v3  ;;  %v1322_v4 = vpop.xlane.xlu1 %1321  ;;  %v6259_v3 = vpack.c.bf16 %v2006_v1, %v2005_v63 }
 0x633   :  { %v1332_v5 = vsub.f32 %v1299_v35, %v1322_v4  ;;  %v2008_v4 = vld [vmem:[#allocation6 + $0x18] sm:$0xff] }
 0x634   :  { %v1319_v6 = vpop.xlane.xlu0 %1318 }
 0x635   :  { %v1346_v10 = vmul.f32 1.442695, %v1332_v5  ;;  %v1331_v11 = vsub.f32 %v1298_v38, %v1319_v6  ;;  %v6263_v5 = vpack.c.bf16 %v2008_v4, %v2007_v2  ;;  %v2009_v6 = vld [vmem:[#allocation6 + $0x20] sm:$0xff] }
 0x636   :  { %v675_v31 = vpop.permute.xlu1 %674 }
 0x637   :  { %v6787_v12 = vpop.eup %6786  ;;  %6792 = vpow2.f32 %v1346_v10  ;;  %v1344_v13 = vmul.f32 1.442695, %v1331_v11  ;;  %v2010_v10 = vld [vmem:[#allocation6 + $0x28] sm:$0xff] }
 0x638   :  { %v1356_v15 = vsel %vm1301_vm9, %v6787_v12, 0.0  ;;  %v6267_v11 = vpack.c.bf16 %v2010_v10, %v2009_v6 }
 0x639   :  { %6794 = vpow2.f32 %v1344_v13  ;;  %1357 = vadd.xlane.f32.xlu1 %v1356_v15  ;;  %v1325_v16 = vpop.xlane.xlu0 %1324  ;;  %v2012_v13 = vld [vmem:[#allocation6 + $0x38] sm:$0xff] }
 0x63a   :  { %v1333_v7 = vsub.f32 %v1300_v44, %v1325_v16  ;;  %v681_v32 = vpop.permute.xlu1 %680 }
 0x63b   :  { %v6789_v8 = vpop.eup %6788 }
 0x63c   :  { %v6791_v18 = vpop.eup %6790  ;;  %v1348_v19 = vmul.f32 1.442695, %v1333_v7  ;;  %v1362_v20 = vsel %vm1301_vm9, %v6789_v8, 0.0 }
 0x63d   :  { %1363 = vadd.xlane.f32.xlu1 %v1362_v20  ;;  %v1359_v21 = vsel %vm1301_vm9, %v6791_v18, 0.0  ;;  %v677_v33 = vpop.permute.xlu0 %676  ;;  %v2014_v20 = vld [vmem:[#allocation6 + $0x48] sm:$0xff] }
 0x63e   :  { %6796 = vpow2.f32 %v1348_v19  ;;  %1360 = vadd.xlane.f32.xlu0 %v1359_v21  ;;  %v683_v34 = vpop.permute.xlu1 %682  ;;  %v2013_v19 = vld [vmem:[#allocation6 + $0x40] sm:$0xff] }
 0x63f   :  { %v6275_v21 = vpack.c.bf16 %v2014_v20, %v2013_v19  ;;  %v2149_v19 = vld [vmem:[#allocation7 + $0x20] sm:$0xff] }
 0x641   :  { %v6793_v22 = vpop.eup %6792 }
 0x642   :  { %v1368_v23 = vsel %vm1301_vm9, %v6793_v22, 0.0 }
 0x643   :  { %v6795_v24 = vpop.eup %6794  ;;  %1369 = vadd.xlane.f32.xlu1 %v1368_v23  ;;  %v2016_v23 = vld [vmem:[#allocation6 + $0x58] sm:$0xff] }
 0x644   :  { %v1365_v25 = vsel %vm1301_vm9, %v6795_v24, 0.0 }
 0x645   :  { %1366 = vadd.xlane.f32.xlu0 %v1365_v25 }
 0x648   :  { %v7644_v27 = vpop.eup %6796 }
 0x649   :  { %v1371_v30 = vsel %vm1301_vm9, %v7644_v27, 0.0 }
 0x64a   :  { %1372 = vadd.xlane.f32.xlu0 %v1371_v30  ;;  %v2017_v30 = vld [vmem:[#allocation6 + $0x60] sm:$0xff] }
 0x654   :  { %688 = vrot.lane.b32.xlu1 %v7596_v46, %s7133_s9 }
 0x660   :  { %686 = vrot.lane.b32.xlu0 %v7582_v43, %s7133_s9 }
 0x66e   :  { %v1355_v35 = vpop.xlane.xlu0 %1354 }
 0x66f   :  { %6798 = vrcp.f32 %v1355_v35  ;;  %v1352_v36 = vpop.xlane.xlu1 %1351 }
 0x670   :  { %6800 = vrcp.f32 %v1352_v36 }
 0x679   :  { %v6799_v38 = vpop.eup %6798 }
 0x67a   :  { %v6801_v39 = vpop.eup %6800  ;;  %v1383_v40 = vmul.f32 %v6799_v38, %v6783_v53 }
 0x67b   :  { %v1382_v41 = vmul.f32 %v6801_v39, %v6785_v54  ;;  %v2019_v39 = vld [vmem:[#allocation6 + $0x70] sm:$0xff] }
 0x67c   :  { %5857 = vmatmul.mubr.msk.f32.vlgmr.msra.gmra.mrb[10].mxu0 %vm1301_vm9, %v1383_v40  ;;  %v2020_v40 = vld [vmem:[#allocation6 + $0x78] sm:$0xff] }
 0x67d   :  { %5865 = vmatpush3.msra.mxu0 %v677_v33  ;;  %5852 = vmatmul.mubr.msk.f32.vlgmr.msra.gmra.mrb[14].mxu1 %vm1301_vm9, %v1382_v41  ;;  %v6287_v41 = vpack.c.bf16 %v2020_v40, %v2019_v39  ;;  %v2166_v39 = vld [vmem:[#allocation7 + $0xa8] sm:$0xff] }
 0x67e   :  { %5860 = vmatpush3.msra.mxu1 %v675_v31  ;;  %5861 = vmatprep.mubr.msk.f32.mxu1 %vm7146_vm7, %v7145_v9  ;;  %v2018_v31 = vld [vmem:[#allocation6 + $0x68] sm:$0xff] }
 0x67f   :  { %5869 = vmatprep.subr.mxu1 %v7145_v9  ;;  %5866 = vmatprep.mubr.msk.f32.mxu0 %vm7146_vm7, %v7145_v9 }
 0x680   :  { %5874 = vmatprep.subr.mxu0 %v7145_v9 }
 0x6c6   :  { %v1358_v43 = vpop.xlane.xlu1 %1357 }
 0x6c7   :  { %6802 = vrcp.f32 %v1358_v43 }
 0x6ca   :  { %v1364_v46 = vpop.xlane.xlu1 %1363 }
 0x6cb   :  { %6804 = vrcp.f32 %v1364_v46  ;;  %v1361_v42 = vpop.xlane.xlu0 %1360 }
 0x6cc   :  { %6806 = vrcp.f32 %v1361_v42 }
 0x6d0   :  { %v1370_v44 = vpop.xlane.xlu1 %1369 }
 0x6d1   :  { %v6803_v45 = vpop.eup %6802  ;;  %6808 = vrcp.f32 %v1370_v44 }
 0x6d2   :  { %v1384_v47 = vmul.f32 %v6803_v45, %v6787_v12  ;;  %v1367_v48 = vpop.xlane.xlu0 %1366  ;;  %v2011_v12 = vld [vmem:[#allocation6 + $0x30] sm:$0xff] }
 0x6d3   :  { %6810 = vrcp.f32 %v1367_v48  ;;  %v6271_v15 = vpack.c.bf16 %v2012_v13, %v2011_v12  ;;  %v2146_v13 = vld [vmem:[#allocation7 + $0x8] sm:$0xff] }
 0x6d4   :  { %5862 = vmatmul.mubr.msk.f32.vlgmr.msra.gmra.mrb[16].mxu1 %vm1301_vm9, %v1384_v47  ;;  %v689_v59 = vpop.permute.xlu1 %688 }
 0x6d5   :  { %v6805_v49 = vpop.eup %6804  ;;  %5870 = vmatpush3.msra.mxu1 %v681_v32  ;;  %5871 = vmatprep.mubr.msk.f32.mxu1 %vm7146_vm7, %v7145_v9  ;;  %v6283_v32 = vpack.c.bf16 %v2018_v31, %v2017_v30  ;;  %v2160_v30 = vld [vmem:[#allocation7 + $0x78] sm:$0xff] }
 0x6d6   :  { %v6807_v50 = vpop.eup %6806  ;;  %v1386_v51 = vmul.f32 %v6805_v49, %v6789_v8  ;;  %5879 = vmatprep.subr.mxu1 %v7145_v9 }
 0x6d7   :  { %v1385_v52 = vmul.f32 %v6807_v50, %v6791_v18  ;;  %v1373_v53 = vpop.xlane.xlu0 %1372 }
 0x6d8   :  { %6812 = vrcp.f32 %v1373_v53  ;;  %5872 = vmatmul.mubr.msk.f32.vlgmr.msra.gmra.mrb[18].mxu1 %vm1301_vm9, %v1386_v51 }
 0x6d9   :  { %5867 = vmatmul.mubr.msk.f32.vlgmr.msra.gmra.mrb[12].mxu0 %vm1301_vm9, %v1385_v52  ;;  %5881 = vmatprep.mubr.msk.f32.mxu1 %vm7146_vm7, %v7145_v9 }
 0x6da   :  { %5875 = vmatpush3.msra.mxu0 %v683_v34  ;;  %5876 = vmatprep.mubr.msk.f32.mxu0 %vm7146_vm7, %v7145_v9 }
 0x6db   :  { %v6809_v54 = vpop.eup %6808  ;;  %v687_v55 = vpop.permute.xlu0 %686  ;;  %5884 = vmatprep.subr.mxu0 %v7145_v9 }
 0x6dc   :  { %v1388_v56 = vmul.f32 %v6809_v54, %v6793_v22  ;;  %5880 = vmatpush3.msra.mxu1 %v687_v55  ;;  %v2015_v22 = vld [vmem:[#allocation6 + $0x50] sm:$0xff] }
 0x6dd   :  { %v6811_v57 = vpop.eup %6810  ;;  %6260 = vmatprep.subr.bf16.mxu1 %v6259_v3 }
 0x6de   :  { %v1387_v58 = vmul.f32 %v6811_v57, %v6795_v24  ;;  %5882 = vmatmul.mubr.msk.f32.vlgmr.msra.gmra.mrb[20].mxu1 %vm1301_vm9, %v1388_v56  ;;  %v6279_v24 = vpack.c.bf16 %v2016_v23, %v2015_v22  ;;  %v2147_v22 = vld [vmem:[#allocation7 + $0x10] sm:$0xff] }
 0x6df   :  { %6262 = vmatpush3.bf16.msra.mxu1 %v6259_v3  ;;  %v5358_v3 = vld [vmem:[%s8173_s28] ss:$0 sm:$0xff]  ;;  %v2151_v23 = vld [vmem:[#allocation7 + $0x30] sm:$0xff] }
 0x6e0   :  { %5877 = vmatmul.mubr.msk.f32.vlgmr.msra.gmra.mrb[14].mxu0 %vm1301_vm9, %v1387_v58  ;;  %6264 = vmatprep.subr.bf16.mxu1 %v6263_v5 }
 0x6e1   :  { %5885 = vmatpush3.msra.mxu0 %v689_v59  ;;  %5886 = vmatprep.mubr.msk.f32.mxu0 %vm7146_vm7, %v7145_v9 }
 0x6e2   :  { %v6813_v61 = vpop.eup %6812 }
 0x6e3   :  { %v1389_v62 = vmul.f32 %v6813_v61, %v7644_v27  ;;  %6266 = vmatpush3.bf16.msra.mxu1 %v6263_v5 }
 0x6e4   :  { %6268 = vmatprep.subr.bf16.mxu1 %v6267_v11 }
 0x6e5   :  { %5887 = vmatmul.mubr.msk.f32.vlgmr.msra.gmra.mrb[16].mxu0 %vm1301_vm9, %v1389_v62 }
 0x6e6   :  { %2295 = vmatprep.mubr.f32.mxu0 %v7145_v9 }
 0x6e7   :  { %6270 = vmatpush3.bf16.msra.mxu1 %v6267_v11 }
 0x6e8   :  { %6272 = vmatprep.subr.bf16.mxu1 %v6271_v15 }
 0x6eb   :  { %6274 = vmatpush3.bf16.msra.mxu1 %v6271_v15  ;;  %v2150_v15 = vld [vmem:[#allocation7 + $0x28] sm:$0xff] }
 0x6ec   :  { %6276 = vmatprep.subr.bf16.mxu1 %v6275_v21 }
 0x6ef   :  { %6278 = vmatpush3.bf16.msra.mxu1 %v6275_v21 }
 0x6f0   :  { %6280 = vmatprep.subr.bf16.mxu1 %v6279_v24 }
 0x6f3   :  { %6282 = vmatpush3.bf16.msra.mxu1 %v6279_v24  ;;  %v2154_v24 = vld [vmem:[#allocation7 + $0x48] sm:$0xff] }
 0x6f4   :  { %6284 = vmatprep.subr.bf16.mxu1 %v6283_v32 }
 0x6f7   :  { %6286 = vmatpush3.bf16.msra.mxu1 %v6283_v32  ;;  %v2153_v32 = vld [vmem:[#allocation7 + $0x40] sm:$0xff] }
 0x6f8   :  { %6288 = vmatprep.subr.bf16.mxu1 %v6287_v41 }
 0x6fb   :  { %6290 = vmatpush3.bf16.msra.mxu1 %v6287_v41 }
 0x74f   :  { %v1532_v16 = vpop.f32.mrb[10].mxu0 }
 0x750   :  { %v1459_v7 = vpop.f32.mrb[14].mxu1  ;;  %v5858_v8 = vpop.f32.mrb[11].mxu0 }
 0x751   :  { %v5853_v18 = vpop.f32.mrb[15].mxu1  ;;  %v2152_v8 = vld [vmem:[#allocation7 + $0x38] sm:$0xff] }
 0x752   :  { %v2145_v18 = vld [vmem:[#allocation7] sm:$0xff] }
 0x753   :  { %v6293_v21 = vpack.c.bf16 %v2149_v19, %v2145_v18  ;;  %v2181_v18 = vld [vmem:[#allocation7 + $0x120] sm:$0xff] }
 0x7a7   :  { %v1605_v25 = vpop.f32.mrb[16].mxu1 }
 0x7a8   :  { %v5863_v27 = vpop.f32.mrb[17].mxu1 }
 0x7a9   :  { %v2158_v27 = vld [vmem:[#allocation7 + $0x68] sm:$0xff] }
 0x7ab   :  { %v1751_v33 = vpop.f32.mrb[18].mxu1 }
 0x7ac   :  { %v1678_v34 = vpop.f32.mrb[12].mxu0  ;;  %v5873_v35 = vpop.f32.mrb[19].mxu1 }
 0x7ad   :  { %v6748_v36 = vpack.i.bf16 %v1678_v34, %v1605_v25  ;;  %v5868_v38 = vpop.f32.mrb[13].mxu0  ;;  %v6325_v25 = vpack.c.bf16 %v2151_v23, %v2147_v22  ;;  %v2155_v34 = vld [vmem:[#allocation7 + $0x50] sm:$0xff]  ;;  %v2186_v23 = vld [vmem:[#allocation7 + $0x148] sm:$0xff] }
 0x7ae   :  { %v2162_v38 = vld [vmem:[#allocation7 + $0x88] sm:$0xff]  ;;  %v2183_v22 = vld [vmem:[#allocation7 + $0x130] sm:$0xff] }
 0x7af   :  { %6749 = vrot.lane.b32.xlu0 %v6748_v36, %s7133_s9  ;;  %v2159_v36 = vld [vmem:[#allocation7 + $0x70] sm:$0xff]  ;;  %v6299_v41 = vpack.c.bf16 %v2166_v39, %v2162_v38  ;;  %v2198_v38 = vld [vmem:[#allocation7 + $0x1a8] sm:$0xff] }
 0x7b0   :  { %v6329_v40 = vpack.c.bf16 %v2159_v36, %v2155_v34  ;;  %v2194_v36 = vld [vmem:[#allocation7 + $0x188] sm:$0xff] }
 0x7b1   :  { %v1897_v43 = vpop.f32.mrb[20].mxu1 }
 0x7b2   :  { %v5883_v46 = vpop.f32.mrb[21].mxu1 }
 0x7b3   :  { %v1824_v42 = vpop.f32.mrb[14].mxu0  ;;  %v2168_v46 = vld [vmem:[#allocation7 + $0xb8] sm:$0xff] }
 0x7b4   :  { %v6753_v44 = vpack.i.bf16 %v1824_v42, %v1751_v33  ;;  %v5878_v45 = vpop.f32.mrb[15].mxu0  ;;  %v2157_v33 = vld [vmem:[#allocation7 + $0x60] sm:$0xff] }
 0x7b5   :  { %v6297_v35 = vpack.c.bf16 %v2157_v33, %v2153_v32  ;;  %v2161_v42 = vld [vmem:[#allocation7 + $0x80] sm:$0xff]  ;;  %v2187_v33 = vld [vmem:[#allocation7 + $0x150] sm:$0xff] }
 0x7b6   :  { %6754 = vrot.lane.b32.xlu1 %v6753_v44, %s7148_s20  ;;  %v2165_v45 = vld [vmem:[#allocation7 + $0xa0] sm:$0xff] }
 0x7b7   :  { %v2189_v32 = vld [vmem:[#allocation7 + $0x160] sm:$0xff] }
 0x7b8   :  { %v1970_v47 = vpop.f32.mrb[16].mxu0 }
 0x7b9   :  { %v6758_v48 = vpack.i.bf16 %v1970_v47, %v1897_v43  ;;  %v5888_v49 = vpop.f32.mrb[17].mxu0  ;;  %v2164_v43 = vld [vmem:[#allocation7 + $0x98] sm:$0xff]  ;;  %v2163_v47 = vld [vmem:[#allocation7 + $0x90] sm:$0xff] }
 0x7ba   :  { %v6331_v44 = vpack.c.bf16 %v2168_v46, %v2164_v43  ;;  %v6301_v49 = vpack.c.bf16 %v2165_v45, %v2161_v42  ;;  %v2200_v43 = vld [vmem:[#allocation7 + $0x1b8] sm:$0xff]  ;;  %v2193_v46 = vld [vmem:[#allocation7 + $0x180] sm:$0xff]  ;;  %v2195_v45 = vld [vmem:[#allocation7 + $0x190] sm:$0xff] }
 0x7bb   :  { %6759 = vrot.lane.b32.xlu0 %v6758_v48, %s7147_s7  ;;  %v2167_v48 = vld [vmem:[#allocation7 + $0xb0] sm:$0xff] }
 0x821   :  { %v6750_v50 = vpop.permute.xlu0 %6749 }
 0x822   :  { %v6752_v52 = vunpack.i.h.bf16 %v6750_v50  ;;  %v6751_v53 = vunpack.i.l.bf16 %v6750_v50  ;;  %v6333_v50 = vpack.c.bf16 %v2167_v48, %v2163_v47  ;;  %v2199_v47 = vld [vmem:[#allocation7 + $0x1b0] sm:$0xff] }
 0x824   :  { %v1999_v57 = vsel %vm692_vm8, %v1532_v16, %v6752_v52  ;;  %v1998_v61 = vsel %vm692_vm8, %v1459_v7, %v6751_v53  ;;  %v2148_v16 = vld [vmem:[#allocation7 + $0x18] sm:$0xff]  ;;  %v6291_v7 = vpack.c.bf16 %v2150_v15, %v2146_v13  ;;  %v2182_v13 = vld [vmem:[#allocation7 + $0x128] sm:$0xff] }
 0x825   :  { %v6323_v20 = vpack.c.bf16 %v2152_v8, %v2148_v16  ;;  %v2180_v15 = vld [vmem:[#allocation7 + $0x118] sm:$0xff]  ;;  %v2177_v8 = vld [vmem:[#allocation7 + $0x100] sm:$0xff] }
 0x826   :  { %6292 = vmatprep.subr.bf16.mxu0 %v6291_v7  ;;  %v2184_v7 = vld [vmem:[#allocation7 + $0x138] sm:$0xff] }
 0x827   :  { %6324 = vmatprep.subr.bf16.mxu1 %v6323_v20  ;;  %6294 = vmatpush1.bf16.msra.mxu0 %v6293_v21  ;;  %v6339_v19 = vpack.c.bf16 %v2184_v7, %v2180_v15  ;;  %v6309_v20 = vpack.c.bf16 %v2181_v18, %v2177_v8  ;;  %v2179_v21 = vld [vmem:[#allocation7 + $0x110] sm:$0xff]  ;;  %v5360_v7 = vld [vmem:[%s8126_s13] ss:$0 sm:$0xff] }
 0x828   :  { %v6755_v51 = vpop.permute.xlu1 %6754 }
 0x829   :  { %v6757_v54 = vunpack.i.h.bf16 %v6755_v51  ;;  %v6756_v55 = vunpack.i.l.bf16 %v6755_v51 }
 0x82b   :  { %v2000_v62 = vsel %vm237_vm2, %v1998_v61, %v6756_v55  ;;  %v2001_v63 = vsel %vm237_vm2, %v1999_v57, %v6757_v54  ;;  %v2174_v61 = vld [vmem:[#allocation7 + $0xe8] sm:$0xff] }
 0x82d   :  { %v6760_v56 = vpop.permute.xlu0 %6759 }
 0x82e   :  { %v6762_v58 = vunpack.i.h.bf16 %v6760_v56  ;;  %v6761_v59 = vunpack.i.l.bf16 %v6760_v56 }
 0x830   :  { %v2003_v1 = vsel %vm2002_vm10, %v2000_v62, %v6761_v59  ;;  %v2004_v2 = vsel %vm2002_vm10, %v2001_v63, %v6762_v58  ;;  %v2170_v59 = vld [vmem:[#allocation7 + $0xc8] sm:$0xff]  ;;  %v2172_v62 = vld [vmem:[#allocation7 + $0xd8] sm:$0xff] }
 0x831   :  { %5921 = vmatprep.mubr.f32.mxu1 %v2003_v1  ;;  %v6303_v63 = vpack.c.bf16 %v2174_v61, %v2170_v59  ;;  %v2176_v1 = vld [vmem:[#allocation7 + $0xf8] sm:$0xff]  ;;  %v2203_v61 = vld [vmem:[#allocation7 + $0x1d0] sm:$0xff] }
 0x832   :  { %5922 = vmatmul.mubr.f32.vlgmr.msra.gmra.mrb[22].mxu1 %v2004_v2  ;;  %v2169_v2 = vld [vmem:[#allocation7 + $0xc0] sm:$0xff] }
 0x833   :  { %2372 = vmatprep.mubr.f32.mxu1 %v7145_v9  ;;  %6326 = vmatpush1.bf16.msra.mxu1 %v6325_v25  ;;  %v2190_v25 = vld [vmem:[#allocation7 + $0x168] sm:$0xff] }
 0x905   :  { %v5923_v4 = vpop.f32.mrb[22].mxu1 }
 0x906   :  { %v2100_v5 = vadd.f32 %v5923_v4, %v5358_v3  ;;  %v2094_v6 = vpop.f32.mrb[23].mxu1  ;;  %v6335_v4 = vpack.c.bf16 %v2176_v1, %v2172_v62  ;;  %v2207_v62 = vld [vmem:[#allocation7 + $0x1f0] sm:$0xff] }
 0x907   :  { %v2095_v10 = vadd.f32 %v5358_v3, %v2094_v6  ;;  %v2173_v3 = vld [vmem:[#allocation7 + $0xe0] sm:$0xff]  ;;  %v2171_v6 = vld [vmem:[#allocation7 + $0xd0] sm:$0xff]  ;;  %v6353_v1 = vpack.c.bf16 %v2207_v62, %v2203_v61  ;;  %v2480_v61 = vld [vmem:[#allocation9 + $0xb8] sm:$0xff] }
 0x908   :  { %v2104_v11 = vadd.f32 %v2100_v5, %v7526_v17  ;;  %v2156_v17 = vld [vmem:[#allocation7 + $0x58] sm:$0xff]  ;;  %v6305_v5 = vpack.c.bf16 %v2173_v3, %v2169_v2  ;;  %v2511_v62 = vld [vmem:[#allocation9 + $0x1b0] sm:$0xff] }
 0x909   :  { %v2103_v12 = vadd.f32 %v2095_v10, %v7520_v14  ;;  %v6295_v14 = vpack.c.bf16 %v2158_v27, %v2154_v24  ;;  %v6327_v31 = vpack.c.bf16 %v2160_v30, %v2156_v17  ;;  %v2175_v10 = vld [vmem:[#allocation7 + $0xf0] sm:$0xff]  ;;  %v6341_v24 = vpack.c.bf16 %v2183_v22, %v2179_v21  ;;  %v2188_v27 = vld [vmem:[#allocation7 + $0x158] sm:$0xff]  ;;  %v2505_v21 = vld [vmem:[#allocation9 + $0x180] sm:$0xff] }
 0x90a   :  { %2109 = vadd.xlane.f32.xlu0 %v2104_v11  ;;  %v2192_v17 = vld [vmem:[#allocation7 + $0x178] sm:$0xff]  ;;  %v6311_v30 = vpack.c.bf16 %v2190_v25, %v2186_v23  ;;  %v2506_v23 = vld [vmem:[#allocation9 + $0x188] sm:$0xff] }
 0x90b   :  { %2107 = vadd.xlane.f32.xlu1 %v2103_v12  ;;  %6296 = vmatprep.subr.bf16.mxu0 %v6295_v14  ;;  %v6343_v14 = vpack.c.bf16 %v2192_v17, %v2188_v27  ;;  %v2458_v25 = vld [vmem:[#allocation9 + $0x8] sm:$0xff]  ;;  %v6387_v27 = vpack.c.bf16 %v2506_v23, %v2505_v21  ;;  %v2497_v21 = vld [vmem:[#allocation9 + $0x140] sm:$0xff] }
 0x90c   :  { %6328 = vmatprep.subr.bf16.mxu1 %v6327_v31  ;;  %6298 = vmatpush1.bf16.msra.mxu0 %v6297_v35  ;;  %v2185_v31 = vld [vmem:[#allocation7 + $0x140] sm:$0xff]  ;;  %v2191_v35 = vld [vmem:[#allocation7 + $0x170] sm:$0xff] }
 0x90d   :  { %6330 = vmatpush1.bf16.msra.mxu1 %v6329_v40  ;;  %6300 = vmatprep.subr.bf16.mxu0 %v6299_v41  ;;  %v6313_v34 = vpack.c.bf16 %v2189_v32, %v2185_v31  ;;  %v6345_v39 = vpack.c.bf16 %v2191_v35, %v2187_v33  ;;  %v6315_v40 = vpack.c.bf16 %v2198_v38, %v2194_v36  ;;  %v2196_v41 = vld [vmem:[#allocation7 + $0x198] sm:$0xff]  ;;  %v2475_v32 = vld [vmem:[#allocation9 + $0x90] sm:$0xff] }
 0x90e   :  { %6332 = vmatprep.subr.bf16.mxu1 %v6331_v44  ;;  %v6347_v42 = vpack.c.bf16 %v2200_v43, %v2196_v41  ;;  %v2197_v44 = vld [vmem:[#allocation7 + $0x1a0] sm:$0xff]  ;;  %v2476_v33 = vld [vmem:[#allocation9 + $0x98] sm:$0xff]  ;;  %v2459_v38 = vld [vmem:[#allocation9 + $0x10] sm:$0xff] }
 0x90f   :  { %v6317_v48 = vpack.c.bf16 %v2197_v44, %v2193_v46  ;;  %v6359_v35 = vpack.c.bf16 %v2476_v33, %v2475_v32  ;;  %v2508_v36 = vld [vmem:[#allocation9 + $0x198] sm:$0xff]  ;;  %v2491_v43 = vld [vmem:[#allocation9 + $0x110] sm:$0xff]  ;;  %v2477_v44 = vld [vmem:[#allocation9 + $0xa0] sm:$0xff] }
 0x910   :  { %6302 = vmatpush1.bf16.msra.mxu0 %v6301_v49  ;;  %v2202_v49 = vld [vmem:[#allocation7 + $0x1c8] sm:$0xff]  ;;  %v2492_v46 = vld [vmem:[#allocation9 + $0x118] sm:$0xff] }
 0x911   :  { %6334 = vmatpush1.bf16.msra.mxu1 %v6333_v50  ;;  %6304 = vmatprep.subr.bf16.mxu0 %v6303_v63  ;;  %v2206_v50 = vld [vmem:[#allocation7 + $0x1e8] sm:$0xff] }
 0x912   :  { %6336 = vmatprep.subr.bf16.mxu1 %v6335_v4 }
 0x914   :  { %6306 = vmatpush1.bf16.msra.mxu0 %v6305_v5 }
 0x997   :  { %v2110_v51 = vpop.xlane.xlu0 %2109 }
 0x998   :  { %v2112_v52 = vmul.f32 0.0078125, %v2110_v51  ;;  %v2108_v53 = vpop.xlane.xlu1 %2107  ;;  %v2204_v51 = vld [vmem:[#allocation7 + $0x1d8] sm:$0xff] }
 0x999   :  { %v2111_v54 = vmul.f32 0.0078125, %v2108_v53  ;;  %v6319_v53 = vpack.c.bf16 %v2206_v50, %v2202_v49  ;;  %v2510_v49 = vld [vmem:[#allocation9 + $0x1a8] sm:$0xff]  ;;  %v2461_v50 = vld [vmem:[#allocation9 + $0x20] sm:$0xff] }
 0x99a   :  { %v7693_v55 = vsub.f32 %v2104_v11, %v2112_v52  ;;  %v6337_v11 = vpack.c.bf16 %v2175_v10, %v2171_v6  ;;  %v6349_v52 = vpack.c.bf16 %v2199_v47, %v2195_v45  ;;  %v2478_v45 = vld [vmem:[#allocation9 + $0xa8] sm:$0xff]  ;;  %v2509_v47 = vld [vmem:[#allocation9 + $0x1a0] sm:$0xff] }
 0x99b   :  { %v7695_v56 = vsub.f32 %v2103_v12, %v2111_v54  ;;  %v2178_v12 = vld [vmem:[#allocation7 + $0x108] sm:$0xff]  ;;  %v2208_v54 = vld [vmem:[#allocation7 + $0x1f8] sm:$0xff] }
 0x99c   :  { %v2116_v57 = vmul.f32 %v7693_v55, %v7693_v55  ;;  %6338 = vmatpush1.bf16.msra.mxu1 %v6337_v11  ;;  %v6307_v16 = vpack.c.bf16 %v2182_v13, %v2178_v12  ;;  %v6351_v59 = vpack.c.bf16 %v2208_v54, %v2204_v51  ;;  %v5359_v13 = vld [vmem:[%s8125_s12] ss:$0 sm:$0xff]  ;;  %v2462_v51 = vld [vmem:[#allocation9 + $0x28] sm:$0xff]  ;;  %v2493_v54 = vld [vmem:[#allocation9 + $0x120] sm:$0xff] }
 0x99d   :  { %v2115_v58 = vmul.f32 %v7695_v56, %v7695_v56  ;;  %6340 = vmatprep.subr.bf16.mxu1 %v6339_v19 }
 0x99e   :  { %2119 = vadd.xlane.f32.xlu1 %v2116_v57  ;;  %6308 = vmatprep.subr.bf16.mxu0 %v6307_v16  ;;  %v2201_v57 = vld [vmem:[#allocation7 + $0x1c0] sm:$0xff] }
 0x99f   :  { %2117 = vadd.xlane.f32.xlu0 %v2115_v58  ;;  %6310 = vmatpush1.bf16.msra.mxu0 %v6309_v20  ;;  %v2205_v58 = vld [vmem:[#allocation7 + $0x1e0] sm:$0xff] }
 0x9a0   :  { %6342 = vmatpush1.bf16.msra.mxu1 %v6341_v24  ;;  %6312 = vmatprep.subr.bf16.mxu0 %v6311_v30  ;;  %v6321_v63 = vpack.c.bf16 %v2205_v58, %v2201_v57  ;;  %v2457_v24 = vld [vmem:[#allocation9] sm:$0xff]  ;;  %v2494_v57 = vld [vmem:[#allocation9 + $0x128] sm:$0xff] }
 0x9a1   :  { %6344 = vmatprep.subr.bf16.mxu1 %v6343_v14  ;;  %v6357_v17 = vpack.c.bf16 %v2458_v25, %v2457_v24  ;;  %v2489_v30 = vld [vmem:[#allocation9 + $0x100] sm:$0xff]  ;;  %v2490_v14 = vld [vmem:[#allocation9 + $0x108] sm:$0xff]  ;;  %v6397_v58 = vpack.c.bf16 %v2494_v57, %v2493_v54  ;;  %v2483_v24 = vld [vmem:[#allocation9 + $0xd0] sm:$0xff] }
 0x9a2   :  { %v6389_v31 = vpack.c.bf16 %v2490_v14, %v2489_v30  ;;  %v2484_v25 = vld [vmem:[#allocation9 + $0xd8] sm:$0xff]  ;;  %v2467_v14 = vld [vmem:[#allocation9 + $0x50] sm:$0xff] }
 0x9a3   :  { %6314 = vmatpush1.bf16.msra.mxu0 %v6313_v34  ;;  %v2507_v34 = vld [vmem:[#allocation9 + $0x190] sm:$0xff]  ;;  %v2516_v30 = vld [vmem:[#allocation9 + $0x1d8] sm:$0xff] }
 0x9a4   :  { %6346 = vmatpush1.bf16.msra.mxu1 %v6345_v39  ;;  %6316 = vmatprep.subr.bf16.mxu0 %v6315_v40  ;;  %v2460_v39 = vld [vmem:[#allocation9 + $0x18] sm:$0xff]  ;;  %v6391_v40 = vpack.c.bf16 %v2508_v36, %v2507_v34  ;;  %v2499_v34 = vld [vmem:[#allocation9 + $0x150] sm:$0xff] }
 0x9a5   :  { %6348 = vmatprep.subr.bf16.mxu1 %v6347_v42  ;;  %v6361_v41 = vpack.c.bf16 %v2460_v39, %v2459_v38  ;;  %v6393_v42 = vpack.c.bf16 %v2492_v46, %v2491_v43  ;;  %v2485_v38 = vld [vmem:[#allocation9 + $0xe0] sm:$0xff]  ;;  %v2486_v39 = vld [vmem:[#allocation9 + $0xe8] sm:$0xff]  ;;  %v2520_v54 = vld [vmem:[#allocation9 + $0x1f8] sm:$0xff] }
 0x9a6   :  { %v2518_v43 = vld [vmem:[#allocation9 + $0x1e8] sm:$0xff]  ;;  %v2469_v46 = vld [vmem:[#allocation9 + $0x60] sm:$0xff]  ;;  %v2471_v57 = vld [vmem:[#allocation9 + $0x70] sm:$0xff] }
 0x9a7   :  { %6318 = vmatpush1.bf16.msra.mxu0 %v6317_v48  ;;  %v6363_v48 = vpack.c.bf16 %v2478_v45, %v2477_v44 }
 0x9a8   :  { %6350 = vmatpush1.bf16.msra.mxu1 %v6349_v52  ;;  %6320 = vmatprep.subr.bf16.mxu0 %v6319_v53  ;;  %v6395_v52 = vpack.c.bf16 %v2510_v49, %v2509_v47  ;;  %v6365_v53 = vpack.c.bf16 %v2462_v51, %v2461_v50  ;;  %v2501_v47 = vld [vmem:[#allocation9 + $0x160] sm:$0xff]  ;;  %v2487_v50 = vld [vmem:[#allocation9 + $0xf0] sm:$0xff]  ;;  %v2488_v51 = vld [vmem:[#allocation9 + $0xf8] sm:$0xff] }
 0x9a9   :  { %6352 = vmatprep.subr.bf16.mxu1 %v6351_v59  ;;  %v2479_v59 = vld [vmem:[#allocation9 + $0xb0] sm:$0xff] }
 0x9ab   :  { %6322 = vmatpush1.bf16.msra.mxu0 %v6321_v63  ;;  %v6367_v63 = vpack.c.bf16 %v2480_v61, %v2479_v59 }
 0x9ac   :  { %6354 = vmatpush1.bf16.msra.mxu1 %v6353_v1  ;;  %v2512_v1 = vld [vmem:[#allocation9 + $0x1b8] sm:$0xff] }
 0x9ad   :  { %6388 = vmatprep.subr.bf16.mxu1 %v6387_v27  ;;  %v2515_v27 = vld [vmem:[#allocation9 + $0x1d0] sm:$0xff] }
 0x9ae   :  { %v6407_v32 = vpack.c.bf16 %v2516_v30, %v2515_v27 }
 0xa2b   :  { %v2120_v2 = vpop.xlane.xlu1 %2119 }
 0xa2c   :  { %v2122_v3 = vmul.f32 0.0078125, %v2120_v2  ;;  %v2118_v4 = vpop.xlane.xlu0 %2117  ;;  %v2463_v2 = vld [vmem:[#allocation9 + $0x30] sm:$0xff] }
 0xa2d   :  { %v2121_v5 = vmul.f32 0.0078125, %v2118_v4  ;;  %v6399_v4 = vpack.c.bf16 %v2512_v1, %v2511_v62  ;;  %v2503_v62 = vld [vmem:[#allocation9 + $0x170] sm:$0xff] }
 0xa2e   :  { %v2124_v6 = vadd.f32 1e-12, %v2122_v3  ;;  %v2464_v3 = vld [vmem:[#allocation9 + $0x38] sm:$0xff] }
 0xa2f   :  { %v2123_v10 = vadd.f32 1e-12, %v2121_v5  ;;  %v6369_v5 = vpack.c.bf16 %v2464_v3, %v2463_v2  ;;  %v2209_v2 = vld [vmem:[%s8128_s15] sm:$0xf]  ;;  %v2225_v3 = vsub.s32 3, %v7490_v26 }
 0xa30   :  { %6814 = vrsqrt.f32 %v2124_v6  ;;  %v2495_v6 = vld [vmem:[#allocation9 + $0x130] sm:$0xff] }
 0xa31   :  { %6816 = vrsqrt.f32 %v2123_v10  ;;  %v2496_v10 = vld [vmem:[#allocation9 + $0x138] sm:$0xff] }
 0xa3a   :  { %v6815_v11 = vpop.eup %6814 }
 0xa3b   :  { %v6817_v12 = vpop.eup %6816  ;;  %v2128_v16 = vmul.f32 %v6815_v11, %v7693_v55  ;;  %v2473_v55 = vld [vmem:[#allocation9 + $0x80] sm:$0xff]  ;;  %v6401_v11 = vpack.c.bf16 %v2496_v10, %v2495_v6  ;;  %v2218_v6 = vrot.slane %v2209_v2, %v7496_v29  ;;  %v2226_v10 = vrot.slane %v2209_v2, %v2225_v3 }
 0xa3c   :  { %v2127_v15 = vmul.f32 %v6817_v12, %v7695_v56  ;;  %v2474_v56 = vld [vmem:[#allocation9 + $0x88] sm:$0xff]  ;;  %v2481_v12 = vld [vmem:[#allocation9 + $0xc0] sm:$0xff] }
 0xa3d   :  { %v2136_v19 = vmul.f32 %v5359_v13, %v2128_v16  ;;  %v6355_v22 = vpack.c.bf16 %v2474_v56, %v2473_v55 }
 0xa3e   :  { %v2135_v8 = vmul.f32 %v5359_v13, %v2127_v15  ;;  %v2482_v13 = vld [vmem:[#allocation9 + $0xc8] sm:$0xff]  ;;  %v2513_v15 = vld [vmem:[#allocation9 + $0x1c0] sm:$0xff] }
 0xa3f   :  { %v7715_v20 = vadd.f32 %v5360_v7, %v2136_v19  ;;  %6356 = vmatprep.subr.bf16.mxu0 %v6355_v22  ;;  %v6371_v16 = vpack.c.bf16 %v2482_v13, %v2481_v12  ;;  %v2466_v19 = vld [vmem:[#allocation9 + $0x48] sm:$0xff] }
 0xa40   :  { %v7709_v18 = vadd.f32 %v5360_v7, %v2135_v8  ;;  %v2514_v7 = vld [vmem:[#allocation9 + $0x1c8] sm:$0xff]  ;;  %v2465_v8 = vld [vmem:[#allocation9 + $0x40] sm:$0xff] }
 0xa41   :  { %v6403_v55 = vpack.c.bf16 %v2514_v7, %v2513_v15  ;;  %v6373_v56 = vpack.c.bf16 %v2466_v19, %v2465_v8  ;;  %v2498_v22 = vld [vmem:[#allocation9 + $0x148] sm:$0xff] }
 0xa42   :  { %2296 = vmatmul.mubr.f32.vlgmr.msra.gmra.mrb[18].mxu0 %v7709_v18  ;;  %2373 = vmatmul.mubr.f32.vlgmr.msra.gmra.mrb[24].mxu1 %v7709_v18  ;;  %v6405_v23 = vpack.c.bf16 %v2498_v22, %v2497_v21 }
 0xa43   :  { %2301 = vmatprep.mubr.f32.mxu0 %v7145_v9  ;;  %2378 = vmatprep.mubr.f32.mxu1 %v7145_v9 }
 0xa44   :  { %6358 = vmatpush3.bf16.msra.mxu0 %v6357_v17  ;;  %6390 = vmatpush3.bf16.msra.mxu1 %v6389_v31  ;;  %v6375_v17 = vpack.c.bf16 %v2484_v25, %v2483_v24  ;;  %v2468_v31 = vld [vmem:[#allocation9 + $0x58] sm:$0xff] }
 0xa45   :  { %6360 = vmatprep.subr.bf16.mxu0 %v6359_v35  ;;  %6392 = vmatprep.subr.bf16.mxu1 %v6391_v40  ;;  %v6377_v33 = vpack.c.bf16 %v2468_v31, %v2467_v14  ;;  %v2500_v35 = vld [vmem:[#allocation9 + $0x158] sm:$0xff]  ;;  %v2517_v40 = vld [vmem:[#allocation9 + $0x1e0] sm:$0xff] }
 0xa46   :  { %2302 = vmatmul.mubr.f32.gmra.mrb[20].mxu0 %v7715_v20  ;;  %2379 = vmatmul.mubr.f32.gmra.mrb[26].mxu1 %v7715_v20  ;;  %v6409_v36 = vpack.c.bf16 %v2500_v35, %v2499_v34  ;;  %v6411_v44 = vpack.c.bf16 %v2518_v43, %v2517_v40 }
 0xa48   :  { %6362 = vmatpush3.bf16.msra.mxu0 %v6361_v41  ;;  %6394 = vmatpush3.bf16.msra.mxu1 %v6393_v42  ;;  %v6379_v41 = vpack.c.bf16 %v2486_v39, %v2485_v38  ;;  %v2470_v42 = vld [vmem:[#allocation9 + $0x68] sm:$0xff] }
 0xa49   :  { %6364 = vmatprep.subr.bf16.mxu0 %v6363_v48  ;;  %6396 = vmatprep.subr.bf16.mxu1 %v6395_v52  ;;  %v6381_v45 = vpack.c.bf16 %v2470_v42, %v2469_v46  ;;  %v2502_v48 = vld [vmem:[#allocation9 + $0x168] sm:$0xff]  ;;  %v2519_v52 = vld [vmem:[#allocation9 + $0x1f0] sm:$0xff] }
 0xa4a   :  { %v6413_v49 = vpack.c.bf16 %v2502_v48, %v2501_v47  ;;  %v6415_v59 = vpack.c.bf16 %v2520_v54, %v2519_v52 }
 0xa4c   :  { %6366 = vmatpush3.bf16.msra.mxu0 %v6365_v53  ;;  %6398 = vmatpush3.bf16.msra.mxu1 %v6397_v58  ;;  %v6383_v53 = vpack.c.bf16 %v2488_v51, %v2487_v50  ;;  %v2472_v58 = vld [vmem:[#allocation9 + $0x78] sm:$0xff] }
 0xa4d   :  { %6368 = vmatprep.subr.bf16.mxu0 %v6367_v63  ;;  %6400 = vmatprep.subr.bf16.mxu1 %v6399_v4  ;;  %v6385_v61 = vpack.c.bf16 %v2472_v58, %v2471_v57  ;;  %v2504_v63 = vld [vmem:[#allocation9 + $0x178] sm:$0xff]  ;;  %v2214_v4 = vrot.slane %v2209_v2, %v7493_v28 }
 0xa4e   :  { %v6417_v1 = vpack.c.bf16 %v2504_v63, %v2503_v62 }
 0xa50   :  { %6370 = vmatpush3.bf16.msra.mxu0 %v6369_v5  ;;  %6402 = vmatpush3.bf16.msra.mxu1 %v6401_v11  ;;  %v2222_v5 = vrot.slane %v2209_v2, %v7567_v37 }
 0xa51   :  { %6372 = vmatprep.subr.bf16.mxu0 %v6371_v16  ;;  %6404 = vmatprep.subr.bf16.mxu1 %v6403_v55 }
 0xa54   :  { %6374 = vmatpush3.bf16.msra.mxu0 %v6373_v56  ;;  %6406 = vmatpush3.bf16.msra.mxu1 %v6405_v23 }
 0xa55   :  { %6376 = vmatprep.subr.bf16.mxu0 %v6375_v17  ;;  %6408 = vmatprep.subr.bf16.mxu1 %v6407_v32 }
 0xa58   :  { %6378 = vmatpush3.bf16.msra.mxu0 %v6377_v33  ;;  %6410 = vmatpush3.bf16.msra.mxu1 %v6409_v36 }
 0xa59   :  { %6380 = vmatprep.subr.bf16.mxu0 %v6379_v41  ;;  %6412 = vmatprep.subr.bf16.mxu1 %v6411_v44 }
 0xa5c   :  { %6382 = vmatpush3.bf16.msra.mxu0 %v6381_v45  ;;  %6414 = vmatpush3.bf16.msra.mxu1 %v6413_v49 }
 0xa5d   :  { %6384 = vmatprep.subr.bf16.mxu0 %v6383_v53  ;;  %6416 = vmatprep.subr.bf16.mxu1 %v6415_v59 }
 0xa60   :  { %6386 = vmatpush3.bf16.msra.mxu0 %v6385_v61  ;;  %6418 = vmatpush3.bf16.msra.mxu1 %v6417_v1 }
 0xb15   :  { %v2297_v11 = vpop.f32.mrb[18].mxu0  ;;  %v2374_v12 = vpop.f32.mrb[24].mxu1 }
 0xb16   :  { %v7728_v13 = vadd.f32 %v2297_v11, %v2214_v4  ;;  %v7730_v15 = vadd.f32 %v2374_v12, %v2222_v5  ;;  %v2299_v16 = vpop.f32.mrb[19].mxu0  ;;  %v2376_v7 = vpop.f32.mrb[25].mxu1 }
 0xb17   :  { %v7732_v8 = vadd.f32 %v2299_v16, %v2218_v6  ;;  %v7734_v19 = vadd.f32 %v2376_v7, %v2226_v10 }
 0xb18   :  { %v2385_v55 = vmul.f32 %v7728_v13, %v7728_v13  ;;  %v2387_v56 = vmul.f32 %v7730_v15, %v7730_v15 }
 0xb19   :  { %v2386_v21 = vmul.f32 %v7732_v8, %v7732_v8  ;;  %v2388_v22 = vmul.f32 %v7734_v19, %v7734_v19  ;;  %v2303_v23 = vpop.f32.mrb[20].mxu0  ;;  %v2380_v24 = vpop.f32.mrb[26].mxu1 }
 0xb1a   :  { %v2393_v25 = vmul.f32 %v2385_v55, %v7728_v13  ;;  %v2395_v27 = vmul.f32 %v2387_v56, %v7730_v15  ;;  %v7746_v17 = vadd.f32 %v2303_v23, %v2214_v4  ;;  %v7748_v30 = vadd.f32 %v2380_v24, %v2222_v5  ;;  %v2305_v14 = vpop.f32.mrb[21].mxu0  ;;  %v2382_v31 = vpop.f32.mrb[27].mxu1 }
 0xb1b   :  { %v2394_v32 = vmul.f32 %v2386_v21, %v7732_v8  ;;  %v2396_v33 = vmul.f32 %v2388_v22, %v7734_v19  ;;  %v7752_v34 = vadd.f32 %v2305_v14, %v2218_v6  ;;  %v7754_v35 = vadd.f32 %v2382_v31, %v2226_v10 }
 0xb1c   :  { %v2401_v36 = vmul.f32 0.044715, %v2393_v25  ;;  %v2403_v38 = vmul.f32 0.044715, %v2395_v27  ;;  %v2389_v39 = vmul.f32 %v7746_v17, %v7746_v17  ;;  %v2391_v40 = vmul.f32 %v7748_v30, %v7748_v30 }
 0xb1d   :  { %v2402_v41 = vmul.f32 0.044715, %v2394_v32  ;;  %v2404_v43 = vmul.f32 0.044715, %v2396_v33  ;;  %v2390_v46 = vmul.f32 %v7752_v34, %v7752_v34  ;;  %v2392_v42 = vmul.f32 %v7754_v35, %v7754_v35 }
 0xb1e   :  { %v2409_v44 = vadd.f32 %v2401_v36, %v7728_v13  ;;  %v2411_v45 = vadd.f32 %v2403_v38, %v7730_v15  ;;  %v2397_v47 = vmul.f32 %v2389_v39, %v7746_v17  ;;  %v2399_v48 = vmul.f32 %v2391_v40, %v7748_v30 }
 0xb1f   :  { %v2410_v49 = vadd.f32 %v2402_v41, %v7732_v8  ;;  %v2412_v50 = vadd.f32 %v2404_v43, %v7734_v19  ;;  %v2398_v51 = vmul.f32 %v2390_v46, %v7752_v34  ;;  %v2400_v52 = vmul.f32 %v2392_v42, %v7754_v35 }
 0xb20   :  { %v2417_v53 = vmul.f32 0.7978846, %v2409_v44  ;;  %v2419_v54 = vmul.f32 0.7978846, %v2411_v45  ;;  %v2405_v57 = vmul.f32 0.044715, %v2397_v47 }
 0xb21   :  { %v2418_v58 = vmul.f32 0.7978846, %v2410_v49  ;;  %v2420_v59 = vmul.f32 0.7978846, %v2412_v50  ;;  %v2407_v61 = vmul.f32 0.044715, %v2399_v48 }
 0xb22   :  { %6818 = vtanh.f32 %v2417_v53  ;;  %v2413_v62 = vadd.f32 %v2405_v57, %v7746_v17  ;;  %v2406_v63 = vmul.f32 0.044715, %v2398_v51  ;;  %v2408_v1 = vmul.f32 0.044715, %v2400_v52  ;;  %v5361_v53 = vld [vmem:[%s8130_s17] ss:$0 sm:$0xff] }
 0xb23   :  { %6820 = vtanh.f32 %v2419_v54  ;;  %v2415_v2 = vadd.f32 %v2407_v61, %v7748_v30 }
 0xb24   :  { %v2421_v4 = vmul.f32 0.7978846, %v2413_v62  ;;  %v2414_v5 = vadd.f32 %v2406_v63, %v7752_v34  ;;  %v2416_v6 = vadd.f32 %v2408_v1, %v7754_v35  ;;  %6822 = vtanh.f32 %v2418_v58 }
 0xb25   :  { %v2423_v10 = vmul.f32 0.7978846, %v2415_v2  ;;  %6824 = vtanh.f32 %v2420_v59 }
 0xb26   :  { %v2422_v11 = vmul.f32 0.7978846, %v2414_v5  ;;  %v2424_v12 = vmul.f32 0.7978846, %v2416_v6  ;;  %6826 = vtanh.f32 %v2421_v4 }
 0xb27   :  { %6828 = vtanh.f32 %v2423_v10  ;;  %v2722_v10 = vld [vmem:[#allocation4 + $0x188] sm:$0xff] }
 0xb28   :  { %6830 = vtanh.f32 %v2422_v11  ;;  %v2725_v11 = vld [vmem:[#allocation4 + $0x1a0] sm:$0xff] }
 0xb29   :  { %6832 = vtanh.f32 %v2424_v12  ;;  %v2721_v12 = vld [vmem:[#allocation4 + $0x180] sm:$0xff] }
 0xb2c   :  { %v6819_v16 = vpop.eup %6818 }
 0xb2d   :  { %v6821_v7 = vpop.eup %6820  ;;  %v2433_v55 = vadd.f32 1.0, %v6819_v16  ;;  %v6419_v16 = vpack.c.bf16 %v2725_v11, %v2722_v10  ;;  %v2754_v10 = vld [vmem:[#allocation4 + $0x288] sm:$0xff] }
 0xb2e   :  { %v6823_v56 = vpop.eup %6822  ;;  %v2435_v21 = vadd.f32 1.0, %v6821_v7  ;;  %v2724_v7 = vld [vmem:[#allocation4 + $0x198] sm:$0xff] }
 0xb2f   :  { %v6825_v22 = vpop.eup %6824  ;;  %v2434_v23 = vadd.f32 1.0, %v6823_v56  ;;  %v2441_v25 = vmul.f32 0.5, %v2433_v55  ;;  %v2728_v55 = vld [vmem:[#allocation4 + $0x1b8] sm:$0xff]  ;;  %v2731_v56 = vld [vmem:[#allocation4 + $0x1d0] sm:$0xff]  ;;  %6420 = vmatprep.subr.bf16.mxu0 %v6419_v16  ;;  %v2758_v16 = vld [vmem:[#allocation4 + $0x2a8] sm:$0xff] }
 0xb30   :  { %v6827_v24 = vpop.eup %6826  ;;  %v2436_v27 = vadd.f32 1.0, %v6825_v22  ;;  %v2443_v31 = vmul.f32 0.5, %v2435_v21  ;;  %v6421_v21 = vpack.c.bf16 %v2724_v7, %v2721_v12  ;;  %v6423_v22 = vpack.c.bf16 %v2731_v56, %v2728_v55  ;;  %v2761_v7 = vld [vmem:[#allocation4 + $0x2c0] sm:$0xff] }
 0xb31   :  { %v6829_v14 = vpop.eup %6828  ;;  %v2442_v32 = vmul.f32 0.5, %v2434_v23  ;;  %v2437_v33 = vadd.f32 1.0, %v6827_v24  ;;  %v2449_v46 = vmul.f32 %v2441_v25, %v7728_v13  ;;  %v2723_v23 = vld [vmem:[#allocation4 + $0x190] sm:$0xff]  ;;  %v2726_v24 = vld [vmem:[#allocation4 + $0x1a8] sm:$0xff]  ;;  %v2753_v55 = vld [vmem:[#allocation4 + $0x280] sm:$0xff]  ;;  %v6443_v56 = vpack.c.bf16 %v2761_v7, %v2758_v16 }
 0xb32   :  { %v6831_v36 = vpop.eup %6830  ;;  %v2444_v38 = vmul.f32 0.5, %v2436_v27  ;;  %v2439_v39 = vadd.f32 1.0, %v6829_v14  ;;  %v2451_v47 = vmul.f32 %v2443_v31, %v7730_v15  ;;  %v2727_v25 = vld [vmem:[#allocation4 + $0x1b0] sm:$0xff]  ;;  %v6451_v27 = vpack.c.bf16 %v2726_v24, %v2723_v23  ;;  %v2734_v14 = vld [vmem:[#allocation4 + $0x1e8] sm:$0xff]  ;;  %v2737_v31 = vld [vmem:[#allocation4 + $0x200] sm:$0xff] }
 0xb33   :  { %v6833_v40 = vpop.eup %6832  ;;  %v2450_v41 = vmul.f32 %v2442_v32, %v7732_v8  ;;  %v2438_v43 = vadd.f32 1.0, %v6831_v36  ;;  %v2445_v45 = vmul.f32 0.5, %v2437_v33  ;;  %v2729_v32 = vld [vmem:[#allocation4 + $0x1c0] sm:$0xff]  ;;  %v2732_v33 = vld [vmem:[#allocation4 + $0x1d8] sm:$0xff]  ;;  %v6427_v36 = vpack.c.bf16 %v2737_v31, %v2734_v14  ;;  %v2759_v14 = vld [vmem:[#allocation4 + $0x2b0] sm:$0xff] }
 0xb34   :  { %v2452_v42 = vmul.f32 %v2444_v38, %v7734_v19  ;;  %v2440_v44 = vadd.f32 1.0, %v6833_v40  ;;  %v2447_v49 = vmul.f32 0.5, %v2439_v39  ;;  %6452 = vmatprep.subr.bf16.mxu1 %v6451_v27  ;;  %v6455_v38 = vpack.c.bf16 %v2732_v33, %v2729_v32  ;;  %v2733_v39 = vld [vmem:[#allocation4 + $0x1e0] sm:$0xff]  ;;  %v2736_v40 = vld [vmem:[#allocation4 + $0x1f8] sm:$0xff]  ;;  %v2763_v32 = vld [vmem:[#allocation4 + $0x2d0] sm:$0xff] }
 0xb35   :  { %2592 = vmatprep.mubr.f32.mxu0 %v2450_v41  ;;  %v2446_v48 = vmul.f32 0.5, %v2438_v43  ;;  %v2453_v52 = vmul.f32 %v2445_v45, %v7746_v17  ;;  %v6429_v41 = vpack.c.bf16 %v2736_v40, %v2733_v39  ;;  %v2760_v23 = vld [vmem:[#allocation4 + $0x2b8] sm:$0xff]  ;;  %v2766_v33 = vld [vmem:[#allocation4 + $0x2e8] sm:$0xff]  ;;  %v2765_v39 = vld [vmem:[#allocation4 + $0x2e0] sm:$0xff] }
 0xb36   :  { %2667 = vmatprep.mubr.f32.mxu1 %v2452_v42  ;;  %2593 = vmatmul.mubr.f32.vlgmr.msra.gmra.mrb[22].mxu0 %v2449_v46  ;;  %v2448_v50 = vmul.f32 0.5, %v2440_v44  ;;  %v2455_v13 = vmul.f32 %v2447_v49, %v7748_v30  ;;  %v2768_v40 = vld [vmem:[#allocation4 + $0x2f8] sm:$0xff] }
 0xb37   :  { %2668 = vmatmul.mubr.f32.vlgmr.msra.gmra.mrb[28].mxu1 %v2451_v47  ;;  %v2454_v51 = vmul.f32 %v2446_v48, %v7752_v34  ;;  %6422 = vmatpush1.bf16.msra.mxu0 %v6421_v21  ;;  %v2756_v21 = vld [vmem:[#allocation4 + $0x298] sm:$0xff] }
 0xb38   :  { %v2456_v8 = vmul.f32 %v2448_v50, %v7754_v35  ;;  %6424 = vmatprep.subr.bf16.mxu0 %v6423_v22  ;;  %6454 = vmatpush3.bf16.msra.mxu1 %v6451_v27  ;;  %v2740_v50 = vld [vmem:[#allocation4 + $0x218] sm:$0xff]  ;;  %v2757_v22 = vld [vmem:[#allocation4 + $0x2a0] sm:$0xff]  ;;  %v6471_v24 = vpack.c.bf16 %v2756_v21, %v2753_v55 }
 0xb39   :  { %2597 = vmatprep.mubr.f32.mxu0 %v2454_v51  ;;  %6456 = vmatprep.subr.bf16.mxu1 %v6455_v38  ;;  %v2743_v51 = vld [vmem:[#allocation4 + $0x230] sm:$0xff]  ;;  %v2764_v27 = vld [vmem:[#allocation4 + $0x2d8] sm:$0xff] }
 0xb3a   :  { %2672 = vmatprep.mubr.f32.mxu1 %v2456_v8  ;;  %2598 = vmatmul.mubr.f32.gmra.mrb[24].mxu0 %v2453_v52  ;;  %v2735_v8 = vld [vmem:[#allocation4 + $0x1f0] sm:$0xff]  ;;  %v6431_v52 = vpack.c.bf16 %v2743_v51, %v2740_v50  ;;  %v5362_v51 = vld [vmem:[%s8131_s18] ss:$0 sm:$0xff] }
 0xb3b   :  { %2673 = vmatmul.mubr.f32.gmra.mrb[30].mxu1 %v2455_v13  ;;  %2851 = vmatprep.mubr.f32.mxu0 %v7145_v9  ;;  %v2738_v13 = vld [vmem:[#allocation4 + $0x208] sm:$0xff] }
 0xb3c   :  { %6458 = vmatpush3.bf16.msra.mxu1 %v6455_v38  ;;  %v6449_v38 = vpack.c.bf16 %v2766_v33, %v2763_v32 }
 0xc09   :  { %v5515_v15 = vpop.f32.mrb[22].mxu0 }
 0xc0a   :  { %v5553_v19 = vpop.f32.mrb[28].mxu1  ;;  %v5516_v54 = vpop.f32.mrb[23].mxu0 }
 0xc0b   :  { %v5517_v34 = vadd.f32 %v5516_v54, %v5515_v15  ;;  %v5554_v57 = vpop.f32.mrb[29].mxu1  ;;  %v2739_v15 = vld [vmem:[#allocation4 + $0x210] sm:$0xff] }
 0xc0c   :  { %v5555_v35 = vadd.f32 %v5554_v57, %v5553_v19  ;;  %v2742_v19 = vld [vmem:[#allocation4 + $0x228] sm:$0xff]  ;;  %v2749_v57 = vld [vmem:[#allocation4 + $0x260] sm:$0xff] }
 0xc0d   :  { %v2595_v58 = vadd.f32 %v5517_v34, %v5361_v53  ;;  %v5518_v17 = vpop.f32.mrb[24].mxu0  ;;  %v6433_v54 = vpack.c.bf16 %v2742_v19, %v2739_v15  ;;  %v2746_v34 = vld [vmem:[#allocation4 + $0x248] sm:$0xff] }
 0xc0e   :  { %v5556_v59 = vpop.f32.mrb[30].mxu1  ;;  %v5519_v61 = vpop.f32.mrb[25].mxu0 }
 0xc0f   :  { %v2670_v30 = vadd.f32 %v5555_v35, %v2595_v58  ;;  %v5520_v62 = vadd.f32 %v5519_v61, %v5518_v17  ;;  %v5557_v63 = vpop.f32.mrb[31].mxu1  ;;  %v2741_v35 = vld [vmem:[#allocation4 + $0x220] sm:$0xff]  ;;  %v6435_v58 = vpack.c.bf16 %v2749_v57, %v2746_v34  ;;  %v2744_v17 = vld [vmem:[#allocation4 + $0x238] sm:$0xff] }
 0xc10   :  { %v5558_v1 = vadd.f32 %v5557_v63, %v5556_v59  ;;  %v2745_v59 = vld [vmem:[#allocation4 + $0x240] sm:$0xff]  ;;  %v2748_v61 = vld [vmem:[#allocation4 + $0x258] sm:$0xff] }
 0xc11   :  { %v2600_v2 = vadd.f32 %v5520_v62, %v5361_v53  ;;  %v2678_v4 = vadd.f32 %v2670_v30, %v7709_v18  ;;  %v2730_v18 = vld [vmem:[#allocation4 + $0x1c8] sm:$0xff]  ;;  %v6459_v53 = vpack.c.bf16 %v2738_v13, %v2735_v8  ;;  %v6463_v30 = vpack.c.bf16 %v2744_v17, %v2741_v35  ;;  %v2752_v63 = vld [vmem:[#allocation4 + $0x278] sm:$0xff] }
 0xc12   :  { %v6437_v62 = vpack.c.bf16 %v2748_v61, %v2745_v59 }
 0xc13   :  { %v2675_v5 = vadd.f32 %v5558_v1, %v2600_v2  ;;  %2682 = vadd.xlane.f32.xlu0 %v2678_v4  ;;  %6460 = vmatprep.subr.bf16.mxu1 %v6459_v53  ;;  %v2755_v1 = vld [vmem:[#allocation4 + $0x290] sm:$0xff] }
 0xc14   :  { %6462 = vmatpush3.bf16.msra.mxu1 %v6459_v53  ;;  %v2747_v2 = vld [vmem:[#allocation4 + $0x250] sm:$0xff] }
 0xc15   :  { %v2679_v6 = vadd.f32 %v2675_v5, %v7715_v20  ;;  %v6425_v20 = vpack.c.bf16 %v2730_v18, %v2727_v25  ;;  %6464 = vmatprep.subr.bf16.mxu1 %v6463_v30  ;;  %v2750_v5 = vld [vmem:[#allocation4 + $0x268] sm:$0xff]  ;;  %v6445_v25 = vpack.c.bf16 %v2760_v23, %v2757_v22  ;;  %v2767_v18 = vld [vmem:[#allocation4 + $0x2f0] sm:$0xff] }
 0xc16   :  { %v6467_v11 = vpack.c.bf16 %v2750_v5, %v2747_v2  ;;  %v6447_v31 = vpack.c.bf16 %v2767_v18, %v2764_v27 }
 0xc17   :  { %2684 = vadd.xlane.f32.xlu1 %v2679_v6  ;;  %6426 = vmatpush1.bf16.msra.mxu0 %v6425_v20  ;;  %v2762_v20 = vld [vmem:[#allocation4 + $0x2c8] sm:$0xff] }
 0xc18   :  { %6428 = vmatprep.subr.bf16.mxu0 %v6427_v36  ;;  %6466 = vmatpush3.bf16.msra.mxu1 %v6463_v30  ;;  %v6475_v36 = vpack.c.bf16 %v2762_v20, %v2759_v14 }
 0xc19   :  { %6468 = vmatprep.subr.bf16.mxu1 %v6467_v11 }
 0xc1b   :  { %6430 = vmatpush1.bf16.msra.mxu0 %v6429_v41  ;;  %v6479_v41 = vpack.c.bf16 %v2768_v40, %v2765_v39 }
 0xc1c   :  { %6432 = vmatprep.subr.bf16.mxu0 %v6431_v52  ;;  %6470 = vmatpush3.bf16.msra.mxu1 %v6467_v11  ;;  %v5363_v52 = vld [vmem:[%s8132_s19] ss:$0 sm:$0xff] }
 0xc1d   :  { %6472 = vmatprep.subr.bf16.mxu1 %v6471_v24 }
 0xc1f   :  { %6434 = vmatpush1.bf16.msra.mxu0 %v6433_v54 }
 0xc20   :  { %6436 = vmatprep.subr.bf16.mxu0 %v6435_v58  ;;  %6474 = vmatpush3.bf16.msra.mxu1 %v6471_v24 }
 0xc21   :  { %6476 = vmatprep.subr.bf16.mxu1 %v6475_v36 }
 0xc23   :  { %6438 = vmatpush1.bf16.msra.mxu0 %v6437_v62 }
 0xc24   :  { %6478 = vmatpush3.bf16.msra.mxu1 %v6475_v36 }
 0xc25   :  { %6480 = vmatprep.subr.bf16.mxu1 %v6479_v41 }
 0xc28   :  { %6482 = vmatpush3.bf16.msra.mxu1 %v6479_v41 }
 0xc29   :  { %5994 = vmatprep.subr.mxu1 %v7145_v9 }
 0xca0   :  { %v2683_v43 = vpop.xlane.xlu0 %2682 }
 0xca1   :  { %v2686_v46 = vmul.f32 0.0078125, %v2683_v43 }
 0xca3   :  { %v7790_v42 = vsub.f32 %v2678_v4, %v2686_v46  ;;  %v6439_v4 = vpack.c.bf16 %v2755_v1, %v2752_v63 }
 0xca4   :  { %v2685_v44 = vpop.xlane.xlu1 %2684 }
 0xca5   :  { %v2687_v45 = vmul.f32 0.0078125, %v2685_v44  ;;  %v2690_v47 = vmul.f32 %v7790_v42, %v7790_v42  ;;  %6440 = vmatprep.subr.bf16.mxu0 %v6439_v4 }
 0xca7   :  { %v7794_v48 = vsub.f32 %v2679_v6, %v2687_v45  ;;  %2692 = vadd.xlane.f32.xlu0 %v2690_v47  ;;  %v2751_v6 = vld [vmem:[#allocation4 + $0x270] sm:$0xff] }
 0xca8   :  { %v6441_v12 = vpack.c.bf16 %v2754_v10, %v2751_v6 }
 0xca9   :  { %v2691_v49 = vmul.f32 %v7794_v48, %v7794_v48 }
 0xcaa   :  { %6442 = vmatpush1.bf16.msra.mxu0 %v6441_v12 }
 0xcab   :  { %2694 = vadd.xlane.f32.xlu1 %v2691_v49  ;;  %6444 = vmatprep.subr.bf16.mxu0 %v6443_v56 }
 0xcae   :  { %6446 = vmatpush1.bf16.msra.mxu0 %v6445_v25 }
 0xcaf   :  { %6448 = vmatprep.subr.bf16.mxu0 %v6447_v31 }
 0xcb2   :  { %6450 = vmatpush1.bf16.msra.mxu0 %v6449_v38 }
 0xcb3   :  { %5959 = vmatprep.subr.mxu0 %v7145_v9 }
 0xd34   :  { %v2693_v43 = vpop.xlane.xlu0 %2692 }
 0xd35   :  { %v2696_v46 = vmul.f32 0.0078125, %v2693_v43 }
 0xd37   :  { %v2698_v44 = vadd.f32 1e-12, %v2696_v46 }
 0xd38   :  { %v2695_v45 = vpop.xlane.xlu1 %2694 }
 0xd39   :  { %6834 = vrsqrt.f32 %v2698_v44  ;;  %v2697_v47 = vmul.f32 0.0078125, %v2695_v45 }
 0xd3b   :  { %v2699_v49 = vadd.f32 1e-12, %v2697_v47 }
 0xd3d   :  { %6836 = vrsqrt.f32 %v2699_v49 }
 0xd43   :  { %v6835_v50 = vpop.eup %6834 }
 0xd44   :  { %v2702_v8 = vmul.f32 %v6835_v50, %v7790_v42  ;;  %v5364_v42 = vld [vmem:[%s8171_s29 + $0x3] sm:$0x7] }
 0xd45   :  { %v2779_v57 = vrot.slane %v5364_v42, %v7496_v29  ;;  %v2783_v55 = vrot.slane %v5364_v42, %v7567_v37 }
 0xd46   :  { %v2710_v13 = vmul.f32 %v5362_v51, %v2702_v8 }
 0xd47   :  { %v6837_v15 = vpop.eup %6836 }
 0xd48   :  { %v7807_v19 = vadd.f32 %v5363_v52, %v2710_v13  ;;  %v2703_v53 = vmul.f32 %v6837_v15, %v7794_v48  ;;  %v2775_v48 = vrot.slane %v5364_v42, %v7493_v28 }
 0xd4a   :  { %2852 = vmatmul.mubr.f32.vlgmr.msra.gmra.mrb[26].mxu0 %v7807_v19  ;;  %5956 = vmatprep.mubr.f32.mxu1 %v7807_v19  ;;  %v2711_v54 = vmul.f32 %v5362_v51, %v2703_v53 }
 0xd4b   :  { %2857 = vmatprep.mubr.f32.mxu0 %v7145_v9 }
 0xd4c   :  { %v7813_v34 = vadd.f32 %v5363_v52, %v2711_v54 }
 0xd4e   :  { %2858 = vmatmul.mubr.f32.gmra.mrb[28].mxu0 %v7813_v34  ;;  %5957 = vmatmul.mubr.f32.vlgmr.msra.gmra.mrb[32].mxu1 %v7813_v34 }
 0xd4f   :  { %5961 = vmatprep.mubr.msk.f32.mxu0 %vm7146_vm7, %v7145_v9  ;;  %5996 = vmatprep.mubr.msk.f32.mxu1 %vm7146_vm7, %v7145_v9 }
 0xe1d   :  { %v2853_v35 = vpop.f32.mrb[26].mxu0 }
 0xe1e   :  { %v2854_v58 = vadd.f32 %v2853_v35, %v2775_v48  ;;  %v2855_v17 = vpop.f32.mrb[27].mxu0 }
 0xe1f   :  { %v2856_v59 = vadd.f32 %v2855_v17, %v2779_v57 }
 0xe20   :  { %2941 = vrot.lane.b32.xlu1 %v2854_v58, %s7147_s7 }
 0xe21   :  { %2955 = vrot.lane.b32.xlu0 %v2856_v59, %s7147_s7  ;;  %v2859_v61 = vpop.f32.mrb[28].mxu0  ;;  %v5958_v30 = vpop.f32.mrb[32].mxu1  ;;  %5960 = vmatpush3.xpose.msk.msra.mxu0 %vm692_vm8, %v2856_v59 }
 0xe22   :  { %v2860_v62 = vadd.f32 %v2859_v61, %v2775_v48  ;;  %v2861_v63 = vpop.f32.mrb[29].mxu0  ;;  %v2930_v1 = vpop.f32.mrb[33].mxu1  ;;  %5964 = vmatprep.subr.mxu0 %v7145_v9  ;;  %v7875_v24 = vadd.f32 %v5958_v30, %v2783_v55 }
 0xe23   :  { %v2862_v2 = vadd.f32 %v2861_v63, %v2779_v57  ;;  %v7873_v22 = vadd.f32 %v2930_v1, %v2783_v55 }
 0xe24   :  { %5962 = vmatmul.mubr.msk.f32.vlgmr.msra.gmra.mrb[30].mxu0 %vm692_vm8, %v2854_v58 }
 0xe25   :  { %2957 = vrot.lane.b32.xlu1 %v2862_v2, %s7147_s7  ;;  %5965 = vmatpush3.xpose.msk.msra.mxu0 %vm692_vm8, %v2862_v2 }
 0xe26   :  { %2943 = vrot.lane.b32.xlu0 %v2860_v62, %s7147_s7  ;;  %5966 = vmatprep.mubr.msk.f32.mxu0 %vm7146_vm7, %v7145_v9 }
 0xe27   :  { %5969 = vmatprep.subr.mxu0 %v7145_v9 }
 0xe28   :  { %5967 = vmatmul.mubr.msk.f32.vlgmr.msra.gmra.mrb[32].mxu0 %vm692_vm8, %v2860_v62 }
 0xe29   :  { %2959 = vrot.lane.b32.xlu1 %v2856_v59, %s7148_s20  ;;  %5971 = vmatprep.mubr.msk.f32.mxu0 %vm7146_vm7, %v7145_v9 }
 0xe2a   :  { %2945 = vrot.lane.b32.xlu0 %v2854_v58, %s7148_s20 }
 0xe2d   :  { %2961 = vrot.lane.b32.xlu1 %v2862_v2, %s7148_s20 }
 0xe2e   :  { %2947 = vrot.lane.b32.xlu0 %v2860_v62, %s7148_s20 }
 0xe31   :  { %2963 = vrot.lane.b32.xlu1 %v2856_v59, %s7133_s9 }
 0xe32   :  { %2965 = vrot.lane.b32.xlu0 %v2862_v2, %s7133_s9 }
 0xe35   :  { %2949 = vrot.lane.b32.xlu1 %v2854_v58, %s7133_s9 }
 0xe36   :  { %2951 = vrot.lane.b32.xlu0 %v2860_v62, %s7133_s9 }
 0xe92   :  { %v2942_v4 = vpop.permute.xlu1 %2941 }
 0xe93   :  { %v2956_v5 = vpop.permute.xlu0 %2955 }
 0xe94   :  { %5970 = vmatpush3.xpose.msk.msra.mxu0 %vm692_vm8, %v2956_v5 }
 0xe95   :  { %5974 = vmatprep.subr.mxu0 %v7145_v9 }
 0xe97   :  { %5972 = vmatmul.mubr.msk.f32.vlgmr.msra.gmra.mrb[34].mxu0 %vm692_vm8, %v2942_v4  ;;  %v2958_v6 = vpop.permute.xlu1 %2957 }
 0xe98   :  { %v2944_v10 = vpop.permute.xlu0 %2943  ;;  %5975 = vmatpush3.xpose.msk.msra.mxu0 %vm692_vm8, %v2958_v6  ;;  %5976 = vmatprep.mubr.msk.f32.mxu0 %vm7146_vm7, %v7145_v9 }
 0xe99   :  { %5979 = vmatprep.subr.mxu0 %v7145_v9 }
 0xe9b   :  { %5977 = vmatmul.mubr.msk.f32.vlgmr.msra.gmra.mrb[36].mxu0 %vm692_vm8, %v2944_v10  ;;  %v2960_v11 = vpop.permute.xlu1 %2959 }
 0xe9c   :  { %v2946_v12 = vpop.permute.xlu0 %2945  ;;  %5980 = vmatpush3.xpose.msk.msra.mxu0 %vm692_vm8, %v2960_v11  ;;  %5981 = vmatprep.mubr.msk.f32.mxu0 %vm7146_vm7, %v7145_v9 }
 0xe9d   :  { %5984 = vmatprep.subr.mxu0 %v7145_v9 }
 0xe9f   :  { %5982 = vmatmul.mubr.msk.f32.vlgmr.msra.gmra.mrb[38].mxu0 %vm692_vm8, %v2946_v12  ;;  %v2962_v16 = vpop.permute.xlu1 %2961 }
 0xea0   :  { %v2948_v7 = vpop.permute.xlu0 %2947  ;;  %5985 = vmatpush3.xpose.msk.msra.mxu0 %vm692_vm8, %v2962_v16  ;;  %5986 = vmatprep.mubr.msk.f32.mxu0 %vm7146_vm7, %v7145_v9 }
 0xea1   :  { %5989 = vmatprep.subr.mxu0 %v7145_v9 }
 0xea3   :  { %5987 = vmatmul.mubr.msk.f32.vlgmr.msra.gmra.mrb[40].mxu0 %vm692_vm8, %v2948_v7  ;;  %v2964_v56 = vpop.permute.xlu1 %2963 }
 0xea4   :  { %v2966_v21 = vpop.permute.xlu0 %2965  ;;  %5990 = vmatpush3.xpose.msk.msra.mxu0 %vm692_vm8, %v2964_v56  ;;  %5991 = vmatprep.mubr.msk.f32.mxu0 %vm7146_vm7, %v7145_v9 }
 0xea5   :  { %5995 = vmatpush3.xpose.msk.msra.mxu1 %vm692_vm8, %v2966_v21  ;;  %5999 = vmatprep.subr.mxu0 %v7145_v9 }
 0xea6   :  { %6004 = vmatprep.subr.mxu1 %v7145_v9 }
 0xea7   :  { %v2950_v23 = vpop.permute.xlu1 %2949 }
 0xea8   :  { %v2952_v25 = vpop.permute.xlu0 %2951  ;;  %5992 = vmatmul.mubr.msk.f32.vlgmr.msra.gmra.mrb[42].mxu0 %vm692_vm8, %v2950_v23 }
 0xea9   :  { %5997 = vmatmul.mubr.msk.f32.vlgmr.msra.gmra.mrb[34].mxu1 %vm692_vm8, %v2952_v25  ;;  %6000 = vmatpush3.msra.mxu0 %v7873_v22 }
 0xeaa   :  { %6005 = vmatpush3.msra.mxu1 %v7875_v24  ;;  %6001 = vmatprep.mubr.msk.f32.mxu0 %vm7146_vm7, %v7145_v9 }
 0xeab   :  { %6006 = vmatprep.mubr.msk.f32.mxu1 %vm7146_vm7, %v7145_v9  ;;  %6009 = vmatprep.subr.mxu0 %v7145_v9 }
 0xeac   :  { %6014 = vmatprep.subr.mxu1 %v7145_v9 }
 0xef7   :  { %v3057_v27 = vpop.f32.mrb[30].mxu0 }
 0xef8   :  { %v3579_v18 = vmul.f32 0.17677669, %v3057_v27  ;;  %v5963_v14 = vpop.f32.mrb[31].mxu0 }
 0xefa   :  { %v3587_v31 = vadd.f32 %v3579_v18, %v7608_v60 }
 0xefb   :  { %v3131_v20 = vpop.f32.mrb[32].mxu0 }
 0xefc   :  { %v3580_v32 = vmul.f32 0.17677669, %v3131_v20  ;;  %v5968_v33 = vpop.f32.mrb[33].mxu0  ;;  %v3595_v36 = vsel %vm1301_vm9, %v3587_v31, -inf }
 0xefd   :  { %3596 = vmax.xlane.f32.xlu1 %v3595_v36 }
 0xefe   :  { %v3588_v38 = vadd.f32 %v3580_v32, %v7611_v0 }
 0xf00   :  { %v3598_v39 = vsel %vm1301_vm9, %v3588_v38, -inf }
 0xf01   :  { %3599 = vmax.xlane.f32.xlu0 %v3598_v39 }
 0xf6a   :  { %v3205_v40 = vpop.f32.mrb[34].mxu0 }
 0xf6b   :  { %v3581_v41 = vmul.f32 0.17677669, %v3205_v40  ;;  %v5973_v43 = vpop.f32.mrb[35].mxu0 }
 0xf6d   :  { %v3589_v46 = vadd.f32 %v3581_v41, %v7608_v60 }
 0xf6e   :  { %v3279_v44 = vpop.f32.mrb[36].mxu0 }
 0xf6f   :  { %v3582_v45 = vmul.f32 0.17677669, %v3279_v44  ;;  %v5978_v47 = vpop.f32.mrb[37].mxu0  ;;  %v3601_v49 = vsel %vm1301_vm9, %v3589_v46, -inf }
 0xf70   :  { %3602 = vmax.xlane.f32.xlu0 %v3601_v49 }
 0xf71   :  { %v3590_v50 = vadd.f32 %v3582_v45, %v7611_v0 }
 0xf72   :  { %v3353_v51 = vpop.f32.mrb[38].mxu0 }
 0xf73   :  { %v3583_v8 = vmul.f32 0.17677669, %v3353_v51  ;;  %v5983_v52 = vpop.f32.mrb[39].mxu0  ;;  %v3604_v13 = vsel %vm1301_vm9, %v3590_v50, -inf }
 0xf74   :  { %3605 = vmax.xlane.f32.xlu1 %v3604_v13 }
 0xf75   :  { %v3591_v15 = vadd.f32 %v3583_v8, %v7608_v60 }
 0xf76   :  { %v3427_v53 = vpop.f32.mrb[40].mxu0 }
 0xf77   :  { %v3584_v54 = vmul.f32 0.17677669, %v3427_v53  ;;  %v5988_v42 = vpop.f32.mrb[41].mxu0  ;;  %v3607_v48 = vsel %vm1301_vm9, %v3591_v15, -inf }
 0xf78   :  { %3608 = vmax.xlane.f32.xlu0 %v3607_v48 }
 0xf79   :  { %v3592_v57 = vadd.f32 %v3584_v54, %v7611_v0 }
 0xf7b   :  { %v3501_v35 = vpop.f32.mrb[42].mxu0  ;;  %v3610_v58 = vsel %vm1301_vm9, %v3592_v57, -inf }
 0xf7c   :  { %v3585_v17 = vmul.f32 0.17677669, %v3501_v35  ;;  %v3575_v59 = vpop.f32.mrb[34].mxu1  ;;  %3611 = vmax.xlane.f32.xlu1 %v3610_v58  ;;  %v5993_v61 = vpop.f32.mrb[43].mxu0 }
 0xf7d   :  { %v3586_v30 = vmul.f32 0.17677669, %v3575_v59  ;;  %v5998_v62 = vpop.f32.mrb[35].mxu1 }
 0xf7e   :  { %v3593_v63 = vadd.f32 %v3585_v17, %v7608_v60 }
 0xf7f   :  { %v3594_v1 = vadd.f32 %v3586_v30, %v7611_v0 }
 0xf80   :  { %v3613_v2 = vsel %vm1301_vm9, %v3593_v63, -inf }
 0xf81   :  { %v3616_v4 = vsel %vm1301_vm9, %v3594_v1, -inf  ;;  %3614 = vmax.xlane.f32.xlu0 %v3613_v2 }
 0xf82   :  { %3617 = vmax.xlane.f32.xlu1 %v3616_v4 }
 0xf8a   :  { %v3597_v60 = vpop.xlane.xlu1 %3596 }
 0xf8b   :  { %v3619_v5 = vsub.f32 %v3587_v31, %v3597_v60 }
 0xf8d   :  { %v3627_v10 = vmul.f32 1.442695, %v3619_v5 }
 0xf8e   :  { %v3600_v0 = vpop.xlane.xlu0 %3599 }
 0xf8f   :  { %v3620_v6 = vsub.f32 %v3588_v38, %v3600_v0  ;;  %6838 = vpow2.f32 %v3627_v10 }
 0xf91   :  { %v3629_v11 = vmul.f32 1.442695, %v3620_v6 }
 0xf93   :  { %2971 = vrot.lane.b32.xlu1 %v7875_v24, %s7147_s7  ;;  %6840 = vpow2.f32 %v3629_v11 }
 0xf97   :  { %2975 = vrot.lane.b32.xlu1 %v7873_v22, %s7148_s20  ;;  %2969 = vrot.lane.b32.xlu0 %v7873_v22, %s7147_s7 }
 0xf99   :  { %v6839_v12 = vpop.eup %6838 }
 0xf9a   :  { %v3643_v7 = vsel %vm1301_vm9, %v6839_v12, 0.0 }
 0xf9b   :  { %2977 = vrot.lane.b32.xlu0 %v7875_v24, %s7148_s20 }
 0xf9d   :  { %v6841_v16 = vpop.eup %6840 }
 0xf9e   :  { %v3646_v55 = vsel %vm1301_vm9, %v6841_v16, 0.0 }
 0xfba   :  { %3644 = vadd.xlane.f32.xlu0 %v3643_v7 }
 0xfbb   :  { %3647 = vadd.xlane.f32.xlu1 %v3646_v55 }
 0xffd   :  { %v3603_v56 = vpop.xlane.xlu0 %3602 }
 0xffe   :  { %v3621_v21 = vsub.f32 %v3589_v46, %v3603_v56 }
0x1000   :  { %v3631_v23 = vmul.f32 1.442695, %v3621_v21 }
0x1001   :  { %v3606_v25 = vpop.xlane.xlu1 %3605 }
0x1002   :  { %6842 = vpow2.f32 %v3631_v23  ;;  %v3622_v27 = vsub.f32 %v3590_v50, %v3606_v25 }
0x1004   :  { %v3633_v18 = vmul.f32 1.442695, %v3622_v27  ;;  %v4298_v27 = vld [vmem:[#allocation6 + $0x80] sm:$0xff] }
0x1005   :  { %v3609_v14 = vpop.xlane.xlu0 %3608 }
0x1006   :  { %6844 = vpow2.f32 %v3633_v18  ;;  %v3623_v31 = vsub.f32 %v3591_v15, %v3609_v14  ;;  %v4299_v18 = vld [vmem:[#allocation6 + $0x88] sm:$0xff]  ;;  %v4300_v14 = vld [vmem:[#allocation6 + $0x90] sm:$0xff] }
0x1008   :  { %v3635_v20 = vmul.f32 1.442695, %v3623_v31  ;;  %v6483_v31 = vpack.c.bf16 %v4299_v18, %v4298_v27 }
0x1009   :  { %v3612_v32 = vpop.xlane.xlu1 %3611 }
0x100a   :  { %6846 = vpow2.f32 %v3635_v20  ;;  %v3624_v38 = vsub.f32 %v3592_v57, %v3612_v32  ;;  %v4301_v20 = vld [vmem:[#allocation6 + $0x98] sm:$0xff] }
0x100b   :  { %v6487_v32 = vpack.c.bf16 %v4301_v20, %v4300_v14  ;;  %v5390_v14 = vld [vmem:[%s8173_s28 + $0x1] ss:$0 sm:$0xff] }
0x100c   :  { %v6843_v33 = vpop.eup %6842  ;;  %v3637_v47 = vmul.f32 1.442695, %v3624_v38 }
0x100d   :  { %v3649_v36 = vsel %vm1301_vm9, %v6843_v33, 0.0 }
0x100e   :  { %v3615_v39 = vpop.xlane.xlu0 %3614  ;;  %3650 = vadd.xlane.f32.xlu0 %v3649_v36 }
0x100f   :  { %v3625_v40 = vsub.f32 %v3593_v63, %v3615_v39  ;;  %v3618_v41 = vpop.xlane.xlu1 %3617 }
0x1010   :  { %v6845_v43 = vpop.eup %6844  ;;  %v3626_v46 = vsub.f32 %v3594_v1, %v3618_v41  ;;  %v4303_v41 = vld [vmem:[#allocation6 + $0xa8] sm:$0xff] }
0x1011   :  { %v3639_v44 = vmul.f32 1.442695, %v3625_v40  ;;  %v3652_v45 = vsel %vm1301_vm9, %v6845_v43, 0.0  ;;  %v4302_v40 = vld [vmem:[#allocation6 + $0xa0] sm:$0xff] }
0x1012   :  { %v3641_v49 = vmul.f32 1.442695, %v3626_v46  ;;  %3653 = vadd.xlane.f32.xlu1 %v3652_v45  ;;  %v2970_v42 = vpop.permute.xlu0 %2969  ;;  %v4304_v46 = vld [vmem:[#allocation6 + $0xb0] sm:$0xff]  ;;  %v4306_v45 = vld [vmem:[#allocation6 + $0xc0] sm:$0xff] }
0x1013   :  { %6848 = vpow2.f32 %v3639_v44  ;;  %v2972_v48 = vpop.permute.xlu1 %2971  ;;  %v4305_v44 = vld [vmem:[#allocation6 + $0xb8] sm:$0xff] }
0x1014   :  { %v6847_v50 = vpop.eup %6846  ;;  %6850 = vpow2.f32 %v3641_v49  ;;  %v4307_v49 = vld [vmem:[#allocation6 + $0xc8] sm:$0xff] }
0x1015   :  { %v3655_v51 = vsel %vm1301_vm9, %v6847_v50, 0.0  ;;  %6852 = vpow2.f32 %v3637_v47  ;;  %v6495_v47 = vpack.c.bf16 %v4305_v44, %v4304_v46  ;;  %v4449_v46 = vld [vmem:[#allocation7 + $0x238] sm:$0xff]  ;;  %v4442_v44 = vld [vmem:[#allocation7 + $0x200] sm:$0xff] }
0x1016   :  { %3656 = vadd.xlane.f32.xlu0 %v3655_v51  ;;  %v2978_v57 = vpop.permute.xlu0 %2977 }
0x1017   :  { %v2976_v35 = vpop.permute.xlu1 %2975 }
0x101d   :  { %v6849_v8 = vpop.eup %6848 }
0x101e   :  { %v7916_v52 = vpop.eup %6850  ;;  %v3661_v13 = vsel %vm1301_vm9, %v6849_v8, 0.0 }
0x101f   :  { %3662 = vadd.xlane.f32.xlu0 %v3661_v13  ;;  %v3664_v15 = vsel %vm1301_vm9, %v7916_v52, 0.0  ;;  %v6853_v53 = vpop.eup %6852 }
0x1020   :  { %3665 = vadd.xlane.f32.xlu1 %v3664_v15  ;;  %v3658_v54 = vsel %vm1301_vm9, %v6853_v53, 0.0 }
0x1024   :  { %3659 = vadd.xlane.f32.xlu1 %v3658_v54 }
0x1035   :  { %2981 = vrot.lane.b32.xlu1 %v7873_v22, %s7133_s9  ;;  %2983 = vrot.lane.b32.xlu0 %v7875_v24, %s7133_s9 }
0x1047   :  { %v3645_v58 = vpop.xlane.xlu0 %3644 }
0x1048   :  { %6854 = vrcp.f32 %v3645_v58  ;;  %v3648_v17 = vpop.xlane.xlu1 %3647  ;;  %v4311_v58 = vld [vmem:[#allocation6 + $0xe8] sm:$0xff] }
0x1049   :  { %6856 = vrcp.f32 %v3648_v17 }
0x1052   :  { %v6855_v59 = vpop.eup %6854 }
0x1053   :  { %v6857_v61 = vpop.eup %6856  ;;  %v3675_v30 = vmul.f32 %v6855_v59, %v6839_v12  ;;  %v4312_v59 = vld [vmem:[#allocation6 + $0xf0] sm:$0xff] }
0x1054   :  { %v3676_v62 = vmul.f32 %v6857_v61, %v6841_v16  ;;  %v4313_v61 = vld [vmem:[#allocation6 + $0xf8] sm:$0xff] }
0x1055   :  { %6002 = vmatmul.mubr.msk.f32.vlgmr.msra.gmra.mrb[44].mxu0 %vm1301_vm9, %v3675_v30  ;;  %v6511_v30 = vpack.c.bf16 %v4313_v61, %v4312_v59 }
0x1056   :  { %6007 = vmatmul.mubr.msk.f32.vlgmr.msra.gmra.mrb[36].mxu1 %vm1301_vm9, %v3676_v62  ;;  %6010 = vmatpush3.msra.mxu0 %v2970_v42 }
0x1057   :  { %6015 = vmatpush3.msra.mxu1 %v2972_v48  ;;  %6011 = vmatprep.mubr.msk.f32.mxu0 %vm7146_vm7, %v7145_v9 }
0x1058   :  { %6019 = vmatprep.subr.mxu0 %v7145_v9  ;;  %6016 = vmatprep.mubr.msk.f32.mxu1 %vm7146_vm7, %v7145_v9 }
0x1059   :  { %6024 = vmatprep.subr.mxu1 %v7145_v9 }
0x109b   :  { %v3651_v22 = vpop.xlane.xlu0 %3650 }
0x109c   :  { %6858 = vrcp.f32 %v3651_v22 }
0x109f   :  { %v3654_v24 = vpop.xlane.xlu1 %3653 }
0x10a0   :  { %6860 = vrcp.f32 %v3654_v24 }
0x10a3   :  { %v3657_v63 = vpop.xlane.xlu0 %3656 }
0x10a4   :  { %6862 = vrcp.f32 %v3657_v63 }
0x10a6   :  { %v6859_v1 = vpop.eup %6858 }
0x10a7   :  { %v3677_v2 = vmul.f32 %v6859_v1, %v6843_v33 }
0x10a9   :  { %6012 = vmatmul.mubr.msk.f32.vlgmr.msra.gmra.mrb[46].mxu0 %vm1301_vm9, %v3677_v2 }
0x10aa   :  { %v6861_v4 = vpop.eup %6860  ;;  %6020 = vmatpush3.msra.mxu0 %v2976_v35  ;;  %6021 = vmatprep.mubr.msk.f32.mxu0 %vm7146_vm7, %v7145_v9  ;;  %v4310_v35 = vld [vmem:[#allocation6 + $0xe0] sm:$0xff] }
0x10ab   :  { %v3678_v60 = vmul.f32 %v6861_v4, %v6845_v43  ;;  %6029 = vmatprep.subr.mxu0 %v7145_v9  ;;  %v6491_v43 = vpack.c.bf16 %v4303_v41, %v4302_v40  ;;  %v6507_v17 = vpack.c.bf16 %v4311_v58, %v4310_v35  ;;  %v4447_v40 = vld [vmem:[#allocation7 + $0x228] sm:$0xff]  ;;  %v4445_v41 = vld [vmem:[#allocation7 + $0x218] sm:$0xff]  ;;  %v4456_v35 = vld [vmem:[#allocation7 + $0x270] sm:$0xff] }
0x10ac   :  { %v3663_v0 = vpop.xlane.xlu0 %3662  ;;  %v4459_v58 = vld [vmem:[#allocation7 + $0x288] sm:$0xff] }
0x10ad   :  { %6864 = vrcp.f32 %v3663_v0  ;;  %v3666_v5 = vpop.xlane.xlu1 %3665  ;;  %6017 = vmatmul.mubr.msk.f32.vlgmr.msra.gmra.mrb[38].mxu1 %vm1301_vm9, %v3678_v60 }
0x10ae   :  { %v6863_v6 = vpop.eup %6862  ;;  %6025 = vmatpush3.msra.mxu1 %v2978_v57  ;;  %6026 = vmatprep.mubr.msk.f32.mxu1 %vm7146_vm7, %v7145_v9 }
0x10af   :  { %v3679_v10 = vmul.f32 %v6863_v6, %v6847_v50  ;;  %6034 = vmatprep.subr.mxu1 %v7145_v9  ;;  %v6499_v50 = vpack.c.bf16 %v4307_v49, %v4306_v45  ;;  %v4446_v45 = vld [vmem:[#allocation7 + $0x220] sm:$0xff] }
0x10b0   :  { %v2984_v23 = vpop.permute.xlu0 %2983  ;;  %v6517_v49 = vpack.c.bf16 %v4446_v45, %v4442_v44 }
0x10b1   :  { %v3660_v11 = vpop.xlane.xlu1 %3659  ;;  %6022 = vmatmul.mubr.msk.f32.vlgmr.msra.gmra.mrb[48].mxu0 %vm1301_vm9, %v3679_v10 }
0x10b2   :  { %6866 = vrcp.f32 %v3660_v11  ;;  %6031 = vmatprep.mubr.msk.f32.mxu0 %vm7146_vm7, %v7145_v9 }
0x10b3   :  { %6868 = vrcp.f32 %v3666_v5 }
0x10b5   :  { %v2982_v12 = vpop.permute.xlu1 %2981 }
0x10b6   :  { %6030 = vmatpush3.msra.mxu0 %v2982_v12 }
0x10b7   :  { %v6865_v16 = vpop.eup %6864  ;;  %6484 = vmatprep.subr.bf16.mxu0 %v6483_v31 }
0x10b8   :  { %v3681_v7 = vmul.f32 %v6865_v16, %v6849_v8  ;;  %v4308_v8 = vld [vmem:[#allocation6 + $0xd0] sm:$0xff] }
0x10ba   :  { %6032 = vmatmul.mubr.msk.f32.vlgmr.msra.gmra.mrb[50].mxu0 %vm1301_vm9, %v3681_v7 }
0x10bb   :  { %6486 = vmatpush3.bf16.msra.mxu0 %v6483_v31 }
0x10bc   :  { %v6867_v55 = vpop.eup %6866  ;;  %6488 = vmatprep.subr.bf16.mxu0 %v6487_v32 }
0x10bd   :  { %v3680_v56 = vmul.f32 %v6867_v55, %v6853_v53  ;;  %v6869_v21 = vpop.eup %6868 }
0x10be   :  { %v3682_v25 = vmul.f32 %v6869_v21, %v7916_v52  ;;  %v4309_v52 = vld [vmem:[#allocation6 + $0xd8] sm:$0xff] }
0x10bf   :  { %6027 = vmatmul.mubr.msk.f32.vlgmr.msra.gmra.mrb[40].mxu1 %vm1301_vm9, %v3680_v56  ;;  %6490 = vmatpush3.bf16.msra.mxu0 %v6487_v32  ;;  %v6503_v15 = vpack.c.bf16 %v4309_v52, %v4308_v8  ;;  %v4451_v8 = vld [vmem:[#allocation7 + $0x248] sm:$0xff] }
0x10c0   :  { %6035 = vmatpush3.msra.mxu1 %v2984_v23  ;;  %6036 = vmatprep.mubr.msk.f32.mxu1 %vm7146_vm7, %v7145_v9 }
0x10c1   :  { %6492 = vmatprep.subr.bf16.mxu0 %v6491_v43 }
0x10c3   :  { %6037 = vmatmul.mubr.msk.f32.vlgmr.msra.gmra.mrb[42].mxu1 %vm1301_vm9, %v3682_v25  ;;  %6494 = vmatpush3.bf16.msra.mxu0 %v6491_v43 }
0x10c4   :  { %4593 = vmatprep.mubr.f32.mxu1 %v7145_v9  ;;  %6496 = vmatprep.subr.bf16.mxu0 %v6495_v47 }
0x10c7   :  { %6498 = vmatpush3.bf16.msra.mxu0 %v6495_v47  ;;  %v6547_v47 = vpack.c.bf16 %v4449_v46, %v4445_v41  ;;  %v4481_v41 = vld [vmem:[#allocation7 + $0x338] sm:$0xff]  ;;  %v4478_v46 = vld [vmem:[#allocation7 + $0x320] sm:$0xff] }
0x10c8   :  { %6500 = vmatprep.subr.bf16.mxu0 %v6499_v50 }
0x10cb   :  { %6502 = vmatpush3.bf16.msra.mxu0 %v6499_v50  ;;  %v4444_v50 = vld [vmem:[#allocation7 + $0x210] sm:$0xff] }
0x10cc   :  { %6504 = vmatprep.subr.bf16.mxu0 %v6503_v15 }
0x10cf   :  { %6506 = vmatpush3.bf16.msra.mxu0 %v6503_v15  ;;  %v4457_v15 = vld [vmem:[#allocation7 + $0x278] sm:$0xff] }
0x10d0   :  { %6508 = vmatprep.subr.bf16.mxu0 %v6507_v17 }
0x10d3   :  { %6510 = vmatpush3.bf16.msra.mxu0 %v6507_v17  ;;  %v4463_v17 = vld [vmem:[#allocation7 + $0x2a8] sm:$0xff] }
0x10d4   :  { %6512 = vmatprep.subr.bf16.mxu0 %v6511_v30  ;;  %v6523_v61 = vpack.c.bf16 %v4463_v17, %v4459_v58  ;;  %v4495_v58 = vld [vmem:[#allocation7 + $0x3a8] sm:$0xff]  ;;  %v4493_v17 = vld [vmem:[#allocation7 + $0x398] sm:$0xff] }
0x10d7   :  { %6514 = vmatpush3.bf16.msra.mxu0 %v6511_v30  ;;  %v4461_v30 = vld [vmem:[#allocation7 + $0x298] sm:$0xff] }
0x10d8   :  { %6548 = vmatprep.subr.bf16.mxu0 %v6547_v47  ;;  %v4476_v47 = vld [vmem:[#allocation7 + $0x310] sm:$0xff] }
0x1128   :  { %v7952_v33 = vpop.f32.mrb[44].mxu0 }
0x1129   :  { %v3825_v36 = vpop.f32.mrb[36].mxu1  ;;  %v6003_v38 = vpop.f32.mrb[45].mxu0 }
0x112a   :  { %v6008_v39 = vpop.f32.mrb[37].mxu1 }
0x112b   :  { %v4443_v39 = vld [vmem:[#allocation7 + $0x208] sm:$0xff] }
0x112c   :  { %v6515_v43 = vpack.c.bf16 %v4447_v40, %v4443_v39  ;;  %v4477_v39 = vld [vmem:[#allocation7 + $0x318] sm:$0xff] }
0x112d   :  { %v6563_v44 = vpack.c.bf16 %v4481_v41, %v4477_v39 }
0x112e   :  { %6516 = vmatprep.subr.bf16.mxu1 %v6515_v43  ;;  %v4474_v43 = vld [vmem:[#allocation7 + $0x300] sm:$0xff] }
0x112f   :  { %6518 = vmatpush1.bf16.msra.mxu1 %v6517_v49  ;;  %v6533_v45 = vpack.c.bf16 %v4478_v46, %v4474_v43  ;;  %v4480_v49 = vld [vmem:[#allocation7 + $0x330] sm:$0xff] }
0x117c   :  { %v3898_v51 = vpop.f32.mrb[46].mxu0 }
0x117d   :  { %v6013_v13 = vpop.f32.mrb[47].mxu0 }
0x117e   :  { %v4455_v13 = vld [vmem:[#allocation7 + $0x268] sm:$0xff] }
0x1180   :  { %v3971_v53 = vpop.f32.mrb[38].mxu1 }
0x1181   :  { %v6763_v54 = vpack.i.bf16 %v3971_v53, %v3898_v51  ;;  %v6018_v42 = vpop.f32.mrb[39].mxu1  ;;  %v4448_v51 = vld [vmem:[#allocation7 + $0x230] sm:$0xff] }
0x1182   :  { %v6549_v52 = vpack.c.bf16 %v4448_v51, %v4444_v50  ;;  %v4454_v42 = vld [vmem:[#allocation7 + $0x260] sm:$0xff]  ;;  %v6565_v50 = vpack.c.bf16 %v4480_v49, %v4476_v47  ;;  %v4483_v51 = vld [vmem:[#allocation7 + $0x348] sm:$0xff] }
0x1183   :  { %6764 = vrot.lane.b32.xlu1 %v6763_v54, %s7133_s9  ;;  %v4450_v54 = vld [vmem:[#allocation7 + $0x240] sm:$0xff] }
0x1184   :  { %v4044_v48 = vpop.f32.mrb[48].mxu0  ;;  %v4804_v47 = vld [vmem:[#allocation9 + $0x380] sm:$0xff] }
0x1185   :  { %v6023_v57 = vpop.f32.mrb[49].mxu0 }
0x1186   :  { %v6521_v57 = vpack.c.bf16 %v4454_v42, %v4450_v54  ;;  %v4484_v42 = vld [vmem:[#allocation7 + $0x350] sm:$0xff] }
0x118d   :  { %v4190_v62 = vpop.f32.mrb[50].mxu0 }
0x118e   :  { %v6033_v22 = vpop.f32.mrb[51].mxu0 }
0x118f   :  { %v4458_v22 = vld [vmem:[#allocation7 + $0x280] sm:$0xff] }
0x1192   :  { %v4117_v24 = vpop.f32.mrb[40].mxu1 }
0x1193   :  { %v6768_v63 = vpack.i.bf16 %v4117_v24, %v4044_v48  ;;  %v6028_v1 = vpop.f32.mrb[41].mxu1  ;;  %v4452_v48 = vld [vmem:[#allocation7 + $0x250] sm:$0xff] }
0x1194   :  { %v6553_v59 = vpack.c.bf16 %v4456_v35, %v4452_v48  ;;  %v4460_v1 = vld [vmem:[#allocation7 + $0x290] sm:$0xff] }
0x1195   :  { %6769 = vrot.lane.b32.xlu0 %v6768_v63, %s7148_s20  ;;  %v4462_v63 = vld [vmem:[#allocation7 + $0x2a0] sm:$0xff]  ;;  %v4488_v48 = vld [vmem:[#allocation7 + $0x370] sm:$0xff] }
0x1196   :  { %v4263_v2 = vpop.f32.mrb[42].mxu1  ;;  %v6569_v35 = vpack.c.bf16 %v4488_v48, %v4484_v42  ;;  %v4807_v48 = vld [vmem:[#allocation9 + $0x398] sm:$0xff] }
0x1197   :  { %v6773_v4 = vpack.i.bf16 %v4263_v2, %v4190_v62  ;;  %v6038_v60 = vpop.f32.mrb[43].mxu1  ;;  %v4465_v62 = vld [vmem:[#allocation7 + $0x2b8] sm:$0xff]  ;;  %v4464_v2 = vld [vmem:[#allocation7 + $0x2b0] sm:$0xff] }
0x1198   :  { %v6555_v24 = vpack.c.bf16 %v4465_v62, %v4461_v30  ;;  %v6557_v60 = vpack.c.bf16 %v4464_v2, %v4460_v1  ;;  %v4490_v62 = vld [vmem:[#allocation7 + $0x380] sm:$0xff]  ;;  %v4496_v1 = vld [vmem:[#allocation7 + $0x3b0] sm:$0xff]  ;;  %v4499_v2 = vld [vmem:[#allocation7 + $0x3c8] sm:$0xff] }
0x1199   :  { %6774 = vrot.lane.b32.xlu1 %v6773_v4, %s7147_s7  ;;  %v6525_v4 = vpack.c.bf16 %v4462_v63, %v4458_v22  ;;  %v4494_v22 = vld [vmem:[#allocation7 + $0x3a0] sm:$0xff] }
0x119a   :  { %v6541_v63 = vpack.c.bf16 %v4494_v22, %v4490_v62  ;;  %v4776_v62 = vld [vmem:[#allocation9 + $0x2a0] sm:$0xff]  ;;  %v4777_v22 = vld [vmem:[#allocation9 + $0x2a8] sm:$0xff] }
0x11f5   :  { %v6765_v0 = vpop.permute.xlu1 %6764 }
0x11f6   :  { %v6767_v6 = vunpack.i.h.bf16 %v6765_v0  ;;  %v6766_v10 = vunpack.i.l.bf16 %v6765_v0 }
0x11f8   :  { %v4292_v7 = vsel %vm692_vm8, %v3825_v36, %v6767_v6  ;;  %v4291_v21 = vsel %vm692_vm8, %v7952_v33, %v6766_v10 }
0x1207   :  { %v6770_v5 = vpop.permute.xlu0 %6769 }
0x1208   :  { %v6772_v11 = vunpack.i.h.bf16 %v6770_v5  ;;  %v6771_v12 = vunpack.i.l.bf16 %v6770_v5 }
0x120a   :  { %v4293_v23 = vsel %vm237_vm2, %v4291_v21, %v6771_v12  ;;  %v4294_v25 = vsel %vm237_vm2, %v4292_v7, %v6772_v11  ;;  %v4469_v21 = vld [vmem:[#allocation7 + $0x2d8] sm:$0xff] }
0x120b   :  { %v6775_v16 = vpop.permute.xlu1 %6774 }
0x120c   :  { %v6777_v55 = vunpack.i.h.bf16 %v6775_v16  ;;  %v6776_v56 = vunpack.i.l.bf16 %v6775_v16 }
0x120e   :  { %v4295_v27 = vsel %vm2002_vm10, %v4293_v23, %v6776_v56  ;;  %v4296_v18 = vsel %vm2002_vm10, %v4294_v25, %v6777_v55  ;;  %v4467_v55 = vld [vmem:[#allocation7 + $0x2c8] sm:$0xff]  ;;  %v4473_v25 = vld [vmem:[#allocation7 + $0x2f8] sm:$0xff] }
0x120f   :  { %6071 = vmatprep.mubr.f32.mxu0 %v4295_v27  ;;  %v4471_v56 = vld [vmem:[#allocation7 + $0x2e8] sm:$0xff]  ;;  %v4466_v27 = vld [vmem:[#allocation7 + $0x2c0] sm:$0xff] }
0x1210   :  { %6072 = vmatmul.mubr.f32.vlgmr.msra.gmra.mrb[52].mxu0 %v4296_v18  ;;  %v6527_v23 = vpack.c.bf16 %v4471_v56, %v4467_v55  ;;  %v4470_v18 = vld [vmem:[#allocation7 + $0x2e0] sm:$0xff]  ;;  %v4500_v55 = vld [vmem:[#allocation7 + $0x3d0] sm:$0xff] }
0x1211   :  { %4670 = vmatprep.mubr.f32.mxu0 %v7145_v9  ;;  %6550 = vmatpush1.bf16.msra.mxu0 %v6549_v52  ;;  %v4485_v52 = vld [vmem:[#allocation7 + $0x358] sm:$0xff]  ;;  %v4504_v56 = vld [vmem:[#allocation7 + $0x3f0] sm:$0xff] }
0x12e3   :  { %v6073_v31 = vpop.f32.mrb[52].mxu0 }
0x12e4   :  { %v4394_v20 = vadd.f32 %v6073_v31, %v5390_v14  ;;  %v4388_v32 = vpop.f32.mrb[53].mxu0  ;;  %v6529_v31 = vpack.c.bf16 %v4470_v18, %v4466_v27 }
0x12e5   :  { %v4389_v33 = vadd.f32 %v5390_v14, %v4388_v32  ;;  %v6559_v14 = vpack.c.bf16 %v4473_v25, %v4469_v21  ;;  %v4472_v32 = vld [vmem:[#allocation7 + $0x2f0] sm:$0xff] }
0x12e6   :  { %v4398_v36 = vadd.f32 %v4394_v20, %v7813_v34  ;;  %v4453_v34 = vld [vmem:[#allocation7 + $0x258] sm:$0xff]  ;;  %v4468_v20 = vld [vmem:[#allocation7 + $0x2d0] sm:$0xff] }
0x12e7   :  { %v4397_v38 = vadd.f32 %v4389_v33, %v7807_v19  ;;  %v6519_v19 = vpack.c.bf16 %v4455_v13, %v4451_v8  ;;  %v6551_v53 = vpack.c.bf16 %v4457_v15, %v4453_v34  ;;  %v6561_v33 = vpack.c.bf16 %v4472_v32, %v4468_v20  ;;  %v4487_v8 = vld [vmem:[#allocation7 + $0x368] sm:$0xff]  ;;  %v4489_v34 = vld [vmem:[#allocation7 + $0x378] sm:$0xff]  ;;  %v4482_v15 = vld [vmem:[#allocation7 + $0x340] sm:$0xff] }
0x12e8   :  { %4405 = vadd.xlane.f32.xlu1 %v4398_v36  ;;  %v6535_v13 = vpack.c.bf16 %v4487_v8, %v4483_v51  ;;  %v4757_v51 = vld [vmem:[#allocation9 + $0x208] sm:$0xff] }
0x12e9   :  { %4403 = vadd.xlane.f32.xlu0 %v4397_v38  ;;  %6520 = vmatprep.subr.bf16.mxu1 %v6519_v19  ;;  %v4486_v19 = vld [vmem:[#allocation7 + $0x360] sm:$0xff] }
0x12ea   :  { %6552 = vmatprep.subr.bf16.mxu0 %v6551_v53  ;;  %6522 = vmatpush1.bf16.msra.mxu1 %v6521_v57  ;;  %v6567_v53 = vpack.c.bf16 %v4489_v34, %v4485_v52  ;;  %v6537_v54 = vpack.c.bf16 %v4486_v19, %v4482_v15  ;;  %v4491_v57 = vld [vmem:[#allocation7 + $0x388] sm:$0xff]  ;;  %v4774_v19 = vld [vmem:[#allocation9 + $0x290] sm:$0xff] }
0x12eb   :  { %6554 = vmatpush1.bf16.msra.mxu0 %v6553_v59  ;;  %6524 = vmatprep.subr.bf16.mxu1 %v6523_v61  ;;  %v4497_v59 = vld [vmem:[#allocation7 + $0x3b8] sm:$0xff]  ;;  %v6539_v61 = vpack.c.bf16 %v4495_v58, %v4491_v57  ;;  %v4789_v34 = vld [vmem:[#allocation9 + $0x308] sm:$0xff]  ;;  %v4758_v57 = vld [vmem:[#allocation9 + $0x210] sm:$0xff] }
0x12ec   :  { %6556 = vmatprep.subr.bf16.mxu0 %v6555_v24  ;;  %v6571_v30 = vpack.c.bf16 %v4497_v59, %v4493_v17  ;;  %v4492_v24 = vld [vmem:[#allocation7 + $0x390] sm:$0xff] }
0x12ed   :  { %v4790_v59 = vld [vmem:[#allocation9 + $0x310] sm:$0xff] }
0x12ee   :  { %6526 = vmatpush1.bf16.msra.mxu1 %v6525_v4  ;;  %v4503_v4 = vld [vmem:[#allocation7 + $0x3e8] sm:$0xff] }
0x12ef   :  { %6558 = vmatpush1.bf16.msra.mxu0 %v6557_v60  ;;  %6528 = vmatprep.subr.bf16.mxu1 %v6527_v23  ;;  %v6573_v60 = vpack.c.bf16 %v4496_v1, %v4492_v24  ;;  %v6577_v23 = vpack.c.bf16 %v4504_v56, %v4500_v55  ;;  %v4808_v24 = vld [vmem:[#allocation9 + $0x3a0] sm:$0xff]  ;;  %v4809_v1 = vld [vmem:[#allocation9 + $0x3a8] sm:$0xff]  ;;  %v4810_v55 = vld [vmem:[#allocation9 + $0x3b0] sm:$0xff] }
0x12f0   :  { %6560 = vmatprep.subr.bf16.mxu0 %v6559_v14 }
0x12f2   :  { %6530 = vmatpush1.bf16.msra.mxu1 %v6529_v31 }
0x12f3   :  { %6562 = vmatpush1.bf16.msra.mxu0 %v6561_v33  ;;  %v5393_v33 = vld [vmem:[%s8125_s12 + $0x1] ss:$0 sm:$0xff] }
0x12f4   :  { %6564 = vmatprep.subr.bf16.mxu0 %v6563_v44  ;;  %v4772_v44 = vld [vmem:[#allocation9 + $0x280] sm:$0xff] }
0x12f7   :  { %6566 = vmatpush1.bf16.msra.mxu0 %v6565_v50  ;;  %v4756_v50 = vld [vmem:[#allocation9 + $0x200] sm:$0xff] }
0x12f8   :  { %6568 = vmatprep.subr.bf16.mxu0 %v6567_v53  ;;  %v6581_v52 = vpack.c.bf16 %v4757_v51, %v4756_v50  ;;  %v4775_v53 = vld [vmem:[#allocation9 + $0x298] sm:$0xff]  ;;  %v4814_v51 = vld [vmem:[#allocation9 + $0x3d0] sm:$0xff] }
0x12f9   :  { %v6583_v42 = vpack.c.bf16 %v4775_v53, %v4774_v19  ;;  %v4783_v50 = vld [vmem:[#allocation9 + $0x2d8] sm:$0xff]  ;;  %v4798_v53 = vld [vmem:[#allocation9 + $0x350] sm:$0xff] }
0x12fb   :  { %6570 = vmatpush1.bf16.msra.mxu0 %v6569_v35  ;;  %v4759_v35 = vld [vmem:[#allocation9 + $0x218] sm:$0xff] }
0x12fc   :  { %6572 = vmatprep.subr.bf16.mxu0 %v6571_v30  ;;  %v6585_v17 = vpack.c.bf16 %v4759_v35, %v4758_v57  ;;  %v4785_v57 = vld [vmem:[#allocation9 + $0x2e8] sm:$0xff]  ;;  %v4816_v35 = vld [vmem:[#allocation9 + $0x3e0] sm:$0xff] }
0x12ff   :  { %6574 = vmatpush1.bf16.msra.mxu0 %v6573_v60  ;;  %v6619_v60 = vpack.c.bf16 %v4809_v1, %v4808_v24  ;;  %v4801_v24 = vld [vmem:[#allocation9 + $0x368] sm:$0xff]  ;;  %v4786_v1 = vld [vmem:[#allocation9 + $0x2f0] sm:$0xff] }
0x1375   :  { %v4406_v0 = vpop.xlane.xlu1 %4405 }
0x1376   :  { %v4404_v5 = vpop.xlane.xlu0 %4403  ;;  %v4408_v6 = vmul.f32 0.0078125, %v4406_v0  ;;  %v6543_v0 = vpack.c.bf16 %v4503_v4, %v4499_v2  ;;  %v4760_v2 = vld [vmem:[#allocation9 + $0x220] sm:$0xff]  ;;  %v4761_v4 = vld [vmem:[#allocation9 + $0x228] sm:$0xff] }
0x1377   :  { %v4407_v10 = vmul.f32 0.0078125, %v4404_v5  ;;  %v4501_v5 = vld [vmem:[#allocation7 + $0x3d8] sm:$0xff] }
0x1378   :  { %v7972_v12 = vsub.f32 %v4398_v36, %v4408_v6  ;;  %v4475_v36 = vld [vmem:[#allocation7 + $0x308] sm:$0xff]  ;;  %v4505_v6 = vld [vmem:[#allocation7 + $0x3f8] sm:$0xff] }
0x1379   :  { %v7970_v11 = vsub.f32 %v4397_v38, %v4407_v10  ;;  %v4479_v38 = vld [vmem:[#allocation7 + $0x328] sm:$0xff]  ;;  %v4498_v10 = vld [vmem:[#allocation7 + $0x3c0] sm:$0xff] }
0x137a   :  { %v4412_v7 = vmul.f32 %v7972_v12, %v7972_v12  ;;  %v6531_v40 = vpack.c.bf16 %v4479_v38, %v4475_v36  ;;  %v5394_v38 = vld [vmem:[%s8126_s13 + $0x1] ss:$0 sm:$0xff] }
0x137b   :  { %v4411_v16 = vmul.f32 %v7970_v11, %v7970_v11 }
0x137c   :  { %6532 = vmatprep.subr.bf16.mxu1 %v6531_v40 }
0x137d   :  { %4413 = vadd.xlane.f32.xlu0 %v4411_v16  ;;  %6534 = vmatpush1.bf16.msra.mxu1 %v6533_v45  ;;  %v6575_v16 = vpack.c.bf16 %v4505_v6, %v4501_v5  ;;  %v4773_v45 = vld [vmem:[#allocation9 + $0x288] sm:$0xff]  ;;  %v4792_v5 = vld [vmem:[#allocation9 + $0x320] sm:$0xff] }
0x137e   :  { %6536 = vmatprep.subr.bf16.mxu1 %v6535_v13  ;;  %v6579_v49 = vpack.c.bf16 %v4773_v45, %v4772_v44  ;;  %v4788_v13 = vld [vmem:[#allocation9 + $0x300] sm:$0xff]  ;;  %v4793_v6 = vld [vmem:[#allocation9 + $0x328] sm:$0xff] }
0x137f   :  { %6576 = vmatprep.subr.bf16.mxu0 %v6575_v16  ;;  %v6613_v15 = vpack.c.bf16 %v4789_v34, %v4788_v13  ;;  %v4778_v16 = vld [vmem:[#allocation9 + $0x2b0] sm:$0xff]  ;;  %v4796_v45 = vld [vmem:[#allocation9 + $0x340] sm:$0xff]  ;;  %v4767_v34 = vld [vmem:[#allocation9 + $0x258] sm:$0xff] }
0x1380   :  { %6578 = vmatpush1.bf16.msra.mxu0 %v6577_v23  ;;  %v4762_v23 = vld [vmem:[#allocation9 + $0x230] sm:$0xff] }
0x1381   :  { %4415 = vadd.xlane.f32.xlu0 %v4412_v7  ;;  %6538 = vmatpush1.bf16.msra.mxu1 %v6537_v54  ;;  %v4502_v7 = vld [vmem:[#allocation7 + $0x3e0] sm:$0xff]  ;;  %v4806_v54 = vld [vmem:[#allocation9 + $0x390] sm:$0xff] }
0x1382   :  { %6540 = vmatprep.subr.bf16.mxu1 %v6539_v61  ;;  %v6545_v21 = vpack.c.bf16 %v4502_v7, %v4498_v10  ;;  %v6615_v58 = vpack.c.bf16 %v4807_v48, %v4806_v54  ;;  %v4791_v61 = vld [vmem:[#allocation9 + $0x318] sm:$0xff]  ;;  %v6621_v10 = vpack.c.bf16 %v4793_v6, %v4792_v5  ;;  %v4766_v13 = vld [vmem:[#allocation9 + $0x250] sm:$0xff]  ;;  %v4784_v48 = vld [vmem:[#allocation9 + $0x2e0] sm:$0xff] }
0x1383   :  { %v6617_v30 = vpack.c.bf16 %v4791_v61, %v4790_v59  ;;  %v4779_v7 = vld [vmem:[#allocation9 + $0x2b8] sm:$0xff]  ;;  %v6601_v19 = vpack.c.bf16 %v4767_v34, %v4766_v13  ;;  %v4768_v59 = vld [vmem:[#allocation9 + $0x260] sm:$0xff]  ;;  %v4769_v61 = vld [vmem:[#allocation9 + $0x268] sm:$0xff] }
0x1384   :  { %v6591_v56 = vpack.c.bf16 %v4779_v7, %v4778_v16  ;;  %v4799_v54 = vld [vmem:[#allocation9 + $0x358] sm:$0xff]  ;;  %v4770_v5 = vld [vmem:[#allocation9 + $0x270] sm:$0xff] }
0x1385   :  { %6542 = vmatpush1.bf16.msra.mxu1 %v6541_v63  ;;  %v6587_v63 = vpack.c.bf16 %v4777_v22, %v4776_v62  ;;  %v6605_v62 = vpack.c.bf16 %v4769_v61, %v4768_v59  ;;  %v4800_v22 = vld [vmem:[#allocation9 + $0x360] sm:$0xff]  ;;  %v4771_v6 = vld [vmem:[#allocation9 + $0x278] sm:$0xff]  ;;  %v4802_v7 = vld [vmem:[#allocation9 + $0x370] sm:$0xff] }
0x1386   :  { %6544 = vmatprep.subr.bf16.mxu1 %v6543_v0  ;;  %v6589_v0 = vpack.c.bf16 %v4761_v4, %v4760_v2  ;;  %v4787_v2 = vld [vmem:[#allocation9 + $0x2f8] sm:$0xff]  ;;  %v4818_v4 = vld [vmem:[#allocation9 + $0x3f0] sm:$0xff]  ;;  %v6609_v16 = vpack.c.bf16 %v4771_v6, %v4770_v5 }
0x1389   :  { %6546 = vmatpush1.bf16.msra.mxu1 %v6545_v21  ;;  %v4811_v21 = vld [vmem:[#allocation9 + $0x3b8] sm:$0xff] }
0x138a   :  { %6580 = vmatprep.subr.bf16.mxu1 %v6579_v49 }
0x140a   :  { %v4414_v25 = vpop.xlane.xlu0 %4413 }
0x140b   :  { %v4417_v27 = vmul.f32 0.0078125, %v4414_v25  ;;  %v4763_v25 = vld [vmem:[#allocation9 + $0x238] sm:$0xff] }
0x140d   :  { %v4419_v18 = vadd.f32 1e-12, %v4417_v27  ;;  %v6623_v27 = vpack.c.bf16 %v4811_v21, %v4810_v55  ;;  %v4803_v55 = vld [vmem:[#allocation9 + $0x378] sm:$0xff]  ;;  %v5395_v21 = vld [vmem:[%s8128_s15 + $0x4] sm:$0xf] }
0x140e   :  { %v4416_v14 = vpop.xlane.xlu0 %4415 }
0x140f   :  { %6870 = vrsqrt.f32 %v4419_v18  ;;  %v4418_v31 = vmul.f32 0.0078125, %v4416_v14  ;;  %v6593_v18 = vpack.c.bf16 %v4763_v25, %v4762_v23  ;;  %v4794_v14 = vld [vmem:[#allocation9 + $0x330] sm:$0xff]  ;;  %v4512_v23 = vrot.slane %v5395_v21, %v7493_v28 }
0x1410   :  { %v4520_v25 = vrot.slane %v5395_v21, %v7567_v37 }
0x1411   :  { %v4420_v20 = vadd.f32 1e-12, %v4418_v31  ;;  %v4795_v31 = vld [vmem:[#allocation9 + $0x338] sm:$0xff] }
0x1413   :  { %6872 = vrsqrt.f32 %v4420_v20  ;;  %v6625_v20 = vpack.c.bf16 %v4795_v31, %v4794_v14 }
0x1419   :  { %v6871_v32 = vpop.eup %6870 }
0x141a   :  { %v4423_v36 = vmul.f32 %v6871_v32, %v7970_v11  ;;  %v4780_v32 = vld [vmem:[#allocation9 + $0x2c0] sm:$0xff] }
0x141c   :  { %v4431_v39 = vmul.f32 %v5393_v33, %v4423_v36  ;;  %v4812_v36 = vld [vmem:[#allocation9 + $0x3c0] sm:$0xff] }
0x141d   :  { %v6873_v40 = vpop.eup %6872 }
0x141e   :  { %v7985_v41 = vadd.f32 %v5394_v38, %v4431_v39  ;;  %v4424_v43 = vmul.f32 %v6873_v40, %v7972_v12  ;;  %v4805_v12 = vld [vmem:[#allocation9 + $0x388] sm:$0xff]  ;;  %v4764_v40 = vld [vmem:[#allocation9 + $0x240] sm:$0xff] }
0x141f   :  { %v6611_v8 = vpack.c.bf16 %v4805_v12, %v4804_v47  ;;  %v4813_v39 = vld [vmem:[#allocation9 + $0x3c8] sm:$0xff]  ;;  %v4782_v12 = vld [vmem:[#allocation9 + $0x2d0] sm:$0xff] }
0x1420   :  { %4594 = vmatmul.mubr.f32.vlgmr.msra.gmra.mrb[44].mxu1 %v7985_v41  ;;  %4671 = vmatmul.mubr.f32.vlgmr.msra.gmra.mrb[54].mxu0 %v7985_v41  ;;  %v4432_v46 = vmul.f32 %v5393_v33, %v4424_v43  ;;  %v4781_v33 = vld [vmem:[#allocation9 + $0x2c8] sm:$0xff] }
0x1421   :  { %4599 = vmatprep.mubr.f32.mxu1 %v7145_v9  ;;  %4676 = vmatprep.mubr.f32.mxu0 %v7145_v9  ;;  %v4765_v43 = vld [vmem:[#allocation9 + $0x248] sm:$0xff] }
0x1422   :  { %v7992_v11 = vadd.f32 %v5394_v38, %v4432_v46  ;;  %6612 = vmatprep.subr.bf16.mxu0 %v6611_v8  ;;  %6582 = vmatpush3.bf16.msra.mxu1 %v6581_v52  ;;  %v6595_v38 = vpack.c.bf16 %v4781_v33, %v4780_v32  ;;  %v6627_v46 = vpack.c.bf16 %v4813_v39, %v4812_v36  ;;  %v4797_v47 = vld [vmem:[#allocation9 + $0x348] sm:$0xff]  ;;  %v4815_v52 = vld [vmem:[#allocation9 + $0x3d8] sm:$0xff] }
0x1423   :  { %6614 = vmatpush3.bf16.msra.mxu0 %v6613_v15  ;;  %6584 = vmatprep.subr.bf16.mxu1 %v6583_v42  ;;  %v6597_v44 = vpack.c.bf16 %v4765_v43, %v4764_v40  ;;  %v6629_v49 = vpack.c.bf16 %v4797_v47, %v4796_v45  ;;  %v6599_v8 = vpack.c.bf16 %v4783_v50, %v4782_v12 }
0x1424   :  { %4600 = vmatmul.mubr.f32.gmra.mrb[46].mxu1 %v7992_v11  ;;  %4677 = vmatmul.mubr.f32.gmra.mrb[56].mxu0 %v7992_v11  ;;  %v6631_v15 = vpack.c.bf16 %v4815_v52, %v4814_v51  ;;  %v6633_v42 = vpack.c.bf16 %v4799_v54, %v4798_v53 }
0x1425   :  { %6616 = vmatprep.subr.bf16.mxu0 %v6615_v58  ;;  %v6603_v58 = vpack.c.bf16 %v4785_v57, %v4784_v48 }
0x1426   :  { %6586 = vmatpush3.bf16.msra.mxu1 %v6585_v17  ;;  %v4817_v17 = vld [vmem:[#allocation9 + $0x3e8] sm:$0xff] }
0x1427   :  { %6618 = vmatpush3.bf16.msra.mxu0 %v6617_v30  ;;  %6588 = vmatprep.subr.bf16.mxu1 %v6587_v63  ;;  %v6635_v30 = vpack.c.bf16 %v4817_v17, %v4816_v35  ;;  %v6637_v63 = vpack.c.bf16 %v4801_v24, %v4800_v22 }
0x1428   :  { %6620 = vmatprep.subr.bf16.mxu0 %v6619_v60  ;;  %v6607_v60 = vpack.c.bf16 %v4787_v2, %v4786_v1 }
0x142a   :  { %6590 = vmatpush3.bf16.msra.mxu1 %v6589_v0  ;;  %v4819_v0 = vld [vmem:[#allocation9 + $0x3f8] sm:$0xff] }
0x142b   :  { %6622 = vmatpush3.bf16.msra.mxu0 %v6621_v10  ;;  %6592 = vmatprep.subr.bf16.mxu1 %v6591_v56  ;;  %v6639_v10 = vpack.c.bf16 %v4819_v0, %v4818_v4  ;;  %v6641_v56 = vpack.c.bf16 %v4803_v55, %v4802_v7 }
0x142c   :  { %6624 = vmatprep.subr.bf16.mxu0 %v6623_v27  ;;  %v4516_v27 = vrot.slane %v5395_v21, %v7496_v29 }
0x142e   :  { %6594 = vmatpush3.bf16.msra.mxu1 %v6593_v18  ;;  %v4524_v18 = vrot.slane %v5395_v21, %v2225_v3 }
0x142f   :  { %6626 = vmatpush3.bf16.msra.mxu0 %v6625_v20  ;;  %6596 = vmatprep.subr.bf16.mxu1 %v6595_v38 }
0x1430   :  { %6628 = vmatprep.subr.bf16.mxu0 %v6627_v46 }
0x1432   :  { %6598 = vmatpush3.bf16.msra.mxu1 %v6597_v44 }
0x1433   :  { %6630 = vmatpush3.bf16.msra.mxu0 %v6629_v49  ;;  %6600 = vmatprep.subr.bf16.mxu1 %v6599_v8 }
0x1434   :  { %6632 = vmatprep.subr.bf16.mxu0 %v6631_v15 }
0x1436   :  { %6602 = vmatpush3.bf16.msra.mxu1 %v6601_v19 }
0x1437   :  { %6634 = vmatpush3.bf16.msra.mxu0 %v6633_v42  ;;  %6604 = vmatprep.subr.bf16.mxu1 %v6603_v58 }
0x1438   :  { %6636 = vmatprep.subr.bf16.mxu0 %v6635_v30 }
0x143a   :  { %6606 = vmatpush3.bf16.msra.mxu1 %v6605_v62 }
0x143b   :  { %6638 = vmatpush3.bf16.msra.mxu0 %v6637_v63  ;;  %6608 = vmatprep.subr.bf16.mxu1 %v6607_v60 }
0x143c   :  { %6640 = vmatprep.subr.bf16.mxu0 %v6639_v10 }
0x143e   :  { %6610 = vmatpush3.bf16.msra.mxu1 %v6609_v16 }
0x143f   :  { %6642 = vmatpush3.bf16.msra.mxu0 %v6641_v56 }
0x14f3   :  { %v4595_v14 = vpop.f32.mrb[44].mxu1  ;;  %v4672_v31 = vpop.f32.mrb[54].mxu0 }
0x14f4   :  { %v8004_v20 = vadd.f32 %v4595_v14, %v4512_v23  ;;  %v8006_v32 = vadd.f32 %v4672_v31, %v4520_v25  ;;  %v4597_v33 = vpop.f32.mrb[45].mxu1  ;;  %v4674_v36 = vpop.f32.mrb[55].mxu0 }
0x14f5   :  { %v8008_v38 = vadd.f32 %v4597_v33, %v4516_v27  ;;  %v8010_v39 = vadd.f32 %v4674_v36, %v4524_v18 }
0x14f6   :  { %v4683_v28 = vmul.f32 %v8004_v20, %v8004_v20  ;;  %v4685_v29 = vmul.f32 %v8006_v32, %v8006_v32 }
0x14f7   :  { %v4684_v26 = vmul.f32 %v8008_v38, %v8008_v38  ;;  %v4686_v37 = vmul.f32 %v8010_v39, %v8010_v39  ;;  %v4601_v3 = vpop.f32.mrb[46].mxu1  ;;  %v4678_v40 = vpop.f32.mrb[56].mxu0 }
0x14f8   :  { %v4691_v43 = vmul.f32 %v4683_v28, %v8004_v20  ;;  %v4693_v46 = vmul.f32 %v4685_v29, %v8006_v32  ;;  %v8022_v44 = vadd.f32 %v4601_v3, %v4512_v23  ;;  %v8024_v45 = vadd.f32 %v4678_v40, %v4520_v25  ;;  %v4603_v47 = vpop.f32.mrb[47].mxu1  ;;  %v4680_v49 = vpop.f32.mrb[57].mxu0 }
0x14f9   :  { %v4692_v12 = vmul.f32 %v4684_v26, %v8008_v38  ;;  %v4694_v50 = vmul.f32 %v4686_v37, %v8010_v39  ;;  %v8028_v51 = vadd.f32 %v4603_v47, %v4516_v27  ;;  %v8030_v8 = vadd.f32 %v4680_v49, %v4524_v18 }
0x14fa   :  { %v4699_v52 = vmul.f32 0.044715, %v4691_v43  ;;  %v4701_v13 = vmul.f32 0.044715, %v4693_v46  ;;  %v4687_v34 = vmul.f32 %v8022_v44, %v8022_v44  ;;  %v4689_v15 = vmul.f32 %v8024_v45, %v8024_v45 }
0x14fb   :  { %v4700_v19 = vmul.f32 0.044715, %v4692_v12  ;;  %v4702_v53 = vmul.f32 0.044715, %v4694_v50  ;;  %v4688_v54 = vmul.f32 %v8028_v51, %v8028_v51  ;;  %v4690_v42 = vmul.f32 %v8030_v8, %v8030_v8 }
0x14fc   :  { %v4707_v48 = vadd.f32 %v4699_v52, %v8004_v20  ;;  %v4709_v57 = vadd.f32 %v4701_v13, %v8006_v32  ;;  %v4695_v35 = vmul.f32 %v4687_v34, %v8022_v44  ;;  %v4697_v58 = vmul.f32 %v4689_v15, %v8024_v45 }
0x14fd   :  { %v4708_v17 = vadd.f32 %v4700_v19, %v8008_v38  ;;  %v4710_v59 = vadd.f32 %v4702_v53, %v8010_v39  ;;  %v4696_v61 = vmul.f32 %v4688_v54, %v8028_v51  ;;  %v4698_v30 = vmul.f32 %v4690_v42, %v8030_v8 }
0x14fe   :  { %v4715_v62 = vmul.f32 0.7978846, %v4707_v48  ;;  %v4717_v22 = vmul.f32 0.7978846, %v4709_v57  ;;  %v4703_v24 = vmul.f32 0.044715, %v4695_v35 }
0x14ff   :  { %v4716_v63 = vmul.f32 0.7978846, %v4708_v17  ;;  %v4718_v1 = vmul.f32 0.7978846, %v4710_v59  ;;  %v4705_v2 = vmul.f32 0.044715, %v4697_v58 }
0x1500   :  { %6874 = vtanh.f32 %v4715_v62  ;;  %v4711_v4 = vadd.f32 %v4703_v24, %v8022_v44  ;;  %v4704_v60 = vmul.f32 0.044715, %v4696_v61  ;;  %v4706_v0 = vmul.f32 0.044715, %v4698_v30  ;;  %v5397_v57 = vld [vmem:[%s8130_s17 + $0x1] ss:$0 sm:$0xff] }
0x1501   :  { %6876 = vtanh.f32 %v4717_v22  ;;  %v4713_v5 = vadd.f32 %v4705_v2, %v8024_v45 }
0x1502   :  { %v4719_v6 = vmul.f32 0.7978846, %v4711_v4  ;;  %v4712_v10 = vadd.f32 %v4704_v60, %v8028_v51  ;;  %v4714_v16 = vadd.f32 %v4706_v0, %v8030_v8  ;;  %6878 = vtanh.f32 %v4716_v63  ;;  %v5122_v4 = vld [vmem:[#allocation12] sm:$0xff]  ;;  %v5123_v60 = vld [vmem:[#allocation12 + $0x8] sm:$0xff] }
0x1503   :  { %v4721_v7 = vmul.f32 0.7978846, %v4713_v5  ;;  %6880 = vtanh.f32 %v4718_v1  ;;  %v5022_v0 = vld [vmem:[#allocation10] sm:$0xff]  ;;  %v6667_v5 = vpack.c.bf16 %v5123_v60, %v5122_v4  ;;  %v5400_v60 = vld [vmem:[%s8131_s18 + $0x1] ss:$0 sm:$0xff] }
0x1504   :  { %v4720_v55 = vmul.f32 0.7978846, %v4712_v10  ;;  %v4722_v56 = vmul.f32 0.7978846, %v4714_v16  ;;  %6882 = vtanh.f32 %v4719_v6  ;;  %v7150_v6 = vmov 0.0|0.0   ;;  %v5023_v10 = vld [vmem:[#allocation10 + $0x8] sm:$0xff] }
0x1505   :  { %6884 = vtanh.f32 %v4721_v7  ;;  %6643 = vmatprep.subr.bf16.mxu1 %v7150_v6  ;;  %v5124_v16 = vld [vmem:[#allocation12 + $0x10] sm:$0xff]  ;;  %v5125_v7 = vld [vmem:[#allocation12 + $0x18] sm:$0xff]  ;;  %6668 = vmatprep.subr.bf16.mxu0 %v6667_v5 }
0x1506   :  { %6886 = vtanh.f32 %v4720_v55  ;;  %v6644_v55 = vpack.c.bf16 %v5023_v10, %v5022_v0 }
0x1507   :  { %6888 = vtanh.f32 %v4722_v56  ;;  %v6671_v56 = vpack.c.bf16 %v5125_v7, %v5124_v16 }
0x150a   :  { %v6875_v21 = vpop.eup %6874 }
0x150b   :  { %v6877_v23 = vpop.eup %6876  ;;  %v4731_v25 = vadd.f32 1.0, %v6875_v21 }
0x150c   :  { %v6879_v27 = vpop.eup %6878  ;;  %v4733_v18 = vadd.f32 1.0, %v6877_v23 }
0x150d   :  { %v6881_v14 = vpop.eup %6880  ;;  %v4732_v31 = vadd.f32 1.0, %v6879_v27  ;;  %v4739_v36 = vmul.f32 0.5, %v4731_v25 }
0x150e   :  { %v6883_v33 = vpop.eup %6882  ;;  %v4734_v28 = vadd.f32 1.0, %v6881_v14  ;;  %v4741_v26 = vmul.f32 0.5, %v4733_v18 }
0x150f   :  { %v6885_v29 = vpop.eup %6884  ;;  %v4740_v37 = vmul.f32 0.5, %v4732_v31  ;;  %v4735_v3 = vadd.f32 1.0, %v6883_v33  ;;  %v4747_v50 = vmul.f32 %v4739_v36, %v8004_v20  ;;  %v5024_v31 = vld [vmem:[#allocation10 + $0x10] sm:$0xff]  ;;  %v5025_v33 = vld [vmem:[#allocation10 + $0x18] sm:$0xff]  ;;  %v5126_v36 = vld [vmem:[#allocation12 + $0x20] sm:$0xff] }
0x1510   :  { %v6887_v40 = vpop.eup %6886  ;;  %v4742_v43 = vmul.f32 0.5, %v4734_v28  ;;  %v4737_v46 = vadd.f32 1.0, %v6885_v29  ;;  %v4749_v15 = vmul.f32 %v4741_v26, %v8006_v32  ;;  %v6647_v28 = vpack.c.bf16 %v5025_v33, %v5024_v31  ;;  %v5127_v29 = vld [vmem:[#allocation12 + $0x28] sm:$0xff] }
0x1511   :  { %v6889_v47 = vpop.eup %6888  ;;  %v4748_v49 = vmul.f32 %v4740_v37, %v8008_v38  ;;  %v4736_v12 = vadd.f32 1.0, %v6887_v40  ;;  %v4743_v34 = vmul.f32 0.5, %v4735_v3  ;;  %v6675_v26 = vpack.c.bf16 %v5127_v29, %v5126_v36  ;;  %v5026_v37 = vld [vmem:[#allocation10 + $0x20] sm:$0xff]  ;;  %v5027_v3 = vld [vmem:[#allocation10 + $0x28] sm:$0xff]  ;;  %v5128_v40 = vld [vmem:[#allocation12 + $0x30] sm:$0xff] }
0x1512   :  { %v4750_v52 = vmul.f32 %v4742_v43, %v8010_v39  ;;  %v4738_v13 = vadd.f32 1.0, %v6889_v47  ;;  %v4745_v53 = vmul.f32 0.5, %v4737_v46  ;;  %v6650_v43 = vpack.c.bf16 %v5027_v3, %v5026_v37  ;;  %v5129_v46 = vld [vmem:[#allocation12 + $0x38] sm:$0xff]  ;;  %v5227_v36 = vld [vmem:[#allocation15 + $0x28] sm:$0xff]  ;;  %v5230_v3 = vld [vmem:[#allocation15 + $0x40] sm:$0xff] }
0x1513   :  { %4892 = vmatprep.mubr.f32.mxu1 %v4748_v49  ;;  %v4744_v19 = vmul.f32 0.5, %v4736_v12  ;;  %v4751_v48 = vmul.f32 %v4743_v34, %v8022_v44  ;;  %v6679_v47 = vpack.c.bf16 %v5129_v46, %v5128_v40  ;;  %v5028_v49 = vld [vmem:[#allocation10 + $0x30] sm:$0xff]  ;;  %v5029_v12 = vld [vmem:[#allocation10 + $0x38] sm:$0xff]  ;;  %v5030_v34 = vld [vmem:[#allocation10 + $0x40] sm:$0xff] }
0x1514   :  { %4967 = vmatprep.mubr.f32.mxu0 %v4750_v52  ;;  %4893 = vmatmul.mubr.f32.vlgmr.msra.gmra.mrb[48].mxu1 %v4747_v50  ;;  %v4746_v54 = vmul.f32 0.5, %v4738_v13  ;;  %v4753_v20 = vmul.f32 %v4745_v53, %v8024_v45  ;;  %v5130_v50 = vld [vmem:[#allocation12 + $0x40] sm:$0xff]  ;;  %v6653_v52 = vpack.c.bf16 %v5029_v12, %v5028_v49  ;;  %v5131_v13 = vld [vmem:[#allocation12 + $0x48] sm:$0xff]  ;;  %v5132_v53 = vld [vmem:[#allocation12 + $0x50] sm:$0xff] }
0x1515   :  { %4968 = vmatmul.mubr.f32.vlgmr.msra.gmra.mrb[58].mxu0 %v4749_v15  ;;  %v4752_v42 = vmul.f32 %v4744_v19, %v8028_v51  ;;  %6645 = vmatpush3.bf16.msra.mxu1 %v6644_v55  ;;  %v5031_v15 = vld [vmem:[#allocation10 + $0x48] sm:$0xff]  ;;  %v6683_v19 = vpack.c.bf16 %v5131_v13, %v5130_v50  ;;  %v5228_v29 = vld [vmem:[#allocation15 + $0x30] sm:$0xff]  ;;  %v5233_v46 = vld [vmem:[#allocation15 + $0x58] sm:$0xff] }
0x1516   :  { %v4754_v38 = vmul.f32 %v4746_v54, %v8030_v8  ;;  %6670 = vmatpush3.bf16.msra.mxu0 %v6667_v5  ;;  %6646 = vmatprep.subr.bf16.mxu1 %v7150_v6  ;;  %v5133_v54 = vld [vmem:[#allocation12 + $0x58] sm:$0xff]  ;;  %v5231_v40 = vld [vmem:[#allocation15 + $0x48] sm:$0xff]  ;;  %v5234_v49 = vld [vmem:[#allocation15 + $0x60] sm:$0xff] }
0x1517   :  { %4897 = vmatprep.mubr.f32.mxu1 %v4752_v42  ;;  %6672 = vmatprep.subr.bf16.mxu0 %v6671_v56  ;;  %v6656_v42 = vpack.c.bf16 %v5031_v15, %v5030_v34  ;;  %v5401_v5 = vld [vmem:[%s8132_s19 + $0x1] ss:$0 sm:$0xff]  ;;  %v5235_v12 = vld [vmem:[#allocation15 + $0x68] sm:$0xff]  ;;  %v5403_v15 = vld [vmem:[#allocation13] ss:$0 sm:$0xff] }
0x1518   :  { %4972 = vmatprep.mubr.f32.mxu0 %v4754_v38  ;;  %4898 = vmatmul.mubr.f32.gmra.mrb[50].mxu1 %v4751_v48  ;;  %v6687_v38 = vpack.c.bf16 %v5133_v54, %v5132_v53  ;;  %v5134_v48 = vld [vmem:[#allocation12 + $0x60] sm:$0xff]  ;;  %v6718_v50 = vpack.c.bf16 %v5235_v12, %v5234_v49 }
0x1519   :  { %4973 = vmatmul.mubr.f32.gmra.mrb[60].mxu0 %v4753_v20  ;;  %6106 = vmatprep.mubr.msk.f32.mxu1 %vm7146_vm7, %v7145_v9  ;;  %v5135_v20 = vld [vmem:[#allocation12 + $0x68] sm:$0xff]  ;;  %v5237_v13 = vld [vmem:[#allocation15 + $0x78] sm:$0xff] }
0x151a   :  { %6674 = vmatpush3.bf16.msra.mxu0 %v6671_v56  ;;  %6648 = vmatpush3.bf16.msra.mxu1 %v6647_v28 }
0x151b   :  { %6676 = vmatprep.subr.bf16.mxu0 %v6675_v26  ;;  %6649 = vmatprep.subr.bf16.mxu1 %v7150_v6 }
0x151e   :  { %6678 = vmatpush3.bf16.msra.mxu0 %v6675_v26  ;;  %6651 = vmatpush3.bf16.msra.mxu1 %v6650_v43  ;;  %v5229_v26 = vld [vmem:[#allocation15 + $0x38] sm:$0xff]  ;;  %v5232_v43 = vld [vmem:[#allocation15 + $0x50] sm:$0xff] }
0x151f   :  { %6680 = vmatprep.subr.bf16.mxu0 %v6679_v47  ;;  %6652 = vmatprep.subr.bf16.mxu1 %v7150_v6  ;;  %v6709_v37 = vpack.c.bf16 %v5229_v26, %v5228_v29 }
0x1522   :  { %6682 = vmatpush3.bf16.msra.mxu0 %v6679_v47  ;;  %6654 = vmatpush3.bf16.msra.mxu1 %v6653_v52  ;;  %v6715_v47 = vpack.c.bf16 %v5233_v46, %v5232_v43  ;;  %v5236_v52 = vld [vmem:[#allocation15 + $0x70] sm:$0xff] }
0x1523   :  { %6684 = vmatprep.subr.bf16.mxu0 %v6683_v19  ;;  %6655 = vmatprep.subr.bf16.mxu1 %v7150_v6  ;;  %v6721_v34 = vpack.c.bf16 %v5237_v13, %v5236_v52 }
0x1526   :  { %6686 = vmatpush3.bf16.msra.mxu0 %v6683_v19  ;;  %6657 = vmatpush3.bf16.msra.mxu1 %v6656_v42  ;;  %v5402_v42 = vld [vmem:[%s8134_s21] ss:$0 sm:$0xff] }
0x1527   :  { %6688 = vmatprep.subr.bf16.mxu0 %v6687_v38  ;;  %6658 = vmatprep.subr.bf16.mxu1 %v7150_v6 }
0x152a   :  { %6690 = vmatpush3.bf16.msra.mxu0 %v6687_v38 }
0x15e7   :  { %v5659_v32 = vpop.f32.mrb[48].mxu1 }
0x15e8   :  { %v5697_v39 = vpop.f32.mrb[58].mxu0  ;;  %v5660_v51 = vpop.f32.mrb[49].mxu1 }
0x15e9   :  { %v5661_v35 = vadd.f32 %v5660_v51, %v5659_v32  ;;  %v5698_v8 = vpop.f32.mrb[59].mxu0  ;;  %v5032_v32 = vld [vmem:[#allocation10 + $0x50] sm:$0xff] }
0x15ea   :  { %v5699_v58 = vadd.f32 %v5698_v8, %v5697_v39  ;;  %v5033_v39 = vld [vmem:[#allocation10 + $0x58] sm:$0xff] }
0x15eb   :  { %v4895_v44 = vadd.f32 %v5661_v35, %v5397_v57  ;;  %v5662_v17 = vpop.f32.mrb[50].mxu1  ;;  %v6659_v51 = vpack.c.bf16 %v5033_v39, %v5032_v32  ;;  %v5136_v35 = vld [vmem:[#allocation12 + $0x70] sm:$0xff]  ;;  %v5137_v8 = vld [vmem:[#allocation12 + $0x78] sm:$0xff]  ;;  %v5404_v39 = vld [vmem:[#allocation16] ss:$0 sm:$0xff] }
0x15ec   :  { %v5700_v59 = vpop.f32.mrb[60].mxu0  ;;  %v5663_v45 = vpop.f32.mrb[51].mxu1 }
0x15ed   :  { %v4970_v61 = vadd.f32 %v5699_v58, %v4895_v44  ;;  %v5664_v30 = vadd.f32 %v5663_v45, %v5662_v17  ;;  %v5701_v62 = vpop.f32.mrb[61].mxu0  ;;  %v5034_v58 = vld [vmem:[#allocation10 + $0x60] sm:$0xff]  ;;  %v5035_v44 = vld [vmem:[#allocation10 + $0x68] sm:$0xff]  ;;  %v6695_v17 = vpack.c.bf16 %v5137_v8, %v5136_v35  ;;  %6660 = vmatpush3.bf16.msra.mxu1 %v6659_v51  ;;  %v5036_v45 = vld [vmem:[#allocation10 + $0x70] sm:$0xff] }
0x15ee   :  { %v5702_v22 = vadd.f32 %v5701_v62, %v5700_v59  ;;  %v6662_v59 = vpack.c.bf16 %v5035_v44, %v5034_v58  ;;  %6661 = vmatprep.subr.bf16.mxu1 %v7150_v6 }
0x15ef   :  { %v4900_v24 = vadd.f32 %v5664_v30, %v5397_v57  ;;  %v4978_v63 = vadd.f32 %v4970_v61, %v7985_v41  ;;  %v6691_v57 = vpack.c.bf16 %v5135_v20, %v5134_v48  ;;  %v5037_v61 = vld [vmem:[#allocation10 + $0x78] sm:$0xff] }
0x15f0   :  { %v6665_v30 = vpack.c.bf16 %v5037_v61, %v5036_v45 }
0x15f1   :  { %v4975_v1 = vadd.f32 %v5702_v22, %v4900_v24  ;;  %4984 = vadd.xlane.f32.xlu0 %v4978_v63  ;;  %6692 = vmatprep.subr.bf16.mxu0 %v6691_v57 }
0x15f2   :  { %6694 = vmatpush3.bf16.msra.mxu0 %v6691_v57  ;;  %6663 = vmatpush3.bf16.msra.mxu1 %v6662_v59 }
0x15f3   :  { %v4979_v2 = vadd.f32 %v4975_v1, %v7992_v11  ;;  %6696 = vmatprep.subr.bf16.mxu0 %v6695_v17  ;;  %6664 = vmatprep.subr.bf16.mxu1 %v7150_v6 }
0x15f5   :  { %4986 = vadd.xlane.f32.xlu1 %v4979_v2 }
0x15f6   :  { %6698 = vmatpush3.bf16.msra.mxu0 %v6695_v17  ;;  %6666 = vmatpush3.bf16.msra.mxu1 %v6665_v30 }
0x15f7   :  { %6699 = vmatprep.subr.bf16.mxu1 %v7150_v6 }
0x167e   :  { %v4985_v41 = vpop.xlane.xlu0 %4984 }
0x167f   :  { %v4988_v11 = vmul.f32 0.0078125, %v4985_v41  ;;  %v5222_v41 = vld [vmem:[#allocation15] sm:$0xff] }
0x1681   :  { %v8069_v21 = vsub.f32 %v4978_v63, %v4988_v11  ;;  %v5223_v11 = vld [vmem:[#allocation15 + $0x8] sm:$0xff] }
0x1682   :  { %v4987_v23 = vpop.xlane.xlu1 %4986 }
0x1683   :  { %v4989_v25 = vmul.f32 0.0078125, %v4987_v23  ;;  %v4992_v27 = vmul.f32 %v8069_v21, %v8069_v21 }
0x1685   :  { %v8073_v18 = vsub.f32 %v4979_v2, %v4989_v25  ;;  %4994 = vadd.xlane.f32.xlu0 %v4992_v27  ;;  %v6700_v27 = vpack.c.bf16 %v5223_v11, %v5222_v41 }
0x1687   :  { %v4993_v14 = vmul.f32 %v8073_v18, %v8073_v18 }
0x1689   :  { %4996 = vadd.xlane.f32.xlu1 %v4993_v14  ;;  %v5224_v14 = vld [vmem:[#allocation15 + $0x10] sm:$0xff] }
0x1712   :  { %v4995_v62 = vpop.xlane.xlu0 %4994 }
0x1713   :  { %v4998_v22 = vmul.f32 0.0078125, %v4995_v62 }
0x1715   :  { %v5000_v24 = vadd.f32 1e-12, %v4998_v22 }
0x1716   :  { %v4997_v63 = vpop.xlane.xlu1 %4996 }
0x1717   :  { %6890 = vrsqrt.f32 %v5000_v24  ;;  %v4999_v1 = vmul.f32 0.0078125, %v4997_v63 }
0x1719   :  { %v5001_v2 = vadd.f32 1e-12, %v4999_v1 }
0x171b   :  { %6892 = vrsqrt.f32 %v5001_v2 }
0x1721   :  { %v6891_v4 = vpop.eup %6890 }
0x1722   :  { %v5004_v0 = vmul.f32 %v6891_v4, %v8069_v21  ;;  %v5225_v21 = vld [vmem:[#allocation15 + $0x18] sm:$0xff] }
0x1723   :  { %v6703_v33 = vpack.c.bf16 %v5225_v21, %v5224_v14 }
0x1724   :  { %v5012_v10 = vmul.f32 %v5400_v60, %v5004_v0 }
0x1725   :  { %v6893_v16 = vpop.eup %6892 }
0x1726   :  { %v5005_v7 = vmul.f32 %v6893_v16, %v8073_v18  ;;  %v5020_v55 = vadd.f32 %v5401_v5, %v5012_v10  ;;  %v5226_v18 = vld [vmem:[#allocation15 + $0x20] sm:$0xff] }
0x1727   :  { %v6706_v28 = vpack.c.bf16 %v5227_v36, %v5226_v18 }
0x1728   :  { %v5013_v56 = vmul.f32 %v5400_v60, %v5005_v7  ;;  %6141 = vmatprep.mubr.f32.mxu0 %v5020_v55 }
0x172a   :  { %v5021_v23 = vadd.f32 %v5401_v5, %v5013_v56 }
0x172c   :  { %v5047_v25 = vrot.slane %v5021_v23, 7  ;;  %6142 = vmatmul.mubr.f32.vlgmr.msra.gmra.mrb[62].mxu0 %v5021_v23 }
0x172e   :  { %v5049_v31 = vsel %vm5048_vm11, %v5047_v25, %v5020_v55 }
0x172f   :  { %6107 = vmatmul.mubr.f32.vlgmr.msra.gmra.mrb[52].mxu1 %v5049_v31 }
0x1730   :  { %6701 = vmatpush3.bf16.msra.mxu1 %v6700_v27  ;;  %6176 = vmatprep.mubr.msk.f32.mxu1 %vm7146_vm7, %v7145_v9  ;;  %v6712_v9 = vpack.c.bf16 %v5231_v40, %v5230_v3 }
0x1731   :  { %6702 = vmatprep.subr.bf16.mxu1 %v7150_v6 }
0x1734   :  { %6704 = vmatpush3.bf16.msra.mxu1 %v6703_v33 }
0x1735   :  { %6705 = vmatprep.subr.bf16.mxu1 %v7150_v6 }
0x1738   :  { %6707 = vmatpush3.bf16.msra.mxu1 %v6706_v28 }
0x1739   :  { %6708 = vmatprep.subr.bf16.mxu1 %v7150_v6 }
0x173c   :  { %6710 = vmatpush3.bf16.msra.mxu1 %v6709_v37 }
0x173d   :  { %6711 = vmatprep.subr.bf16.mxu1 %v7150_v6 }
0x1740   :  { %6713 = vmatpush3.bf16.msra.mxu1 %v6712_v9 }
0x1741   :  { %6714 = vmatprep.subr.bf16.mxu1 %v7150_v6 }
0x1744   :  { %6716 = vmatpush3.bf16.msra.mxu1 %v6715_v47 }
0x1745   :  { %6717 = vmatprep.subr.bf16.mxu1 %v7150_v6 }
0x1748   :  { %6719 = vmatpush3.bf16.msra.mxu1 %v6718_v50 }
0x1749   :  { %6720 = vmatprep.subr.bf16.mxu1 %v7150_v6 }
0x174c   :  { %6722 = vmatpush3.bf16.msra.mxu1 %v6721_v34 }
0x17ff   :  { %v6143_v19 = vpop.f32.mrb[62].mxu0 }
0x1800   :  { %v5217_v53 = vadd.f32 %v6143_v19, %v5403_v15  ;;  %v5211_v54 = vpop.f32.mrb[63].mxu0 }
0x1801   :  { %v5212_v38 = vadd.f32 %v5403_v15, %v5211_v54 }
0x1802   :  { %5221 = vst [vmem:[%s8139_s26 + $0x8] sm:$0xff] %v5217_v53  ;;  %v5117_v48 = vpop.f32.mrb[52].mxu1 }
0x1803   :  { %5220 = vst [vmem:[%s8139_s26] sm:$0xff] %v5212_v38  ;;  %v5118_v6 = vadd.f32 %v5402_v42, %v5117_v48  ;;  %v6108_v20 = vpop.f32.mrb[53].mxu1 }
0x1805   :  { %6894 = vtanh.f32 %v5118_v6 }
0x180f   :  { %v6895_v32 = vpop.eup %6894 }
0x1810   :  { %6177 = vmatmul.mubr.f32.vlgmr.msra.gmra.mrb[54].mxu1 %v6895_v32 }
0x18e3   :  { %v5311_v57 = vpop.f32.mrb[54].mxu1 }
0x18e4   :  { %v5312_v51 = vadd.f32 %v5404_v39, %v5311_v57  ;;  %v6178_v35 = vpop.f32.mrb[55].mxu1 }
0x18e6   :  { %5315 = vst [vmem:[%s8174_s1] sm:$0x3] %v5312_v51 }
0x18e7   :  { %5324 = vsyncpa [#allocation3], 1 }
0x18e8   :  { %5325 = vsyncpa [#allocation5], 1 }
0x18e9   :  { %5326 = vsyncpa [#allocation8], 1 }
0x18ea   :  { %5327 = vsyncpa [#allocation11], 1 }
0x18eb   :  { %5328 = vsyncpa [#allocation14], 1 }
0x18ec   :  { %5329 = vsyncpa [#allocation17], 1 }

</bundles_post_ra>
